<compile_context>
chip_gen: v6e
topology: v6e:2x2x1
jax: 0.10.0
libtpu: 0.0.40
codegen_flags: <defaults>
</compile_context>

<pallas_src>
import jax
import jax.numpy as jnp
from jax.experimental import pallas as pl
from jax.experimental.pallas import tpu as pltpu

LEAK = 0.2
EPS = 1e-5
LPAD = 8          # left halo width -> sublane-aligned interior stores
TARGET_M = 512    # target pixels (matmul rows) per tile


def _leaky(x):
    return jnp.where(x > 0, x, LEAK * x)


def _round_up(x, m):
    return ((x + m - 1) // m) * m


def _fold_bn_into_conv(w_io, bias, bn):
    """Fold inference-mode BN into conv weights laid out (..., Cin, Cout)."""
    gamma, beta, mean, var = bn
    s = gamma / jnp.sqrt(var + EPS)          # (Cout,)
    return w_io * s, (bias - mean) * s + beta


def pathres_forward(x_nchw, params):
    """Full _PathRes forward (inference-mode BN). x_nchw: (N, f_in, H, W) float32."""
    x = jnp.transpose(x_nchw, (0, 2, 3, 1)).astype(jnp.float32)   # NCHW -> NHWC
    N, H, W, f_in = x.shape
    L = len(params)
    f_out = params[0]['w3'].shape[0]
    # TODO(synk): pad-to-128 lanes is wasteful at tiny channel counts (f_out=8 here);
    # production use with small C should pack pixels into lanes / group channels.
    C = _round_up(max(f_in, f_out), 128)

    xp = jnp.pad(x, ((0, 0), (0, 0), (0, 0), (0, C - f_in))).astype(jnp.bfloat16)

    # ---------------- fold BN into convs, pack per-layer parameters ----------------
    w_blocks, b_blocks, aff_blocks = [], [], []
    for p in params:
        cout, cin = p['w3'].shape[0], p['w3'].shape[1]
        # OIHW -> (tap, Cin, Cout); (Cout, Cin, 1, 1) -> (Cin, Cout)
        w3 = jnp.transpose(p['w3'], (2, 3, 1, 0)).reshape(9, cin, cout)
        w1 = jnp.transpose(p['w1'][:, :, 0, 0], (1, 0))
        w3f, b3f = _fold_bn_into_conv(w3, p['b3'], p['bn3'])
        w1f, b1f = _fold_bn_into_conv(w1, p['b1'], p['bn1'])
        g, be, m, v = p['bno']
        scale = g / jnp.sqrt(v + EPS)
        shift = be - m * scale

        wl = jnp.zeros((10, C, C), jnp.float32)
        wl = wl.at[:9, :cin, :cout].set(w3f)    # taps 0..8 : 3x3 branch
        wl = wl.at[9, :cin, :cout].set(w1f)     # tap 9     : 1x1 branch
        w_blocks.append(wl)

        bl = jnp.zeros((2, C), jnp.float32)
        b_blocks.append(bl.at[0, :cout].set(b3f).at[1, :cout].set(b1f))
        al = jnp.zeros((2, C), jnp.float32)
        aff_blocks.append(al.at[0, :cout].set(scale).at[1, :cout].set(shift))

    w_all = jnp.stack(w_blocks).astype(jnp.bfloat16)   # (L, 10, C, C) bf16
    b_all = jnp.stack(b_blocks)                        # (L, 2, C)    f32
    aff_all = jnp.stack(aff_blocks)                    # (L, 2, C)    f32

    # ---------------- static row tiling / buffer geometry --------------------------
    wbuf = LPAD + W + 8                                # padded-activation width
    th_nom = max(1, min(H, TARGET_M // max(W, 1)))
    tiles, h = [], 0
    while h < H:
        th = min(th_nom, H - h)
        tiles.append((h, th))
        h += th

    def kernel(x_ref, w_ref, b_ref, aff_ref, out_ref, xpad):
        # grid=(N, L): n outer ("parallel"), l inner ("arbitrary").  xpad (bf16 zero-
        # halo'd activation) and out_ref (same block index for all l) stay VMEM-
        # resident across the whole layer loop of a batch element.
        l = pl.program_id(1)
        last = pl.num_programs(1) - 1

        @pl.when(l == 0)
        def _init():
            # Zero only the 1-wide halo ring; the interior is overwritten every layer.
            zrow = jnp.zeros((1, wbuf, C), jnp.bfloat16)
            xpad[pl.ds(0, 1), :, :] = zrow
            xpad[pl.ds(H + 1, 1), :, :] = zrow
            zcol = jnp.zeros((H, 1, C), jnp.bfloat16)
            xpad[pl.ds(1, H), pl.ds(LPAD - 1, 1), :] = zcol
            xpad[pl.ds(1, H), pl.ds(LPAD + W, 1), :] = zcol
            xpad[pl.ds(1, H), pl.ds(LPAD, W), :] = x_ref[0]

        wl = w_ref.at[l]                  # (10, C, C) bf16 view (weights VMEM-resident)
        bl = b_ref[l]                     # (2, C) f32
        af = aff_ref[l]                   # (2, C) f32
        b3, b1 = bl[0:1, :], bl[1:2, :]
        scale, shift = af[0:1, :], af[1:2, :]

        for (h0, th) in tiles:            # static row tiles (~TARGET_M pixels each)
            m = th * W
            acc3 = jnp.zeros((m, C), jnp.float32)
            center = None
            for dy in range(3):
                for dx in range(3):
                    slab = xpad[pl.ds(h0 + dy, th),
                                pl.ds(LPAD - 1 + dx, W), :].reshape(m, C)
                    if dy == 1 and dx == 1:
                        center = slab
                    acc3 = acc3 + jnp.dot(slab, wl[dy * 3 + dx],
                                          preferred_element_type=jnp.float32)
            acc1 = jnp.dot(center, wl[9], preferred_element_type=jnp.float32)
            a = _leaky(acc3 + b3)          # LeakyReLU(BN(conv3x3(x)))
            bb = _leaky(acc1 + b1)         # LeakyReLU(BN(conv1x1(x)))
            s = _leaky(a + bb)             # accfun
            y = s * scale + shift          # output BN (inference affine), f32
            out_ref[:, pl.ds(h0, th), :, :] = y.reshape(1, th, W, C)

        @pl.when(l != last)
        def _carry():
            # stage this layer's output back into the resident padded activation
            xpad[pl.ds(1, H), pl.ds(LPAD, W), :] = out_ref[0].astype(jnp.bfloat16)

    # ---------------- VMEM budget & cost estimate ----------------------------------
    m_tile = tiles[0][1] * W
    vmem_est = (
        (H + 2) * wbuf * C * 2            # resident padded activation (bf16)
        + L * 10 * C * C * 2              # resident folded weights (bf16)
        + 2 * L * 2 * C * 4               # biases + output affines (f32)
        + 2 * H * W * C * 2               # double-buffered bf16 input block
        + 2 * H * W * C * 4               # double-buffered f32 output block
        + 12 * m_tile * C * 4             # per-tile f32 temporaries + slab copies
    )
    vmem_limit = int(min(64 * 2**20, max(16 * 2**20, 2 * vmem_est)))

    cost = pl.CostEstimate(
        flops=int(2 * N * L * H * W * 10 * C * C),
        transcendentals=0,
        bytes_accessed=int(xp.size * 2 + N * H * W * C * 4
                           + w_all.size * 2 + b_all.size * 4 + aff_all.size * 4))

    out = pl.pallas_call(
        kernel,
        out_shape=jax.ShapeDtypeStruct((N, H, W, C), jnp.float32),
        grid=(N, L),
        in_specs=[
            pl.BlockSpec((1, H, W, C), lambda n, l: (n, 0, 0, 0)),
            # full-L blocks with constant index_map -> fetched once, stay VMEM-resident
            pl.BlockSpec((L, 10, C, C), lambda n, l: (0, 0, 0, 0)),
            pl.BlockSpec((L, 2, C), lambda n, l: (0, 0, 0)),
            pl.BlockSpec((L, 2, C), lambda n, l: (0, 0, 0)),
        ],
        out_specs=pl.BlockSpec((1, H, W, C), lambda n, l: (n, 0, 0, 0)),
        scratch_shapes=[
            pltpu.VMEM((H + 2, wbuf, C), jnp.bfloat16),   # resident padded activation
        ],
        compiler_params=pltpu.CompilerParams(
            dimension_semantics=("parallel", "arbitrary"),
            vmem_limit_bytes=vmem_limit),
        cost_estimate=cost,
    )(xp, w_all, b_all, aff_all)

    out = out[..., :f_out]                     # drop channel padding
    return jnp.transpose(out, (0, 3, 1, 2))    # NHWC -> NCHW


# ------------------------------ pure-JAX reference ------------------------------
def _reference_forward(x, params):
    def bnorm(y, bn):
        g, be, m, v = bn
        return (g[None, :, None, None] * (y - m[None, :, None, None]) /
                jnp.sqrt(v[None, :, None, None] + EPS) + be[None, :, None, None])

    def convbn_act(x, w, b, bn, pad):
        y = jax.lax.conv_general_dilated(
            x, w, (1, 1), [(pad, pad), (pad, pad)],
            dimension_numbers=('NCHW', 'OIHW', 'NCHW')) + b[None, :, None, None]
        y = bnorm(y, bn)
        return jnp.where(y > 0, y, LEAK * y)

    for p in params:
        a = convbn_act(x, p['w3'], p['b3'], p['bn3'], 1)
        b = convbn_act(x, p['w1'], p['b1'], p['bn1'], 0)
        s = a + b
        s = jnp.where(s > 0, s, LEAK * s)
        x = bnorm(s, p['bno'])
    return x


def make_params(key, f_in, f_out, length):
    params = []
    for i in range(length):
        cin = f_in if i == 0 else f_out
        ks = jax.random.split(jax.random.fold_in(key, i), 16)

        def nrm(k, shape, scale=0.1):
            return scale * jax.random.normal(k, shape, jnp.float32)

        params.append(dict(
            w3=nrm(ks[0], (f_out, cin, 3, 3)),
            b3=nrm(ks[1], (f_out,)),
            bn3=(1.0 + nrm(ks[2], (f_out,)), nrm(ks[3], (f_out,)),
                 nrm(ks[4], (f_out,)), 0.5 + jnp.abs(nrm(ks[5], (f_out,), 1.0))),
            w1=nrm(ks[6], (f_out, cin, 1, 1)),
            b1=nrm(ks[7], (f_out,)),
            bn1=(1.0 + nrm(ks[8], (f_out,)), nrm(ks[9], (f_out,)),
                 nrm(ks[10], (f_out,)), 0.5 + jnp.abs(nrm(ks[11], (f_out,), 1.0))),
            bno=(1.0 + nrm(ks[12], (f_out,)), nrm(ks[13], (f_out,)),
                 nrm(ks[14], (f_out,)), 0.5 + jnp.abs(nrm(ks[15], (f_out,), 1.0))),
        ))
    return params


if __name__ == "__main__":
    key = jax.random.PRNGKey(0)
    k_x, k_p = jax.random.split(key)

    N, F_IN, F_OUT, H, W, LENGTH = 2, 4, 8, 16, 16, 2
    x = jax.random.normal(k_x, (N, F_IN, H, W), jnp.float32)
    params = make_params(k_p, F_IN, F_OUT, LENGTH)

    out = pathres_forward(x, params)
    out = jax.block_until_ready(out)

    ref = _reference_forward(x, params)
    assert out.shape == (N, F_OUT, H, W)
    # bf16 MXU operands (f32 accumulation) across LENGTH stacked layers -> loosened tol
    assert jnp.allclose(out, ref, atol=5e-2, rtol=5e-2), \
        float(jnp.max(jnp.abs(out - ref)))

    print("KERNEL_OK")
</pallas_src>

<mosaic_0001>
module attributes {stable_mosaic.version = 11 : i64} {
  func.func @kernel(%arg0: i32, %arg1: i32, %arg2: memref<1x16x16x128xbf16, #tpu.memory_space<vmem>>, %arg3: memref<2x10x128x128xbf16, #tpu.memory_space<vmem>>, %arg4: memref<2x2x128xf32, #tpu.memory_space<vmem>>, %arg5: memref<2x2x128xf32, #tpu.memory_space<vmem>>, %arg6: memref<1x16x16x128xf32, #tpu.memory_space<vmem>>, %arg7: memref<18x32x128xbf16, #tpu.memory_space<vmem>>) attributes {dimension_semantics = [#tpu.dimension_semantics<parallel>, #tpu.dimension_semantics<arbitrary>], iteration_bounds = array<i64: 2, 2>, scalar_prefetch = 0 : i64, scratch_operands = 1 : i64, tpu.core_type = #tpu.core_type<tc>, window_params = [{transform_indices = @transform_0, window_bounds = array<i64: 1, 16, 16, 128>}, {pipeline_mode = #tpu.pipeline_mode<synchronous>, transform_indices = @transform_1, window_bounds = array<i64: 2, 10, 128, 128>}, {pipeline_mode = #tpu.pipeline_mode<synchronous>, transform_indices = @transform_2, window_bounds = array<i64: 2, 2, 128>}, {pipeline_mode = #tpu.pipeline_mode<synchronous>, transform_indices = @transform_3, window_bounds = array<i64: 2, 2, 128>}, {transform_indices = @transform_4, window_bounds = array<i64: 1, 16, 16, 128>}]} {
    %c0_i32 = arith.constant 0 : i32
    %0 = arith.cmpi eq, %arg1, %c0_i32 : i32
    %1 = arith.extui %0 : i1 to i32
    %c0_i32_0 = arith.constant 0 : i32
    %2 = arith.cmpi ne, %1, %c0_i32_0 : i32
    scf.if %2 {
      %cst_103 = arith.constant 0.000000e+00 : bf16
      %120 = vector.broadcast %cst_103 : bf16 to vector<1x32x128xbf16>
      %c0_104 = arith.constant 0 : index
      %c0_105 = arith.constant 0 : index
      %c0_106 = arith.constant 0 : index
      %121 = vector.load %arg7[%c0_104, %c0_105, %c0_106] : memref<18x32x128xbf16, #tpu.memory_space<vmem>>, vector<1x32x128xbf16>
      tpu.vector_store %arg7[%c0_104, %c0_105, %c0_106], %120 {strides = array<i32>} : memref<18x32x128xbf16, #tpu.memory_space<vmem>>, vector<1x32x128xbf16>,
      %c17 = arith.constant 17 : index
      %c0_107 = arith.constant 0 : index
      %c0_108 = arith.constant 0 : index
      %122 = vector.load %arg7[%c17, %c0_107, %c0_108] : memref<18x32x128xbf16, #tpu.memory_space<vmem>>, vector<1x32x128xbf16>
      tpu.vector_store %arg7[%c17, %c0_107, %c0_108], %120 {strides = array<i32>} : memref<18x32x128xbf16, #tpu.memory_space<vmem>>, vector<1x32x128xbf16>,
      %cst_109 = arith.constant 0.000000e+00 : bf16
      %123 = vector.broadcast %cst_109 : bf16 to vector<16x1x128xbf16>
      %c1_110 = arith.constant 1 : index
      %c7_111 = arith.constant 7 : index
      %c0_112 = arith.constant 0 : index
      %124 = vector.load %arg7[%c1_110, %c7_111, %c0_112] : memref<18x32x128xbf16, #tpu.memory_space<vmem>>, vector<16x1x128xbf16>
      tpu.vector_store %arg7[%c1_110, %c7_111, %c0_112], %123 {strides = array<i32>} : memref<18x32x128xbf16, #tpu.memory_space<vmem>>, vector<16x1x128xbf16>,
      %c1_113 = arith.constant 1 : index
      %c24 = arith.constant 24 : index
      %c0_114 = arith.constant 0 : index
      %125 = vector.load %arg7[%c1_113, %c24, %c0_114] : memref<18x32x128xbf16, #tpu.memory_space<vmem>>, vector<16x1x128xbf16>
      tpu.vector_store %arg7[%c1_113, %c24, %c0_114], %123 {strides = array<i32>} : memref<18x32x128xbf16, #tpu.memory_space<vmem>>, vector<16x1x128xbf16>,
      %c0_115 = arith.constant 0 : index
      %c0_116 = arith.constant 0 : index
      %c0_117 = arith.constant 0 : index
      %c0_118 = arith.constant 0 : index
      %126 = vector.load %arg2[%c0_115, %c0_116, %c0_117, %c0_118] : memref<1x16x16x128xbf16, #tpu.memory_space<vmem>>, vector<1x16x16x128xbf16>
      %127 = vector.shape_cast %126 : vector<1x16x16x128xbf16> to vector<16x16x128xbf16>
      %c1_119 = arith.constant 1 : index
      %c8_120 = arith.constant 8 : index
      %c0_121 = arith.constant 0 : index
      %128 = vector.load %arg7[%c1_119, %c8_120, %c0_121] : memref<18x32x128xbf16, #tpu.memory_space<vmem>>, vector<16x16x128xbf16>
      tpu.vector_store %arg7[%c1_119, %c8_120, %c0_121], %127 {strides = array<i32>} : memref<18x32x128xbf16, #tpu.memory_space<vmem>>, vector<16x16x128xbf16>,
    } else {
    }
    %3 = arith.index_cast %arg1 : i32 to index
    %c0 = arith.constant 0 : index
    %c0_1 = arith.constant 0 : index
    %4 = vector.load %arg4[%3, %c0, %c0_1] : memref<2x2x128xf32, #tpu.memory_space<vmem>>, vector<1x2x128xf32>
    %5 = vector.shape_cast %4 : vector<1x2x128xf32> to vector<2x128xf32>
    %6 = arith.index_cast %arg1 : i32 to index
    %c0_2 = arith.constant 0 : index
    %c0_3 = arith.constant 0 : index
    %7 = vector.load %arg5[%6, %c0_2, %c0_3] : memref<2x2x128xf32, #tpu.memory_space<vmem>>, vector<1x2x128xf32>
    %8 = vector.shape_cast %7 : vector<1x2x128xf32> to vector<2x128xf32>
    %9 = vector.extract_strided_slice %5 {offsets = [0, 0], sizes = [1, 128], strides = [1, 1]} : vector<2x128xf32> to vector<1x128xf32>
    %10 = vector.extract_strided_slice %5 {offsets = [1, 0], sizes = [1, 128], strides = [1, 1]} : vector<2x128xf32> to vector<1x128xf32>
    %11 = vector.extract_strided_slice %8 {offsets = [0, 0], sizes = [1, 128], strides = [1, 1]} : vector<2x128xf32> to vector<1x128xf32>
    %12 = vector.extract_strided_slice %8 {offsets = [1, 0], sizes = [1, 128], strides = [1, 1]} : vector<2x128xf32> to vector<1x128xf32>
    %cst = arith.constant 0.000000e+00 : f32
    %13 = vector.broadcast %cst : f32 to vector<256x128xf32>
    %c0_4 = arith.constant 0 : index
    %c7 = arith.constant 7 : index
    %c0_5 = arith.constant 0 : index
    %14 = vector.load %arg7[%c0_4, %c7, %c0_5] : memref<18x32x128xbf16, #tpu.memory_space<vmem>>, vector<16x16x128xbf16>
    %15 = vector.shape_cast %14 : vector<16x16x128xbf16> to vector<256x128xbf16>
    %c0_i32_6 = arith.constant 0 : i32
    %c0_i32_7 = arith.constant 0 : i32
    %c0_i32_8 = arith.constant 0 : i32
    %16 = tpu.memref_slice %arg3[%arg1, %c0_i32_6, %c0_i32_7, %c0_i32_8] : memref<2x10x128x128xbf16, #tpu.memory_space<vmem>> -> memref<1x10x128x128xbf16, #tpu.memory_space<vmem>>
    %17 = tpu.memref_squeeze %16 : memref<1x10x128x128xbf16, #tpu.memory_space<vmem>> -> memref<10x128x128xbf16, #tpu.memory_space<vmem>>
    %c0_9 = arith.constant 0 : index
    %c0_10 = arith.constant 0 : index
    %c0_11 = arith.constant 0 : index
    %18 = vector.load %17[%c0_9, %c0_10, %c0_11] : memref<10x128x128xbf16, #tpu.memory_space<vmem>>, vector<1x128x128xbf16>
    %19 = vector.shape_cast %18 : vector<1x128x128xbf16> to vector<128x128xbf16>
    %cst_12 = arith.constant dense<0.000000e+00> : vector<256x128xf32>
    %20 = tpu.matmul %15, %19, %cst_12 {dimension_numbers = #tpu.dot_dimension_numbers<[1], [0], [0], [1], [0, 0, 1, 1], [], []>} : vector<256x128xbf16>, vector<128x128xbf16>, vector<256x128xf32> -> vector<256x128xf32>
    %21 = arith.addf %13, %20 : vector<256x128xf32>
    %c0_13 = arith.constant 0 : index
    %c8 = arith.constant 8 : index
    %c0_14 = arith.constant 0 : index
    %22 = vector.load %arg7[%c0_13, %c8, %c0_14] : memref<18x32x128xbf16, #tpu.memory_space<vmem>>, vector<16x16x128xbf16>
    %23 = vector.shape_cast %22 : vector<16x16x128xbf16> to vector<256x128xbf16>
    %c0_i32_15 = arith.constant 0 : i32
    %c0_i32_16 = arith.constant 0 : i32
    %c0_i32_17 = arith.constant 0 : i32
    %24 = tpu.memref_slice %arg3[%arg1, %c0_i32_15, %c0_i32_16, %c0_i32_17] : memref<2x10x128x128xbf16, #tpu.memory_space<vmem>> -> memref<1x10x128x128xbf16, #tpu.memory_space<vmem>>
    %25 = tpu.memref_squeeze %24 : memref<1x10x128x128xbf16, #tpu.memory_space<vmem>> -> memref<10x128x128xbf16, #tpu.memory_space<vmem>>
    %c1 = arith.constant 1 : index
    %c0_18 = arith.constant 0 : index
    %c0_19 = arith.constant 0 : index
    %26 = vector.load %25[%c1, %c0_18, %c0_19] : memref<10x128x128xbf16, #tpu.memory_space<vmem>>, vector<1x128x128xbf16>
    %27 = vector.shape_cast %26 : vector<1x128x128xbf16> to vector<128x128xbf16>
    %cst_20 = arith.constant dense<0.000000e+00> : vector<256x128xf32>
    %28 = tpu.matmul %23, %27, %cst_20 {dimension_numbers = #tpu.dot_dimension_numbers<[1], [0], [0], [1], [0, 0, 1, 1], [], []>} : vector<256x128xbf16>, vector<128x128xbf16>, vector<256x128xf32> -> vector<256x128xf32>
    %29 = arith.addf %21, %28 : vector<256x128xf32>
    %c0_21 = arith.constant 0 : index
    %c9 = arith.constant 9 : index
    %c0_22 = arith.constant 0 : index
    %30 = vector.load %arg7[%c0_21, %c9, %c0_22] : memref<18x32x128xbf16, #tpu.memory_space<vmem>>, vector<16x16x128xbf16>
    %31 = vector.shape_cast %30 : vector<16x16x128xbf16> to vector<256x128xbf16>
    %c0_i32_23 = arith.constant 0 : i32
    %c0_i32_24 = arith.constant 0 : i32
    %c0_i32_25 = arith.constant 0 : i32
    %32 = tpu.memref_slice %arg3[%arg1, %c0_i32_23, %c0_i32_24, %c0_i32_25] : memref<2x10x128x128xbf16, #tpu.memory_space<vmem>> -> memref<1x10x128x128xbf16, #tpu.memory_space<vmem>>
    %33 = tpu.memref_squeeze %32 : memref<1x10x128x128xbf16, #tpu.memory_space<vmem>> -> memref<10x128x128xbf16, #tpu.memory_space<vmem>>
    %c2 = arith.constant 2 : index
    %c0_26 = arith.constant 0 : index
    %c0_27 = arith.constant 0 : index
    %34 = vector.load %33[%c2, %c0_26, %c0_27] : memref<10x128x128xbf16, #tpu.memory_space<vmem>>, vector<1x128x128xbf16>
    %35 = vector.shape_cast %34 : vector<1x128x128xbf16> to vector<128x128xbf16>
    %cst_28 = arith.constant dense<0.000000e+00> : vector<256x128xf32>
    %36 = tpu.matmul %31, %35, %cst_28 {dimension_numbers = #tpu.dot_dimension_numbers<[1], [0], [0], [1], [0, 0, 1, 1], [], []>} : vector<256x128xbf16>, vector<128x128xbf16>, vector<256x128xf32> -> vector<256x128xf32>
    %37 = arith.addf %29, %36 : vector<256x128xf32>
    %c1_29 = arith.constant 1 : index
    %c7_30 = arith.constant 7 : index
    %c0_31 = arith.constant 0 : index
    %38 = vector.load %arg7[%c1_29, %c7_30, %c0_31] : memref<18x32x128xbf16, #tpu.memory_space<vmem>>, vector<16x16x128xbf16>
    %39 = vector.shape_cast %38 : vector<16x16x128xbf16> to vector<256x128xbf16>
    %c0_i32_32 = arith.constant 0 : i32
    %c0_i32_33 = arith.constant 0 : i32
    %c0_i32_34 = arith.constant 0 : i32
    %40 = tpu.memref_slice %arg3[%arg1, %c0_i32_32, %c0_i32_33, %c0_i32_34] : memref<2x10x128x128xbf16, #tpu.memory_space<vmem>> -> memref<1x10x128x128xbf16, #tpu.memory_space<vmem>>
    %41 = tpu.memref_squeeze %40 : memref<1x10x128x128xbf16, #tpu.memory_space<vmem>> -> memref<10x128x128xbf16, #tpu.memory_space<vmem>>
    %c3 = arith.constant 3 : index
    %c0_35 = arith.constant 0 : index
    %c0_36 = arith.constant 0 : index
    %42 = vector.load %41[%c3, %c0_35, %c0_36] : memref<10x128x128xbf16, #tpu.memory_space<vmem>>, vector<1x128x128xbf16>
    %43 = vector.shape_cast %42 : vector<1x128x128xbf16> to vector<128x128xbf16>
    %cst_37 = arith.constant dense<0.000000e+00> : vector<256x128xf32>
    %44 = tpu.matmul %39, %43, %cst_37 {dimension_numbers = #tpu.dot_dimension_numbers<[1], [0], [0], [1], [0, 0, 1, 1], [], []>} : vector<256x128xbf16>, vector<128x128xbf16>, vector<256x128xf32> -> vector<256x128xf32>
    %45 = arith.addf %37, %44 : vector<256x128xf32>
    %c1_38 = arith.constant 1 : index
    %c8_39 = arith.constant 8 : index
    %c0_40 = arith.constant 0 : index
    %46 = vector.load %arg7[%c1_38, %c8_39, %c0_40] : memref<18x32x128xbf16, #tpu.memory_space<vmem>>, vector<16x16x128xbf16>
    %47 = vector.shape_cast %46 : vector<16x16x128xbf16> to vector<256x128xbf16>
    %c0_i32_41 = arith.constant 0 : i32
    %c0_i32_42 = arith.constant 0 : i32
    %c0_i32_43 = arith.constant 0 : i32
    %48 = tpu.memref_slice %arg3[%arg1, %c0_i32_41, %c0_i32_42, %c0_i32_43] : memref<2x10x128x128xbf16, #tpu.memory_space<vmem>> -> memref<1x10x128x128xbf16, #tpu.memory_space<vmem>>
    %49 = tpu.memref_squeeze %48 : memref<1x10x128x128xbf16, #tpu.memory_space<vmem>> -> memref<10x128x128xbf16, #tpu.memory_space<vmem>>
    %c4 = arith.constant 4 : index
    %c0_44 = arith.constant 0 : index
    %c0_45 = arith.constant 0 : index
    %50 = vector.load %49[%c4, %c0_44, %c0_45] : memref<10x128x128xbf16, #tpu.memory_space<vmem>>, vector<1x128x128xbf16>
    %51 = vector.shape_cast %50 : vector<1x128x128xbf16> to vector<128x128xbf16>
    %cst_46 = arith.constant dense<0.000000e+00> : vector<256x128xf32>
    %52 = tpu.matmul %47, %51, %cst_46 {dimension_numbers = #tpu.dot_dimension_numbers<[1], [0], [0], [1], [0, 0, 1, 1], [], []>} : vector<256x128xbf16>, vector<128x128xbf16>, vector<256x128xf32> -> vector<256x128xf32>
    %53 = arith.addf %45, %52 : vector<256x128xf32>
    %c1_47 = arith.constant 1 : index
    %c9_48 = arith.constant 9 : index
    %c0_49 = arith.constant 0 : index
    %54 = vector.load %arg7[%c1_47, %c9_48, %c0_49] : memref<18x32x128xbf16, #tpu.memory_space<vmem>>, vector<16x16x128xbf16>
    %55 = vector.shape_cast %54 : vector<16x16x128xbf16> to vector<256x128xbf16>
    %c0_i32_50 = arith.constant 0 : i32
    %c0_i32_51 = arith.constant 0 : i32
    %c0_i32_52 = arith.constant 0 : i32
    %56 = tpu.memref_slice %arg3[%arg1, %c0_i32_50, %c0_i32_51, %c0_i32_52] : memref<2x10x128x128xbf16, #tpu.memory_space<vmem>> -> memref<1x10x128x128xbf16, #tpu.memory_space<vmem>>
    %57 = tpu.memref_squeeze %56 : memref<1x10x128x128xbf16, #tpu.memory_space<vmem>> -> memref<10x128x128xbf16, #tpu.memory_space<vmem>>
    %c5 = arith.constant 5 : index
    %c0_53 = arith.constant 0 : index
    %c0_54 = arith.constant 0 : index
    %58 = vector.load %57[%c5, %c0_53, %c0_54] : memref<10x128x128xbf16, #tpu.memory_space<vmem>>, vector<1x128x128xbf16>
    %59 = vector.shape_cast %58 : vector<1x128x128xbf16> to vector<128x128xbf16>
    %cst_55 = arith.constant dense<0.000000e+00> : vector<256x128xf32>
    %60 = tpu.matmul %55, %59, %cst_55 {dimension_numbers = #tpu.dot_dimension_numbers<[1], [0], [0], [1], [0, 0, 1, 1], [], []>} : vector<256x128xbf16>, vector<128x128xbf16>, vector<256x128xf32> -> vector<256x128xf32>
    %61 = arith.addf %53, %60 : vector<256x128xf32>
    %c2_56 = arith.constant 2 : index
    %c7_57 = arith.constant 7 : index
    %c0_58 = arith.constant 0 : index
    %62 = vector.load %arg7[%c2_56, %c7_57, %c0_58] : memref<18x32x128xbf16, #tpu.memory_space<vmem>>, vector<16x16x128xbf16>
    %63 = vector.shape_cast %62 : vector<16x16x128xbf16> to vector<256x128xbf16>
    %c0_i32_59 = arith.constant 0 : i32
    %c0_i32_60 = arith.constant 0 : i32
    %c0_i32_61 = arith.constant 0 : i32
    %64 = tpu.memref_slice %arg3[%arg1, %c0_i32_59, %c0_i32_60, %c0_i32_61] : memref<2x10x128x128xbf16, #tpu.memory_space<vmem>> -> memref<1x10x128x128xbf16, #tpu.memory_space<vmem>>
    %65 = tpu.memref_squeeze %64 : memref<1x10x128x128xbf16, #tpu.memory_space<vmem>> -> memref<10x128x128xbf16, #tpu.memory_space<vmem>>
    %c6 = arith.constant 6 : index
    %c0_62 = arith.constant 0 : index
    %c0_63 = arith.constant 0 : index
    %66 = vector.load %65[%c6, %c0_62, %c0_63] : memref<10x128x128xbf16, #tpu.memory_space<vmem>>, vector<1x128x128xbf16>
    %67 = vector.shape_cast %66 : vector<1x128x128xbf16> to vector<128x128xbf16>
    %cst_64 = arith.constant dense<0.000000e+00> : vector<256x128xf32>
    %68 = tpu.matmul %63, %67, %cst_64 {dimension_numbers = #tpu.dot_dimension_numbers<[1], [0], [0], [1], [0, 0, 1, 1], [], []>} : vector<256x128xbf16>, vector<128x128xbf16>, vector<256x128xf32> -> vector<256x128xf32>
    %69 = arith.addf %61, %68 : vector<256x128xf32>
    %c2_65 = arith.constant 2 : index
    %c8_66 = arith.constant 8 : index
    %c0_67 = arith.constant 0 : index
    %70 = vector.load %arg7[%c2_65, %c8_66, %c0_67] : memref<18x32x128xbf16, #tpu.memory_space<vmem>>, vector<16x16x128xbf16>
    %71 = vector.shape_cast %70 : vector<16x16x128xbf16> to vector<256x128xbf16>
    %c0_i32_68 = arith.constant 0 : i32
    %c0_i32_69 = arith.constant 0 : i32
    %c0_i32_70 = arith.constant 0 : i32
    %72 = tpu.memref_slice %arg3[%arg1, %c0_i32_68, %c0_i32_69, %c0_i32_70] : memref<2x10x128x128xbf16, #tpu.memory_space<vmem>> -> memref<1x10x128x128xbf16, #tpu.memory_space<vmem>>
    %73 = tpu.memref_squeeze %72 : memref<1x10x128x128xbf16, #tpu.memory_space<vmem>> -> memref<10x128x128xbf16, #tpu.memory_space<vmem>>
    %c7_71 = arith.constant 7 : index
    %c0_72 = arith.constant 0 : index
    %c0_73 = arith.constant 0 : index
    %74 = vector.load %73[%c7_71, %c0_72, %c0_73] : memref<10x128x128xbf16, #tpu.memory_space<vmem>>, vector<1x128x128xbf16>
    %75 = vector.shape_cast %74 : vector<1x128x128xbf16> to vector<128x128xbf16>
    %cst_74 = arith.constant dense<0.000000e+00> : vector<256x128xf32>
    %76 = tpu.matmul %71, %75, %cst_74 {dimension_numbers = #tpu.dot_dimension_numbers<[1], [0], [0], [1], [0, 0, 1, 1], [], []>} : vector<256x128xbf16>, vector<128x128xbf16>, vector<256x128xf32> -> vector<256x128xf32>
    %77 = arith.addf %69, %76 : vector<256x128xf32>
    %c2_75 = arith.constant 2 : index
    %c9_76 = arith.constant 9 : index
    %c0_77 = arith.constant 0 : index
    %78 = vector.load %arg7[%c2_75, %c9_76, %c0_77] : memref<18x32x128xbf16, #tpu.memory_space<vmem>>, vector<16x16x128xbf16>
    %79 = vector.shape_cast %78 : vector<16x16x128xbf16> to vector<256x128xbf16>
    %c0_i32_78 = arith.constant 0 : i32
    %c0_i32_79 = arith.constant 0 : i32
    %c0_i32_80 = arith.constant 0 : i32
    %80 = tpu.memref_slice %arg3[%arg1, %c0_i32_78, %c0_i32_79, %c0_i32_80] : memref<2x10x128x128xbf16, #tpu.memory_space<vmem>> -> memref<1x10x128x128xbf16, #tpu.memory_space<vmem>>
    %81 = tpu.memref_squeeze %80 : memref<1x10x128x128xbf16, #tpu.memory_space<vmem>> -> memref<10x128x128xbf16, #tpu.memory_space<vmem>>
    %c8_81 = arith.constant 8 : index
    %c0_82 = arith.constant 0 : index
    %c0_83 = arith.constant 0 : index
    %82 = vector.load %81[%c8_81, %c0_82, %c0_83] : memref<10x128x128xbf16, #tpu.memory_space<vmem>>, vector<1x128x128xbf16>
    %83 = vector.shape_cast %82 : vector<1x128x128xbf16> to vector<128x128xbf16>
    %cst_84 = arith.constant dense<0.000000e+00> : vector<256x128xf32>
    %84 = tpu.matmul %79, %83, %cst_84 {dimension_numbers = #tpu.dot_dimension_numbers<[1], [0], [0], [1], [0, 0, 1, 1], [], []>} : vector<256x128xbf16>, vector<128x128xbf16>, vector<256x128xf32> -> vector<256x128xf32>
    %85 = arith.addf %77, %84 : vector<256x128xf32>
    %c0_i32_85 = arith.constant 0 : i32
    %c0_i32_86 = arith.constant 0 : i32
    %c0_i32_87 = arith.constant 0 : i32
    %86 = tpu.memref_slice %arg3[%arg1, %c0_i32_85, %c0_i32_86, %c0_i32_87] : memref<2x10x128x128xbf16, #tpu.memory_space<vmem>> -> memref<1x10x128x128xbf16, #tpu.memory_space<vmem>>
    %87 = tpu.memref_squeeze %86 : memref<1x10x128x128xbf16, #tpu.memory_space<vmem>> -> memref<10x128x128xbf16, #tpu.memory_space<vmem>>
    %c9_88 = arith.constant 9 : index
    %c0_89 = arith.constant 0 : index
    %c0_90 = arith.constant 0 : index
    %88 = vector.load %87[%c9_88, %c0_89, %c0_90] : memref<10x128x128xbf16, #tpu.memory_space<vmem>>, vector<1x128x128xbf16>
    %89 = vector.shape_cast %88 : vector<1x128x128xbf16> to vector<128x128xbf16>
    %cst_91 = arith.constant dense<0.000000e+00> : vector<256x128xf32>
    %90 = tpu.matmul %47, %89, %cst_91 {dimension_numbers = #tpu.dot_dimension_numbers<[1], [0], [0], [1], [0, 0, 1, 1], [], []>} : vector<256x128xbf16>, vector<128x128xbf16>, vector<256x128xf32> -> vector<256x128xf32>
    %91 = vector.broadcast %9 : vector<1x128xf32> to vector<256x128xf32>
    %92 = arith.addf %85, %91 : vector<256x128xf32>
    %cst_92 = arith.constant 0.000000e+00 : f32
    %93 = vector.broadcast %cst_92 : f32 to vector<256x128xf32>
    %94 = arith.cmpf ogt, %92, %93 : vector<256x128xf32>
    %cst_93 = arith.constant 2.000000e-01 : f32
    %95 = vector.broadcast %cst_93 : f32 to vector<256x128xf32>
    %96 = arith.mulf %95, %92 : vector<256x128xf32>
    %97 = arith.select %94, %92, %96 : vector<256x128xi1>, vector<256x128xf32>
    %98 = vector.broadcast %10 : vector<1x128xf32> to vector<256x128xf32>
    %99 = arith.addf %90, %98 : vector<256x128xf32>
    %cst_94 = arith.constant 0.000000e+00 : f32
    %100 = vector.broadcast %cst_94 : f32 to vector<256x128xf32>
    %101 = arith.cmpf ogt, %99, %100 : vector<256x128xf32>
    %cst_95 = arith.constant 2.000000e-01 : f32
    %102 = vector.broadcast %cst_95 : f32 to vector<256x128xf32>
    %103 = arith.mulf %102, %99 : vector<256x128xf32>
    %104 = arith.select %101, %99, %103 : vector<256x128xi1>, vector<256x128xf32>
    %105 = arith.addf %97, %104 : vector<256x128xf32>
    %cst_96 = arith.constant 0.000000e+00 : f32
    %106 = vector.broadcast %cst_96 : f32 to vector<256x128xf32>
    %107 = arith.cmpf ogt, %105, %106 : vector<256x128xf32>
    %cst_97 = arith.constant 2.000000e-01 : f32
    %108 = vector.broadcast %cst_97 : f32 to vector<256x128xf32>
    %109 = arith.mulf %108, %105 : vector<256x128xf32>
    %110 = arith.select %107, %105, %109 : vector<256x128xi1>, vector<256x128xf32>
    %111 = vector.broadcast %11 : vector<1x128xf32> to vector<256x128xf32>
    %112 = arith.mulf %110, %111 : vector<256x128xf32>
    %113 = vector.broadcast %12 : vector<1x128xf32> to vector<256x128xf32>
    %114 = arith.addf %112, %113 : vector<256x128xf32>
    %115 = vector.shape_cast %114 : vector<256x128xf32> to vector<1x16x16x128xf32>
    %c0_98 = arith.constant 0 : index
    %c0_99 = arith.constant 0 : index
    %c0_100 = arith.constant 0 : index
    %c0_101 = arith.constant 0 : index
    %116 = vector.load %arg6[%c0_98, %c0_99, %c0_100, %c0_101] : memref<1x16x16x128xf32, #tpu.memory_space<vmem>>, vector<1x16x16x128xf32>
    tpu.vector_store %arg6[%c0_98, %c0_99, %c0_100, %c0_101], %115 {strides = array<i32>} : memref<1x16x16x128xf32, #tpu.memory_space<vmem>>, vector<1x16x16x128xf32>,
    %c1_i32 = arith.constant 1 : i32
    %117 = arith.cmpi ne, %arg1, %c1_i32 : i32
    %118 = arith.extui %117 : i1 to i32
    %c0_i32_102 = arith.constant 0 : i32
    %119 = arith.cmpi ne, %118, %c0_i32_102 : i32
    scf.if %119 {
      %c0_103 = arith.constant 0 : index
      %c0_104 = arith.constant 0 : index
      %c0_105 = arith.constant 0 : index
      %c0_106 = arith.constant 0 : index
      %120 = vector.load %arg6[%c0_103, %c0_104, %c0_105, %c0_106] : memref<1x16x16x128xf32, #tpu.memory_space<vmem>>, vector<1x16x16x128xf32>
      %121 = vector.shape_cast %120 : vector<1x16x16x128xf32> to vector<16x16x128xf32>
      %122 = arith.truncf %121 : vector<16x16x128xf32> to vector<16x16x128xbf16>
      %c1_107 = arith.constant 1 : index
      %c8_108 = arith.constant 8 : index
      %c0_109 = arith.constant 0 : index
      %123 = vector.load %arg7[%c1_107, %c8_108, %c0_109] : memref<18x32x128xbf16, #tpu.memory_space<vmem>>, vector<16x16x128xbf16>
      tpu.vector_store %arg7[%c1_107, %c8_108, %c0_109], %122 {strides = array<i32>} : memref<18x32x128xbf16, #tpu.memory_space<vmem>>, vector<16x16x128xbf16>,
    } else {
    }
    return
  }
  func.func @transform_0(%arg0: i32, %arg1: i32) -> (i32, i32, i32, i32) {
    %c0_i32 = arith.constant 0 : i32
    %c0_i32_0 = arith.constant 0 : i32
    %c0_i32_1 = arith.constant 0 : i32
    %c0_i32_2 = arith.constant 0 : i32
    return %arg0, %c0_i32, %c0_i32_0, %c0_i32_1 : i32, i32, i32, i32
  }
  func.func @transform_1(%arg0: i32, %arg1: i32) -> (i32, i32, i32, i32) {
    %c0_i32 = arith.constant 0 : i32
    %c0_i32_0 = arith.constant 0 : i32
    %c0_i32_1 = arith.constant 0 : i32
    %c0_i32_2 = arith.constant 0 : i32
    %c0_i32_3 = arith.constant 0 : i32
    return %c0_i32, %c0_i32_0, %c0_i32_1, %c0_i32_2 : i32, i32, i32, i32
  }
  func.func @transform_2(%arg0: i32, %arg1: i32) -> (i32, i32, i32) {
    %c0_i32 = arith.constant 0 : i32
    %c0_i32_0 = arith.constant 0 : i32
    %c0_i32_1 = arith.constant 0 : i32
    %c0_i32_2 = arith.constant 0 : i32
    return %c0_i32, %c0_i32_0, %c0_i32_1 : i32, i32, i32
  }
  func.func @transform_3(%arg0: i32, %arg1: i32) -> (i32, i32, i32) {
    %c0_i32 = arith.constant 0 : i32
    %c0_i32_0 = arith.constant 0 : i32
    %c0_i32_1 = arith.constant 0 : i32
    %c0_i32_2 = arith.constant 0 : i32
    return %c0_i32, %c0_i32_0, %c0_i32_1 : i32, i32, i32
  }
  func.func @transform_4(%arg0: i32, %arg1: i32) -> (i32, i32, i32, i32) {
    %c0_i32 = arith.constant 0 : i32
    %c0_i32_0 = arith.constant 0 : i32
    %c0_i32_1 = arith.constant 0 : i32
    %c0_i32_2 = arith.constant 0 : i32
    return %arg0, %c0_i32, %c0_i32_0, %c0_i32_1 : i32, i32, i32, i32
  }
}

</mosaic_0001>

<bundles_post_ra>
// kernel: tpu_custom_call.1
= control target key start
LH: loop header
LB: loop body
LE: loop exit
PB: predicated region body
PF: predicated region fallthrough
CT: control target
= control target key end

     0   :  { %s10802_s0 = inlined_call_operand.hbm [shape: bf16[2,16,16,128], index: 0, kind: input, shape index: {}]   ;;  %s10803_s1 = inlined_call_operand.hbm [shape: bf16[2,10,128,128], index: 1, kind: input, shape index: {}]   ;;  %s10804_s2 = inlined_call_operand.hbm [shape: f32[2,2,128], index: 2, kind: input, shape index: {}]   ;;  %s10805_s3 = inlined_call_operand.vmem [shape: f32[2,2,128], index: 3, kind: input, shape index: {}]   ;;  %s10806_s4 = inlined_call_operand.hbm [shape: f32[2,16,16,128], index: 4, kind: output, shape index: {}]  }
   0x1   :  { %10828 = sst [smem:[#allocation61_spill]] %s10803_s1 }
   0x2   :  { %10829 = sst [smem:[#allocation62_spill]] %s10804_s2 }
   0x3   :  { %9 = vsyncpa [#allocation4], 0 }
   0x4   :  { %11 = vsyncpa [#allocation4 + $0x1], 0 }
   0x5   :  { %12 = vsyncpa [#allocation7], 0 }
   0x6   :  { %13 = vsyncpa [#allocation5], 0 }
   0x7   :  { %15 = vsyncpa [#allocation5 + $0x1], 0  ;;  %s8595_s15 = smov 0   ;;  %s8597_s16 = smov 0  }
   0x8   :  { %s8599_s17 = smov 0   ;;  %s8601_s18 = smov 0  }
   0x9   :  { %s8603_s19 = smov 0   ;;  %s8605_s20 = smov 0  }
   0xa   :  { %s8607_s21 = smov 0   ;;  %s8609_s22 = smov 0  }
   0xb LB: > { %s6888_s23 = sadd.s32 4294967295, %s8557_s22   ;;  %s6889_s24 = sadd.s32 4294967294, %s8557_s22   ;;  %s8557_s22 = sphi %s8609_s22, %s21_s22   ;;  %s8553_s21 = sphi %s8607_s21, %s11004_s21   ;;  %s8549_s20 = sphi %s8605_s20, %s11003_s20   ;;  %s8545_s19 = sphi %s8603_s19, %s11002_s19   ;;  %s8541_s18 = sphi %s8601_s18, %s11001_s18   ;;  %s8537_s17 = sphi %s8599_s17, %s11000_s17   ;;  %s8533_s16 = sphi %s8597_s16, %s10999_s16   ;;  %s8529_s15 = sphi %s8595_s15, %s10998_s15  }
   0xc   : > { %p53_p0 = scmp.ne.s32.totalorder %s8533_s16, %s8529_s15  ;;  %p8639_p1 = scmp.eq.s32.totalorder %s6888_s23, 0 }
   0xd   : > { %p8643_p2 = scmp.eq.s32.totalorder %s6888_s23, 3  ;;  %p146_p3 = scmp.eq.s32.totalorder %s6889_s24, 3 }
   0xe   : > { %p8649_p4 = por %p8639_p1, %p53_p0  ;;  %p6890_p5 = scmp.ge.s32.totalorder %s8557_s22, 1 }
   0xf   : > { %p8654_p6 = por %p146_p3, %p53_p0  ;;  %p153_p7 = scmp.lt.s32.totalorder %s8557_s22, 5 }
  0x10   : > { %s8559_s30 = smov [#allocation6]   ;;  %s8560_s7 = smov [#allocation8]  }
  0x11   : > { %s10833_s28 = scalar_select %p8654_p6, 1, 0 }
  0x12   : > { %p8659_p8 = pnand %p6890_p5, %p153_p7  ;;  %s165_s5 = sshll.u32 %s8559_s30, 4  ;;  %s166_s5 = int_to_ptr.vmem [resolvable:$true] %s165_s5 }
  0x13   : > { %s178_s8 = sshll.u32 %s8560_s7, 4  ;;  %s8388_s9 = scalar_lea.vmem %s166_s5, 20480  ;;  %s179_s8 = int_to_ptr.vmem [resolvable:$true] %s178_s8 }
  0x14   : > { %p8126_p9 = pneg %p8659_p8  ;;  %p8389_p12 = scmp.ne.s32.totalorder %s166_s5, %s8388_s9 }
  0x15   : > { %p8396_p3 = scmp.lt.s32.totalorder %s166_s5, %s166_s5  ;;  %p8397_p5 = scmp.lt.s32.totalorder %s8388_s9, %s8388_s9 }
  0x16   : > { %p8667_p10 = pnand %p8126_p9, %p8639_p1 }
  0x17   : > { %p8398_p7 = por %p8397_p5, %p8396_p3 }
  0x18   : > { %p8379_p11 = pneg %p8667_p10 }
  0x1a   : > { %p8391_p13 = pnand %p8389_p12, %p8379_p11 }
  0x1c   : > { %p8392_p0 = pneg %p8391_p13 }
  0x1e   : > { %p8399_p9 = pnand %p8398_p7, %p8392_p0 }
  0x20   : > { %8402 = shalt.err (!%p8399_p9)
}
  0x21   : > { %s10807_s10 = smov 64   ;;  %s10808_s11 = smov 4  }
  0x22   : > { %s10836_s1 = sld [smem:[#allocation61_spill]]  ;;  %s8414_s14 = scalar_lea.vmem %s179_s8, 64 }
  0x23   : > { %p8415_p12 = scmp.ne.s32.totalorder %s179_s8, %s8414_s14  ;;  %p8422_p0 = scmp.lt.s32.totalorder %s179_s8, %s179_s8 }
  0x24   : > { %p8423_p5 = scmp.lt.s32.totalorder %s8414_s14, %s8414_s14 }
  0x25   : > { %p8417_p13 = pnand %p8415_p12, %p8379_p11 }
  0x26   : > { %p8424_p7 = por %p8423_p5, %p8422_p0 }
  0x27   : > { %p8418_p3 = pneg %p8417_p13 }
  0x28   : > { %8129 = dma.hbm_to_vmem [thread:$0]  (!%p8667_p10), %s10836_s1, 20480, %s166_s5, [#allocation7], %s10807_s10, %s10807_s10, %s10808_s11  }
  0x29   : > { %p8425_p9 = pnand %p8424_p7, %p8418_p3 }
  0x2b   : > { %8428 = shalt.err (!%p8425_p9)
}
  0x2c   : > { %s8563_s23 = smov 32   ;;  %s8564_s24 = smov 2  }
  0x2d   : > { %s10837_s2 = sld [smem:[#allocation62_spill]]  ;;  %s30_s7 = sadd.s32 1, %s8549_s20 }
  0x2e   : > { %s33_s9 = sadd.s32 1, %s8553_s21  ;;  %p31_p11 = scmp.ge.s32.totalorder %s30_s7, 2 }
  0x2f   : > { %s40_s12 = sadd.s32 1, %s8537_s17  ;;  %p47_p12 = scmp.ne.s32.totalorder %s8537_s17, %s8533_s16 }
  0x30   : > { %p48_p13 = scmp.eq.s32.totalorder %s8557_s22, 0  ;;  %s11006_s7 = smov (%p31_p11, %s30_s7), 0 }
  0x31   : > { %10838 = sst [smem:[#allocation13_spill]] %s11006_s7  ;;  %s11008_s9 = smov (!%p31_p11, %s33_s9), %s8553_s21 }
  0x32   : > { %p8701_p3 = por %p48_p13, %p47_p12  ;;  %p8707_p0 = por %p8643_p2, %p47_p12 }
  0x33   : > { %8132 = dma.hbm_to_vmem [thread:$0]  (!%p8667_p10), %s10837_s2, 64, %s179_s8, [#allocation7], %s8563_s23, %s8563_s23, %s8564_s24  }
  0x34   : > { %p35_p10 = scmp.ge.s32.totalorder %s11008_s9, 2  ;;  %p8143_p5 = scmp.lt.s32.totalorder %s8557_s22, 4 }
  0x35   : > { %s195_s8 = sand.u32 1, %s8537_s17   ;;  %s7359_s14 = sshll.u32 %s8553_s21, 11 }
  0x36   : > { %s11010_s9 = smov (%p35_p10, %s11008_s9), 0  ;;  %s6894_s23 = sshll.u32 %s195_s8, 7 }
  0x37   : > { %10841 = sst [smem:[#allocation14_spill]] %s11010_s9  ;;  %s37_s24 = ssub.s32 %s8553_s21, %s11010_s9 }
  0x38   : > { %p38_p7 = scmp.eq.s32.totalorder %s37_s24, 0  ;;  %s205_s10 = scalar_lea.hbm %s10802_s0, %s7359_s14 }
  0x39   : > { %s199_s26 = scalar_lea.vmem [#allocation3], %s6894_s23  ;;  %p8723_p2 = pnand %p8143_p5, %p8701_p3 }
  0x3a   : > { %s206_s11 = sshll.u32 %s199_s26, 4  ;;  %s196_s7 = scalar_lea.sflag [#allocation4], %s195_s8  ;;  %s207_s11 = int_to_ptr.vmem [resolvable:$true] %s206_s11 }
  0x3b   : > { %s8728_s2 = scalar_select %p38_p7, %s8537_s17, %s40_s12  }
  0x3c   : > { %p8431_p9 = pneg %p8723_p2  ;;  %s8442_s9 = scalar_lea.vmem %s207_s11, 2048 }
  0x3d   : > { %p8443_p11 = scmp.ne.s32.totalorder %s207_s11, %s8442_s9  ;;  %s8565_s24 = smov [#allocation3]  }
  0x3e   : > { %s8447_s14 = sshll.u32 %s8565_s24, 4  ;;  %s8448_s14 = int_to_ptr.vmem [resolvable:$false] %s8447_s14 }
  0x3f   : > { %p8445_p12 = pnand %p8443_p11, %p8431_p9  ;;  %s8449_s23 = scalar_lea.vmem %s8448_s14, 4096 }
  0x40   : > { %p8450_p10 = scmp.lt.s32.totalorder %s207_s11, %s8448_s14  ;;  %p8451_p3 = scmp.lt.s32.totalorder %s8449_s23, %s8442_s9 }
  0x41   : > { %p8446_p13 = pneg %p8445_p12 }
  0x42   : > { %p8452_p5 = por %p8451_p3, %p8450_p10 }
  0x44   : > { %p8453_p6 = pnand %p8452_p5, %p8446_p13 }
  0x46   : > { %8456 = shalt.err (!%p8453_p6)
}
  0x47   : > { %s10843_s12 = smov 4   ;;  %s10844_s13 = smov 64  }
  0x48   : > { %8136 = dma.hbm_to_vmem [thread:$0]  (!%p8723_p2), %s205_s10, 2048, %s207_s11, %s196_s7, %s10844_s13, %s10844_s13, %s10843_s12  }
  0x49   : > { %218 = sbr.rel (%p8659_p8) target bundleno = 848 (0x350), region = 36 }
  0x4e   : > { %s8740_s8 = sand.u32 1, %s8533_s16  }
  0x4f   : > { %s6898_s30 = sshll.u32 %s8740_s8, 7  ;;  %s221_s9 = scalar_lea.sflag [#allocation4], %s8740_s8 }
  0x50   : > { %s8744_s5 = scalar_lea.vmem [#allocation3], %s6898_s30 }
  0x51   : > { %8516 = dma.done.wait (%p8649_p4), %s221_s9, 2048  }
  0x52   : > { %8518 = vsyncadd (%p8649_p4), %s221_s9, 4294965248 }
  0x53   : > { %8520 = dma.done.wait (%p8639_p1), [#allocation7], 20544  }
  0x54   : > { %8522 = vsyncadd (%p8639_p1), [#allocation7], 4294946752  ;;  %s6901_s1 = sshll.u32 %s8740_s8, 8  ;;  %p6902_p6 = scmp.ne.s32.totalorder %s8541_s18, 0 }
  0x55   : > { %s8755_s29 = scalar_lea.vmem [#allocation9], %s6901_s1 }
  0x56   : > { %261 = sbr.rel (%p6902_p6) target bundleno = 130 (0x82), region = 52 }
  0x5b   : > { %vm272_vm0 = vcmask 1043459   ;;  %vm273_vm1 = vsmask.f32 7950  ;;  %v275_v0 = vld [vmem:[#allocation2 + $0x10] sm:$0x8]  ;;  %v8566_v1 = vmov 0  }
  0x5c   : > { %262 = vst [vmem:[#allocation2] sm:$0xf] %v8566_v1  ;;  %263 = vst [vmem:[#allocation2 + $0x4] sm:$0xf] %v8566_v1  ;;  %v278_v3 = vld [vmem:[#allocation2 + $0x20] sm:$0x8] }
  0x5d   : > { %264 = vst [vmem:[#allocation2 + $0x8] sm:$0xf] %v8566_v1  ;;  %265 = vst [vmem:[#allocation2 + $0xc] sm:$0xf] %v8566_v1  ;;  %v281_v4 = vld [vmem:[#allocation2 + $0x30] sm:$0x8] }
  0x5e   : > { %267 = vst [vmem:[#allocation2 + $0x110] sm:$0xf] %v8566_v1  ;;  %268 = vst [vmem:[#allocation2 + $0x114] sm:$0xf] %v8566_v1  ;;  %vm323_vm3 = vcmask 1040384   ;;  %v374_v9 = vld [vmem:[%s8744_s5] sm:$0xff]  }
  0x5f   : > { %269 = vst [vmem:[#allocation2 + $0x118] sm:$0xf] %v8566_v1  ;;  %270 = vst [vmem:[#allocation2 + $0x11c] sm:$0xf] %v8566_v1  ;;  %v284_v8 = vld [vmem:[#allocation2 + $0x40] sm:$0x8] }
  0x60   : > { %vm8758_vm2 = vmand %vm272_vm0, %vm273_vm1  ;;  %v287_v11 = vld [vmem:[#allocation2 + $0x50] sm:$0x8]  ;;  %v290_v12 = vld [vmem:[#allocation2 + $0x60] sm:$0x8]  ;;  %406 = vst [vmem:[#allocation2 + $0x14] sm:$0xff] %v374_v9  }
  0x61   : > { %v276_v5 = vsel %vm8758_vm2, 0, %v275_v0  ;;  %v279_v6 = vsel %vm8758_vm2, 0, %v278_v3  ;;  %v282_v7 = vsel %vm8758_vm2, 0, %v281_v4  ;;  %v285_v10 = vsel %vm8758_vm2, 0, %v284_v8  ;;  %v376_v13 = vld [vmem:[%s8744_s5 + $0x8] sm:$0xff]   ;;  %v378_v44 = vld [vmem:[%s8744_s5 + $0x10] sm:$0xff]  }
  0x62   : > { %277 = vst [vmem:[#allocation2 + $0x10] sm:$0x8] %v276_v5  ;;  %280 = vst [vmem:[#allocation2 + $0x20] sm:$0x8] %v279_v6  ;;  %v288_v14 = vsel %vm8758_vm2, 0, %v287_v11  ;;  %v291_v15 = vsel %vm8758_vm2, 0, %v290_v12 }
  0x63   : > { %283 = vst [vmem:[#allocation2 + $0x30] sm:$0x8] %v282_v7  ;;  %286 = vst [vmem:[#allocation2 + $0x40] sm:$0x8] %v285_v10  ;;  %v293_v16 = vld [vmem:[#allocation2 + $0x70] sm:$0x8] }
  0x64   : > { %v296_v17 = vld [vmem:[#allocation2 + $0x80] sm:$0x8]  ;;  %408 = vst [vmem:[#allocation2 + $0x24] sm:$0xff] %v376_v13   ;;  %289 = vst [vmem:[#allocation2 + $0x50] sm:$0x8] %v288_v14  ;;  %v294_v18 = vsel %vm8758_vm2, 0, %v293_v16 }
  0x65   : > { %292 = vst [vmem:[#allocation2 + $0x60] sm:$0x8] %v291_v15  ;;  %v297_v19 = vsel %vm8758_vm2, 0, %v296_v17  ;;  %v299_v20 = vld [vmem:[#allocation2 + $0x90] sm:$0x8]  ;;  %410 = vst [vmem:[#allocation2 + $0x34] sm:$0xff] %v378_v44  }
  0x66   : > { %v302_v21 = vld [vmem:[#allocation2 + $0xa0] sm:$0x8]  ;;  %295 = vst [vmem:[#allocation2 + $0x70] sm:$0x8] %v294_v18  ;;  %298 = vst [vmem:[#allocation2 + $0x80] sm:$0x8] %v297_v19 }
  0x67   : > { %v300_v22 = vsel %vm8758_vm2, 0, %v299_v20  ;;  %v303_v23 = vsel %vm8758_vm2, 0, %v302_v21  ;;  %v305_v24 = vld [vmem:[#allocation2 + $0xb0] sm:$0x8]  ;;  %v308_v25 = vld [vmem:[#allocation2 + $0xc0] sm:$0x8] }
  0x68   : > { %301 = vst [vmem:[#allocation2 + $0x90] sm:$0x8] %v300_v22  ;;  %304 = vst [vmem:[#allocation2 + $0xa0] sm:$0x8] %v303_v23  ;;  %v306_v26 = vsel %vm8758_vm2, 0, %v305_v24  ;;  %v309_v27 = vsel %vm8758_vm2, 0, %v308_v25 }
  0x69   : > { %v311_v28 = vld [vmem:[#allocation2 + $0xd0] sm:$0x8]  ;;  %v314_v29 = vld [vmem:[#allocation2 + $0xe0] sm:$0x8]  ;;  %307 = vst [vmem:[#allocation2 + $0xb0] sm:$0x8] %v306_v26 }
  0x6a   : > { %310 = vst [vmem:[#allocation2 + $0xc0] sm:$0x8] %v309_v27  ;;  %v312_v30 = vsel %vm8758_vm2, 0, %v311_v28  ;;  %v315_v31 = vsel %vm8758_vm2, 0, %v314_v29  ;;  %v317_v32 = vld [vmem:[#allocation2 + $0xf0] sm:$0x8] }
  0x6b   : > { %v320_v33 = vld [vmem:[#allocation2 + $0x100] sm:$0x8]  ;;  %313 = vst [vmem:[#allocation2 + $0xd0] sm:$0x8] %v312_v30  ;;  %316 = vst [vmem:[#allocation2 + $0xe0] sm:$0x8] %v315_v31 }
  0x6c   : > { %v318_v34 = vsel %vm8758_vm2, 0, %v317_v32  ;;  %v321_v35 = vsel %vm8758_vm2, 0, %v320_v33  ;;  %vm324_vm4 = vsmask.f32 256  ;;  %v326_v36 = vld [vmem:[#allocation2 + $0x1c] sm:$0x1] }
  0x6d   : > { %319 = vst [vmem:[#allocation2 + $0xf0] sm:$0x8] %v318_v34  ;;  %322 = vst [vmem:[#allocation2 + $0x100] sm:$0x8] %v321_v35  ;;  %v329_v38 = vld [vmem:[#allocation2 + $0x2c] sm:$0x1] }
  0x6e   : > { %vm8797_vm5 = vmand %vm323_vm3, %vm324_vm4  ;;  %v332_v39 = vld [vmem:[#allocation2 + $0x3c] sm:$0x1]  ;;  %v335_v43 = vld [vmem:[#allocation2 + $0x4c] sm:$0x1] }
  0x6f   : > { %v327_v40 = vsel %vm8797_vm5, 0, %v326_v36  ;;  %v330_v41 = vsel %vm8797_vm5, 0, %v329_v38  ;;  %v333_v42 = vsel %vm8797_vm5, 0, %v332_v39  ;;  %v336_v45 = vsel %vm8797_vm5, 0, %v335_v43  ;;  %v338_v46 = vld [vmem:[#allocation2 + $0x5c] sm:$0x1] }
  0x70   : > { %328 = vst [vmem:[#allocation2 + $0x1c] sm:$0x1] %v327_v40  ;;  %331 = vst [vmem:[#allocation2 + $0x2c] sm:$0x1] %v330_v41  ;;  %v341_v47 = vld [vmem:[#allocation2 + $0x6c] sm:$0x1] }
  0x71   : > { %334 = vst [vmem:[#allocation2 + $0x3c] sm:$0x1] %v333_v42  ;;  %v380_v48 = vld [vmem:[%s8744_s5 + $0x18] sm:$0xff]   ;;  %337 = vst [vmem:[#allocation2 + $0x4c] sm:$0x1] %v336_v45  ;;  %v339_v49 = vsel %vm8797_vm5, 0, %v338_v46 }
  0x72   : > { %v342_v50 = vsel %vm8797_vm5, 0, %v341_v47  ;;  %v344_v51 = vld [vmem:[#allocation2 + $0x7c] sm:$0x1]  ;;  %v347_v52 = vld [vmem:[#allocation2 + $0x8c] sm:$0x1]  ;;  %412 = vst [vmem:[#allocation2 + $0x44] sm:$0xff] %v380_v48  }
  0x73   : > { %340 = vst [vmem:[#allocation2 + $0x5c] sm:$0x1] %v339_v49  ;;  %343 = vst [vmem:[#allocation2 + $0x6c] sm:$0x1] %v342_v50  ;;  %v345_v53 = vsel %vm8797_vm5, 0, %v344_v51  ;;  %v348_v54 = vsel %vm8797_vm5, 0, %v347_v52 }
  0x74   : > { %v350_v55 = vld [vmem:[#allocation2 + $0x9c] sm:$0x1]  ;;  %v353_v56 = vld [vmem:[#allocation2 + $0xac] sm:$0x1]  ;;  %346 = vst [vmem:[#allocation2 + $0x7c] sm:$0x1] %v345_v53 }
  0x75   : > { %349 = vst [vmem:[#allocation2 + $0x8c] sm:$0x1] %v348_v54  ;;  %v351_v57 = vsel %vm8797_vm5, 0, %v350_v55  ;;  %v354_v58 = vsel %vm8797_vm5, 0, %v353_v56  ;;  %v356_v59 = vld [vmem:[#allocation2 + $0xbc] sm:$0x1] }
  0x76   : > { %v359_v60 = vld [vmem:[#allocation2 + $0xcc] sm:$0x1]  ;;  %352 = vst [vmem:[#allocation2 + $0x9c] sm:$0x1] %v351_v57  ;;  %355 = vst [vmem:[#allocation2 + $0xac] sm:$0x1] %v354_v58 }
  0x77   : > { %v357_v61 = vsel %vm8797_vm5, 0, %v356_v59  ;;  %v360_v62 = vsel %vm8797_vm5, 0, %v359_v60  ;;  %v362_v63 = vld [vmem:[#allocation2 + $0xdc] sm:$0x1]  ;;  %v365_v0 = vld [vmem:[#allocation2 + $0xec] sm:$0x1] }
  0x78   : > { %358 = vst [vmem:[#allocation2 + $0xbc] sm:$0x1] %v357_v61  ;;  %361 = vst [vmem:[#allocation2 + $0xcc] sm:$0x1] %v360_v62  ;;  %v363_v1 = vsel %vm8797_vm5, 0, %v362_v63  ;;  %v366_v2 = vsel %vm8797_vm5, 0, %v365_v0 }
  0x79   : > { %v368_v3 = vld [vmem:[#allocation2 + $0xfc] sm:$0x1]  ;;  %v371_v4 = vld [vmem:[#allocation2 + $0x10c] sm:$0x1]  ;;  %364 = vst [vmem:[#allocation2 + $0xdc] sm:$0x1] %v363_v1 }
  0x7a   : > { %367 = vst [vmem:[#allocation2 + $0xec] sm:$0x1] %v366_v2  ;;  %v369_v5 = vsel %vm8797_vm5, 0, %v368_v3  ;;  %v372_v6 = vsel %vm8797_vm5, 0, %v371_v4  ;;  %v382_v7 = vld [vmem:[%s8744_s5 + $0x20] sm:$0xff]   ;;  %v384_v8 = vld [vmem:[%s8744_s5 + $0x28] sm:$0xff]  }
  0x7b   : > { %v386_v9 = vld [vmem:[%s8744_s5 + $0x30] sm:$0xff]   ;;  %370 = vst [vmem:[#allocation2 + $0xfc] sm:$0x1] %v369_v5  ;;  %373 = vst [vmem:[#allocation2 + $0x10c] sm:$0x1] %v372_v6  ;;  %v388_v10 = vld [vmem:[%s8744_s5 + $0x38] sm:$0xff]  }
  0x7c   : > { %414 = vst [vmem:[#allocation2 + $0x54] sm:$0xff] %v382_v7   ;;  %416 = vst [vmem:[#allocation2 + $0x64] sm:$0xff] %v384_v8   ;;  %v390_v11 = vld [vmem:[%s8744_s5 + $0x40] sm:$0xff]   ;;  %v392_v12 = vld [vmem:[%s8744_s5 + $0x48] sm:$0xff]  }
  0x7d   : > { %418 = vst [vmem:[#allocation2 + $0x74] sm:$0xff] %v386_v9   ;;  %420 = vst [vmem:[#allocation2 + $0x84] sm:$0xff] %v388_v10   ;;  %v394_v13 = vld [vmem:[%s8744_s5 + $0x50] sm:$0xff]   ;;  %v396_v14 = vld [vmem:[%s8744_s5 + $0x58] sm:$0xff]  }
  0x7e   : > { %422 = vst [vmem:[#allocation2 + $0x94] sm:$0xff] %v390_v11   ;;  %424 = vst [vmem:[#allocation2 + $0xa4] sm:$0xff] %v392_v12   ;;  %v398_v15 = vld [vmem:[%s8744_s5 + $0x60] sm:$0xff]   ;;  %v400_v16 = vld [vmem:[%s8744_s5 + $0x68] sm:$0xff]  }
  0x7f   : > { %426 = vst [vmem:[#allocation2 + $0xb4] sm:$0xff] %v394_v13   ;;  %428 = vst [vmem:[#allocation2 + $0xc4] sm:$0xff] %v396_v14   ;;  %v402_v17 = vld [vmem:[%s8744_s5 + $0x70] sm:$0xff]   ;;  %v404_v18 = vld [vmem:[%s8744_s5 + $0x78] sm:$0xff]  }
  0x80   : > { %430 = vst [vmem:[#allocation2 + $0xd4] sm:$0xff] %v398_v15   ;;  %432 = vst [vmem:[#allocation2 + $0xe4] sm:$0xff] %v400_v16  }
  0x81   : > { %434 = vst [vmem:[#allocation2 + $0xf4] sm:$0xff] %v402_v17   ;;  %436 = vst [vmem:[#allocation2 + $0x104] sm:$0xff] %v404_v18  }
  0x82 PF: > { %s7360_s25 = smul.u32 640, %s8541_s18  ;;  %v444_v19 = vld [vmem:[#allocation2 + $0x4] sm:$0xf]  ;;  %v445_v20 = vld [vmem:[#allocation2 + $0x8] sm:$0xf]  ;;  %s6903_s10 = sshll.u32 %s8541_s18, 1 }
  0x83   : > { %v6937_v21 = vcombine.low %v444_v19, %v445_v20  ;;  %v443_v25 = vld [vmem:[#allocation2] sm:$0x8]  ;;  %v500_v28 = vshrl.u32 %v444_v19, 16  ;;  %v509_v30 = vshrl.u32 %v445_v20, 16  ;;  %v503_v31 = vshll.u32 %v444_v19, 16  ;;  %s439_s11 = scalar_lea.vmem [#allocation8], %s6903_s10  ;;  %s441_s24 = scalar_lea.vmem %s10805_s3, %s6903_s10 }
  0x84   : > { %s8848_s27 = scalar_lea.vmem [#allocation6], %s7360_s25  ;;  %v512_v32 = vshll.u32 %v445_v20, 16  ;;  %v495_v33 = vshrl.u32 %v443_v25, 16  ;;  %vm491_vm6 = vsmask.f32 256  ;;  %p7321_p1 = scmp.eq.s32.totalorder %s8541_s18, 1 }
  0x85   : > { %v8220_v22 = vld [vmem:[%s8848_s27 + $0x78] sm:$0xff]   ;;  %7650 = vmatprep.mubr.bf16.mxu0 %v6937_v21  ;;  %v8222_v24 = vld [vmem:[%s8848_s27 + $0x70] sm:$0xff]   ;;  %v8224_v27 = vld [vmem:[%s8848_s27 + $0x68] sm:$0xff]   ;;  %v502_v35 = vrot.slane %v500_v28, 7  ;;  %v511_v37 = vrot.slane %v509_v30, 7 }
  0x86   : > { %v8221_v23 = vld [vmem:[%s8848_s27 + $0x38] sm:$0xff]   ;;  %7634 = vmatprep.subr.bf16.mxu0 %v8220_v22  ;;  %v8223_v26 = vld [vmem:[%s8848_s27 + $0x30] sm:$0xff]   ;;  %v8225_v29 = vld [vmem:[%s8848_s27 + $0x28] sm:$0xff]   ;;  %vm492_vm7 = vsmask.f32 4368  ;;  %v6904_v39 = vrot.slane %v495_v33, 11 }
  0x87   : > { %7682 = vmatprep.subr.bf16.mxu1 %v8221_v23  ;;  %7635 = vmatpush3.bf16.msra.mxu0 %v8220_v22  ;;  %v8226_v34 = vld [vmem:[%s8848_s27 + $0x60] sm:$0xff]   ;;  %v8228_v38 = vld [vmem:[%s8848_s27 + $0x58] sm:$0xff]   ;;  %v505_v41 = vor.u32 %v503_v31, %v502_v35  ;;  %v507_v42 = vrot.slane %v502_v35, 4  ;;  %v514_v43 = vor.u32 %v512_v32, %v511_v37  ;;  %v8230_v44 = vld [vmem:[%s8848_s27 + $0x50] sm:$0xff]   ;;  %vm1508_vm9 = vsmask.f32 3328 }
  0x88   : > { %7683 = vmatpush3.bf16.msra.mxu1 %v8221_v23  ;;  %7636 = vmatprep.subr.bf16.mxu0 %v8222_v24  ;;  %v8227_v36 = vld [vmem:[%s8848_s27 + $0x20] sm:$0xff]   ;;  %v8229_v40 = vld [vmem:[%s8848_s27 + $0x18] sm:$0xff]   ;;  %v8231_v45 = vld [vmem:[%s8848_s27 + $0x10] sm:$0xff]   ;;  %vm1509_vm10 = vsmask.f32 7440 }
  0x89   : > { %7684 = vmatprep.subr.bf16.mxu1 %v8223_v26  ;;  %vm8864_vm8 = vmor %vm491_vm6, %vm492_vm7  ;;  %v8868_v47 = vld [vmem:[#allocation2 + $0x14] sm:$0xf]  ;;  %v8870_v48 = vld [vmem:[#allocation2 + $0x18] sm:$0xf] }
  0x8a   : > { %v506_v49 = vsel %vm8864_vm8, %v6904_v39, %v505_v41  ;;  %v515_v50 = vsel %vm8864_vm8, %v507_v42, %v514_v43  ;;  %v522_v51 = vshrl.u32 %v8868_v47, 16  ;;  %v525_v52 = vshll.u32 %v8868_v47, 16  ;;  %v446_v53 = vld [vmem:[#allocation2 + $0x10] sm:$0x8]  ;;  %v8232_v59 = vld [vmem:[%s8848_s27 + $0x48] sm:$0xff]   ;;  %v8234_v5 = vld [vmem:[%s8848_s27 + $0x40] sm:$0xff]  }
  0x8b   : > { %7637 = vmatpush3.bf16.msra.mxu0 %v8222_v24  ;;  %v6961_v54 = vcombine.low %v506_v49, %v515_v50  ;;  %v531_v55 = vshrl.u32 %v8870_v48, 16  ;;  %v534_v56 = vshll.u32 %v8870_v48, 16  ;;  %v517_v58 = vshrl.u32 %v446_v53, 16  ;;  %v8881_v61 = vld [vmem:[#allocation2 + $0x24] sm:$0xf]  ;;  %v8233_v63 = vld [vmem:[%s8848_s27 + $0x8] sm:$0xff]   ;;  %vm9165_vm11 = vmor %vm1508_vm9, %vm1509_vm10 }
  0x8c   : > { %7685 = vmatpush3.bf16.msra.mxu1 %v8223_v26  ;;  %7638 = vmatprep.subr.bf16.mxu0 %v8224_v27  ;;  %v524_v57 = vrot.slane %v522_v51, 7  ;;  %v8883_v62 = vld [vmem:[#allocation2 + $0x28] sm:$0xf]  ;;  %v544_v3 = vshrl.u32 %v8881_v61, 16  ;;  %v449_v4 = vld [vmem:[#allocation2 + $0x20] sm:$0x8]  ;;  %v6938_v11 = vcombine.low %v8868_v47, %v8870_v48 }
  0x8d   : > { %7686 = vmatprep.subr.bf16.mxu1 %v8225_v29  ;;  %v533_v60 = vrot.slane %v531_v55, 7  ;;  %7698 = vmatprep.mubr.bf16.mxu1 %v6961_v54  ;;  %v6905_v0 = vrot.slane %v517_v58, 11  ;;  %v547_v7 = vshll.u32 %v8881_v61, 16  ;;  %v553_v8 = vshrl.u32 %v8883_v62, 16  ;;  %v8891_v10 = vld [vmem:[#allocation2 + $0x34] sm:$0xf] }
  0x8e   : > { %v527_v1 = vor.u32 %v525_v52, %v524_v57  ;;  %v529_v2 = vrot.slane %v524_v57, 4  ;;  %v556_v9 = vshll.u32 %v8883_v62, 16  ;;  %v546_v13 = vrot.slane %v544_v3, 7  ;;  %v8897_v15 = vld [vmem:[#allocation2 + $0x38] sm:$0xf]  ;;  %v8235_v17 = vld [vmem:[%s8848_s27] sm:$0xff]  }
  0x8f   : > { %7639 = vmatpush3.bf16.msra.mxu0 %v8224_v27  ;;  %v536_v6 = vor.u32 %v534_v56, %v533_v60  ;;  %v539_v14 = vshrl.u32 %v449_v4, 16  ;;  %v452_v16 = vld [vmem:[#allocation2 + $0x30] sm:$0x8]  ;;  %v555_v19 = vrot.slane %v553_v8, 7  ;;  %v566_v20 = vshrl.u32 %v8891_v10, 16  ;;  %v8238_v31 = vld [vmem:[%s8848_s27 + $0xb8] sm:$0xff]  }
  0x90   : > { %7687 = vmatpush3.bf16.msra.mxu1 %v8225_v29  ;;  %7640 = vmatprep.subr.bf16.mxu0 %v8226_v34  ;;  %v528_v12 = vsel %vm8864_vm8, %v6905_v0, %v527_v1  ;;  %v569_v21 = vshll.u32 %v8891_v10, 16  ;;  %v6939_v22 = vcombine.low %v8881_v61, %v8883_v62  ;;  %v549_v24 = vor.u32 %v547_v7, %v546_v13  ;;  %v8913_v35 = vld [vmem:[#allocation2 + $0x44] sm:$0xf]  ;;  %v455_v41 = vld [vmem:[#allocation2 + $0x40] sm:$0x8]  ;;  %v8239_v43 = vld [vmem:[%s8848_s27 + $0xf8] sm:$0xff]  }
  0x91   : > { %7688 = vmatprep.subr.bf16.mxu1 %v8227_v36  ;;  %v537_v18 = vsel %vm8864_vm8, %v529_v2, %v536_v6  ;;  %v6906_v23 = vrot.slane %v539_v14, 11  ;;  %v551_v25 = vrot.slane %v546_v13, 4  ;;  %v558_v26 = vor.u32 %v556_v9, %v555_v19  ;;  %v8919_v42 = vld [vmem:[#allocation2 + $0x54] sm:$0xf]  ;;  %v8924_v51 = vld [vmem:[#allocation2 + $0x58] sm:$0xf] }
  0x92   : > { %v568_v27 = vrot.slane %v566_v20, 7  ;;  %v575_v28 = vshrl.u32 %v8897_v15, 16  ;;  %v578_v29 = vshll.u32 %v8897_v15, 16  ;;  %v6962_v30 = vcombine.low %v528_v12, %v537_v18  ;;  %v458_v56 = vld [vmem:[#allocation2 + $0x50] sm:$0x8] }
  0x93   : > { %7641 = vmatpush3.bf16.msra.mxu0 %v8226_v34  ;;  %v550_v32 = vsel %vm8864_vm8, %v6906_v23, %v549_v24  ;;  %v6940_v33 = vcombine.low %v8891_v10, %v8897_v15  ;;  %v561_v34 = vshrl.u32 %v452_v16, 16  ;;  %v559_v37 = vsel %vm8864_vm8, %v551_v25, %v558_v26  ;;  %v8242_v0 = vld [vmem:[%s8848_s27 + $0xb0] sm:$0xff]   ;;  %v8940_v8 = vld [vmem:[#allocation2 + $0x64] sm:$0xf]  ;;  %v8951_v20 = vld [vmem:[#allocation2 + $0x68] sm:$0xf] }
  0x94   : > { %7689 = vmatpush3.bf16.msra.mxu1 %v8227_v36  ;;  %7642 = vmatprep.subr.bf16.mxu0 %v8228_v38  ;;  %v8915_v36 = vld [vmem:[#allocation2 + $0x48] sm:$0xf]  ;;  %v571_v39 = vor.u32 %v569_v21, %v568_v27  ;;  %v588_v49 = vshrl.u32 %v8913_v35, 16  ;;  %v591_v50 = vshll.u32 %v8913_v35, 16  ;;  %v610_v60 = vshrl.u32 %v8919_v42, 16  ;;  %v8243_v9 = vld [vmem:[%s8848_s27 + $0xf0] sm:$0xff]  }
  0x95   : > { %7690 = vmatprep.subr.bf16.mxu1 %v8229_v40  ;;  %v597_v53 = vshrl.u32 %v8915_v36, 16  ;;  %v600_v54 = vshll.u32 %v8915_v36, 16  ;;  %v6941_v55 = vcombine.low %v8913_v35, %v8915_v36  ;;  %v613_v2 = vshll.u32 %v8919_v42, 16  ;;  %v461_v48 = vld [vmem:[#allocation2 + $0x60] sm:$0x8]  ;;  %v8246_v25 = vld [vmem:[%s8848_s27 + $0xa8] sm:$0xff]  }
  0x96   : > { %v590_v58 = vrot.slane %v588_v49, 7  ;;  %v619_v3 = vshrl.u32 %v8924_v51, 16  ;;  %v612_v13 = vrot.slane %v610_v60, 7  ;;  %v622_v16 = vshll.u32 %v8924_v51, 16  ;;  %v8960_v26 = vld [vmem:[#allocation2 + $0x74] sm:$0xf] }
  0x97   : > { %7643 = vmatpush3.bf16.msra.mxu0 %v8228_v38  ;;  %v577_v38 = vrot.slane %v575_v28, 7  ;;  %v599_v1 = vrot.slane %v597_v53, 7  ;;  %v6942_v18 = vcombine.low %v8919_v42, %v8924_v51  ;;  %v605_v19 = vshrl.u32 %v458_v56, 16  ;;  %v464_v62 = vld [vmem:[#allocation2 + $0x70] sm:$0x8]  ;;  %v8255_v36 = vld [vmem:[%s8848_s27 + $0xd8] sm:$0xff]  }
  0x98   : > { %7691 = vmatpush3.bf16.msra.mxu1 %v8229_v40  ;;  %7644 = vmatprep.subr.bf16.mxu0 %v8230_v44  ;;  %v573_v40 = vrot.slane %v568_v27, 4  ;;  %v593_v6 = vor.u32 %v591_v50, %v590_v58  ;;  %v595_v7 = vrot.slane %v590_v58, 4  ;;  %v621_v14 = vrot.slane %v619_v3, 7  ;;  %v8962_v27 = vld [vmem:[#allocation2 + $0x78] sm:$0xf]  ;;  %v8250_v58 = vld [vmem:[%s8848_s27 + $0xa0] sm:$0xff]  }
  0x99   : > { %7692 = vmatprep.subr.bf16.mxu1 %v8231_v45  ;;  %v580_v52 = vor.u32 %v578_v29, %v577_v38  ;;  %v602_v12 = vor.u32 %v600_v54, %v599_v1  ;;  %v632_v47 = vshrl.u32 %v8940_v8, 16  ;;  %v615_v21 = vor.u32 %v613_v2, %v612_v13  ;;  %v9003_v35 = vld [vmem:[#allocation2 + $0x94] sm:$0xf] }
  0x9a   : > { %v617_v23 = vrot.slane %v612_v13, 4  ;;  %v624_v24 = vor.u32 %v622_v16, %v621_v14  ;;  %v6909_v29 = vrot.slane %v605_v19, 11  ;;  %v635_v61 = vshll.u32 %v8940_v8, 16 }
  0x9b   : > { %7645 = vmatpush3.bf16.msra.mxu0 %v8230_v44  ;;  %v6963_v44 = vcombine.low %v550_v32, %v559_v37  ;;  %v641_v32 = vshrl.u32 %v8951_v20, 16  ;;  %v6943_v37 = vcombine.low %v8940_v8, %v8951_v20  ;;  %v654_v49 = vshrl.u32 %v8960_v26, 16 }
  0x9c   : > { %7693 = vmatpush3.bf16.msra.mxu1 %v8231_v45  ;;  %7646 = vmatprep.subr.bf16.mxu0 %v8232_v59  ;;  %v6907_v45 = vrot.slane %v561_v34, 11  ;;  %v644_v34 = vshll.u32 %v8951_v20, 16  ;;  %v616_v38 = vsel %vm8864_vm8, %v6909_v29, %v615_v21  ;;  %v657_v50 = vshll.u32 %v8960_v26, 16 }
  0x9d   : > { %7694 = vmatprep.subr.bf16.mxu1 %v8233_v63  ;;  %v663_v54 = vshrl.u32 %v8962_v27, 16  ;;  %v666_v56 = vshll.u32 %v8962_v27, 16  ;;  %v656_v60 = vrot.slane %v654_v49, 7 }
  0x9e   : > { %v572_v57 = vsel %vm8864_vm8, %v6907_v45, %v571_v39  ;;  %v627_v39 = vshrl.u32 %v461_v48, 16  ;;  %v643_v45 = vrot.slane %v641_v32, 7  ;;  %v9011_v48 = vld [vmem:[#allocation2 + $0x98] sm:$0xf] }
  0x9f   : > { %7647 = vmatpush3.bf16.msra.mxu0 %v8232_v59  ;;  %v583_v59 = vshrl.u32 %v455_v41, 16  ;;  %v665_v3 = vrot.slane %v663_v54, 7 }
  0xa0   : > { %7695 = vmatpush3.bf16.msra.mxu1 %v8233_v63  ;;  %7648 = vmatprep.subr.bf16.mxu0 %v8234_v5  ;;  %v581_v63 = vsel %vm8864_vm8, %v573_v40, %v580_v52  ;;  %v8980_v52 = vld [vmem:[#allocation2 + $0x88] sm:$0xf]  ;;  %v6910_v53 = vrot.slane %v627_v39, 11  ;;  %v6946_v39 = vcombine.low %v9003_v35, %v9011_v48 }
  0xa1   : > { %7696 = vmatprep.subr.bf16.mxu1 %v8235_v17  ;;  %v8938_v4 = vcombine.low %v572_v57, %v581_v63  ;;  %v6944_v57 = vcombine.low %v8960_v26, %v8962_v27  ;;  %v649_v63 = vshrl.u32 %v464_v62, 16  ;;  %v685_v15 = vshrl.u32 %v8980_v52, 16  ;;  %v9021_v62 = vld [vmem:[#allocation2 + $0xa8] sm:$0xf] }
  0xa2   : > { %v732_v8 = vshll.u32 %v9021_v62, 16 }
  0xa3   : > { %7649 = vmatpush3.bf16.msra.mxu0 %v8234_v5  ;;  %v6908_v5 = vrot.slane %v583_v59, 11  ;;  %v646_v59 = vor.u32 %v644_v34, %v643_v45  ;;  %v687_v14 = vrot.slane %v685_v15, 7  ;;  %v707_v34 = vshrl.u32 %v9011_v48, 16 }
  0xa4   : > { %7697 = vmatpush3.bf16.msra.mxu1 %v8235_v17  ;;  %7730 = vmatprep.subr.bf16.mxu0 %v8238_v31 }
  0xa5   : > { %7778 = vmatprep.subr.bf16.mxu1 %v8239_v43  ;;  %v594_v17 = vsel %vm8864_vm8, %v6908_v5, %v593_v6  ;;  %v8254_v5 = vld [vmem:[%s8848_s27 + $0x98] sm:$0xff]  }
  0xa6   : > { %7651 = vmatmul.mubr.bf16.vlgmr.msra.gmra.mxu0 %v6938_v11  ;;  %v603_v11 = vsel %vm8864_vm8, %v595_v7, %v602_v12  ;;  %v659_v7 = vor.u32 %v657_v50, %v656_v60  ;;  %v668_v12 = vor.u32 %v666_v56, %v665_v3  ;;  %v709_v56 = vrot.slane %v707_v34, 7 }
  0xa7   : > { %7699 = vmatmul.mubr.bf16.vlgmr.msra.gmra.mxu1 %v6962_v30  ;;  %7731 = vmatpush3.bf16.msra.mxu0 %v8238_v31  ;;  %v6965_v28 = vcombine.low %v594_v17, %v603_v11  ;;  %v8247_v30 = vld [vmem:[%s8848_s27 + $0xe8] sm:$0xff]   ;;  %v634_v31 = vrot.slane %v632_v47, 7  ;;  %v688_v17 = vshll.u32 %v8980_v52, 16 }
  0xa8   : > { %7779 = vmatpush3.bf16.msra.mxu1 %v8239_v43  ;;  %7654 = vmatprep.mubr.bf16.mxu0 %v6939_v22  ;;  %v625_v22 = vsel %vm8864_vm8, %v617_v23, %v624_v24  ;;  %v8974_v43 = vld [vmem:[#allocation2 + $0x84] sm:$0xf]  ;;  %v698_v24 = vshrl.u32 %v9003_v35, 16 }
  0xa9   : > { %7702 = vmatprep.mubr.bf16.mxu1 %v6963_v44  ;;  %7732 = vmatprep.subr.bf16.mxu0 %v8242_v0  ;;  %v637_v40 = vor.u32 %v635_v61, %v634_v31  ;;  %v639_v41 = vrot.slane %v634_v31, 4  ;;  %v8976_v44 = vcombine.low %v616_v38, %v625_v22  ;;  %v676_v1 = vshrl.u32 %v8974_v43, 16  ;;  %v8258_v22 = vld [vmem:[%s8848_s27 + $0x90] sm:$0xff]  }
  0xaa   : > { %7780 = vmatprep.subr.bf16.mxu1 %v8243_v9  ;;  %v679_v10 = vshll.u32 %v8974_v43, 16  ;;  %v6945_v19 = vcombine.low %v8974_v43, %v8980_v52  ;;  %v690_v31 = vor.u32 %v688_v17, %v687_v14  ;;  %v701_v61 = vshll.u32 %v9003_v35, 16 }
  0xab   : > { %7733 = vmatpush3.bf16.msra.mxu0 %v8242_v0  ;;  %v8251_v0 = vld [vmem:[%s8848_s27 + $0xe0] sm:$0xff]   ;;  %v638_v2 = vsel %vm8864_vm8, %v6910_v53, %v637_v40  ;;  %v647_v6 = vsel %vm8864_vm8, %v639_v41, %v646_v59  ;;  %v678_v13 = vrot.slane %v676_v1, 7  ;;  %v700_v32 = vrot.slane %v698_v24, 7  ;;  %v8259_v41 = vld [vmem:[%s8848_s27 + $0xd0] sm:$0xff]   ;;  %v8262_v1 = vld [vmem:[%s8848_s27 + $0x88] sm:$0xff]  }
  0xac   : > { %7781 = vmatpush3.bf16.msra.mxu1 %v8243_v9  ;;  %7734 = vmatprep.subr.bf16.mxu0 %v8246_v25  ;;  %v661_v9 = vrot.slane %v656_v60, 4  ;;  %v710_v38 = vshll.u32 %v9011_v48, 16  ;;  %v473_v40 = vld [vmem:[#allocation2 + $0xa0] sm:$0x8]  ;;  %v729_v60 = vshrl.u32 %v9021_v62, 16 }
  0xad   : > { %7782 = vmatprep.subr.bf16.mxu1 %v8247_v30  ;;  %v681_v21 = vor.u32 %v679_v10, %v678_v13  ;;  %v683_v23 = vrot.slane %v678_v13, 4  ;;  %v703_v42 = vor.u32 %v701_v61, %v700_v32  ;;  %v705_v51 = vrot.slane %v700_v32, 4  ;;  %v8267_v32 = vld [vmem:[%s8848_s27 + $0xc0] sm:$0xff]  }
  0xae   : > { %7655 = vmatmul.mubr.bf16.gmra.mxu0 %v6940_v33  ;;  %v467_v33 = vld [vmem:[#allocation2 + $0x80] sm:$0x8]  ;;  %v669_v11 = vsel %vm8864_vm8, %v661_v9, %v668_v12  ;;  %v731_v10 = vrot.slane %v729_v60, 7 }
  0xaf   : > { %7703 = vmatmul.mubr.bf16.gmra.mxu1 %v8938_v4  ;;  %7658 = vmatprep.mubr.bf16.mxu0 %v6941_v55  ;;  %v6911_v4 = vrot.slane %v649_v63, 11  ;;  %v6967_v55 = vcombine.low %v638_v2, %v647_v6  ;;  %v671_v47 = vshrl.u32 %v467_v33, 16  ;;  %v691_v49 = vsel %vm8864_vm8, %v683_v23, %v690_v31  ;;  %v9043_v63 = vld [vmem:[#allocation2 + $0xb4] sm:$0xf]  ;;  %v8263_v2 = vld [vmem:[%s8848_s27 + $0xc8] sm:$0xff]   ;;  %v8266_v12 = vld [vmem:[%s8848_s27 + $0x80] sm:$0xff]  }
  0xb0   : > { %7706 = vmatprep.mubr.bf16.mxu1 %v6965_v28  ;;  %7735 = vmatpush3.bf16.msra.mxu0 %v8246_v25  ;;  %v470_v25 = vld [vmem:[#allocation2 + $0x90] sm:$0x8]  ;;  %v9016_v28 = vld [vmem:[#allocation2 + $0xa4] sm:$0xf]  ;;  %v742_v9 = vshrl.u32 %v9043_v63, 16  ;;  %v734_v14 = vor.u32 %v732_v8, %v731_v10 }
  0xb1   : > { %7783 = vmatpush3.bf16.msra.mxu1 %v8247_v30  ;;  %7736 = vmatprep.subr.bf16.mxu0 %v8250_v58  ;;  %v660_v16 = vsel %vm8864_vm8, %v6911_v4, %v659_v7  ;;  %v6912_v30 = vrot.slane %v671_v47, 11  ;;  %v693_v50 = vshrl.u32 %v470_v25, 16  ;;  %v720_v53 = vshrl.u32 %v9016_v28, 16  ;;  %v9054_v6 = vld [vmem:[#allocation2 + $0xc4] sm:$0xf] }
  0xb2   : > { %7784 = vmatprep.subr.bf16.mxu1 %v8251_v0  ;;  %v9018_v29 = vcombine.low %v660_v16, %v669_v11  ;;  %v723_v59 = vshll.u32 %v9016_v28, 16  ;;  %v6947_v20 = vcombine.low %v9016_v28, %v9021_v62  ;;  %v479_v47 = vld [vmem:[#allocation2 + $0xc0] sm:$0x8]  ;;  %v764_v31 = vshrl.u32 %v9054_v6, 16  ;;  %v9111_v10 = vld [vmem:[#allocation2 + $0xe8] sm:$0xf] }
  0xb3   : > { %v682_v45 = vsel %vm8864_vm8, %v6912_v30, %v681_v21  ;;  %v744_v21 = vrot.slane %v742_v9, 7  ;;  %v767_v61 = vshll.u32 %v9054_v6, 16 }
  0xb4   : > { %7737 = vmatpush3.bf16.msra.mxu0 %v8250_v58  ;;  %v6969_v54 = vcombine.low %v682_v45, %v691_v49  ;;  %v722_v58 = vrot.slane %v720_v53, 7 }
  0xb5   : > { %7785 = vmatpush3.bf16.msra.mxu1 %v8251_v0  ;;  %7738 = vmatprep.subr.bf16.mxu0 %v8254_v5  ;;  %v9048_v0 = vld [vmem:[#allocation2 + $0xb8] sm:$0xf]  ;;  %v749_v34 = vrot.slane %v744_v21, 4 }
  0xb6   : > { %7659 = vmatmul.mubr.bf16.gmra.mxu0 %v6942_v18  ;;  %7786 = vmatprep.subr.bf16.mxu1 %v8255_v36  ;;  %v6913_v18 = vrot.slane %v693_v50, 11  ;;  %v725_v15 = vor.u32 %v723_v59, %v722_v58  ;;  %v727_v33 = vrot.slane %v722_v58, 4  ;;  %v751_v16 = vshrl.u32 %v9048_v0, 16  ;;  %v9090_v50 = vld [vmem:[#allocation2 + $0xd8] sm:$0xf] }
  0xb7   : > { %7707 = vmatmul.mubr.bf16.gmra.mxu1 %v8976_v44  ;;  %7662 = vmatprep.mubr.bf16.mxu0 %v6943_v37  ;;  %v712_v44 = vor.u32 %v710_v38, %v709_v56  ;;  %v715_v37 = vshrl.u32 %v473_v40, 16  ;;  %v754_v17 = vshll.u32 %v9048_v0, 16  ;;  %v6948_v23 = vcombine.low %v9043_v63, %v9048_v0  ;;  %v9086_v38 = vld [vmem:[%s8848_s27 + $0x138] sm:$0xff]   ;;  %v9100_v56 = vld [vmem:[#allocation2 + $0xe4] sm:$0xf] }
  0xb8   : > { %7710 = vmatprep.mubr.bf16.mxu1 %v6967_v55  ;;  %7739 = vmatpush3.bf16.msra.mxu0 %v8254_v5  ;;  %v704_v3 = vsel %vm8864_vm8, %v6913_v18, %v703_v42  ;;  %v476_v5 = vld [vmem:[#allocation2 + $0xb0] sm:$0x8]  ;;  %v9060_v55 = vld [vmem:[#allocation2 + $0xc8] sm:$0xf]  ;;  %v735_v25 = vsel %vm8864_vm8, %v727_v33, %v734_v14  ;;  %v753_v30 = vrot.slane %v751_v16, 7  ;;  %v811_v14 = vshll.u32 %v9100_v56, 16 }
  0xb9   : > { %7787 = vmatpush3.bf16.msra.mxu1 %v8255_v36  ;;  %7740 = vmatprep.subr.bf16.mxu0 %v8258_v22  ;;  %v713_v4 = vsel %vm8864_vm8, %v705_v51, %v712_v44  ;;  %v6914_v7 = vrot.slane %v715_v37, 11  ;;  %v745_v36 = vshll.u32 %v9043_v63, 16  ;;  %v737_v24 = vshrl.u32 %v476_v5, 16  ;;  %v9123_v16 = vld [vmem:[#allocation2 + $0xf4] sm:$0xf] }
  0xba   : > { %7788 = vmatprep.subr.bf16.mxu1 %v8259_v41  ;;  %v9063_v13 = vcombine.low %v704_v3, %v713_v4  ;;  %v756_v40 = vor.u32 %v754_v17, %v753_v30  ;;  %v773_v45 = vshrl.u32 %v9060_v55, 16  ;;  %v776_v49 = vshll.u32 %v9060_v55, 16  ;;  %v488_v30 = vld [vmem:[#allocation2 + $0xf0] sm:$0x8] }
  0xbb   : > { %v726_v11 = vsel %vm8864_vm8, %v6914_v7, %v725_v15  ;;  %v6915_v27 = vrot.slane %v737_v24, 11  ;;  %v6949_v52 = vcombine.low %v9054_v6, %v9060_v55  ;;  %v485_v7 = vld [vmem:[#allocation2 + $0xe0] sm:$0x8]  ;;  %v820_v17 = vshll.u32 %v9111_v10, 16  ;;  %v1463_v55 = vld [vmem:[#allocation2 + $0x14] sm:$0xf] }
  0xbc   : > { %7741 = vmatpush3.bf16.msra.mxu0 %v8258_v22  ;;  %v9078_v22 = vld [vmem:[#allocation2 + $0xd4] sm:$0xf]  ;;  %v6971_v26 = vcombine.low %v726_v11, %v735_v25  ;;  %v757_v42 = vsel %vm8864_vm8, %v749_v34, %v756_v40  ;;  %v775_v51 = vrot.slane %v773_v45, 7  ;;  %v803_v24 = vshrl.u32 %v485_v7, 16  ;;  %v9134_v25 = vld [vmem:[#allocation2 + $0xf8] sm:$0xf] }
  0xbd   : > { %7789 = vmatpush3.bf16.msra.mxu1 %v8259_v41  ;;  %7742 = vmatprep.subr.bf16.mxu0 %v8262_v1  ;;  %v766_v41 = vrot.slane %v764_v31, 7  ;;  %v786_v53 = vshrl.u32 %v9078_v22, 16  ;;  %v789_v8 = vshll.u32 %v9078_v22, 16  ;;  %v6950_v3 = vcombine.low %v9078_v22, %v9090_v50  ;;  %v2223_v22 = vld [vmem:[#allocation2 + $0x28] sm:$0xf] }
  0xbe   : > { %7663 = vmatmul.mubr.bf16.gmra.mxu0 %v6944_v57  ;;  %7790 = vmatprep.subr.bf16.mxu1 %v8263_v2  ;;  %v747_v57 = vor.u32 %v745_v36, %v744_v21  ;;  %v778_v37 = vor.u32 %v776_v49, %v775_v51  ;;  %v6951_v21 = vcombine.low %v9100_v56, %v9111_v10  ;;  %v830_v62 = vshrl.u32 %v9123_v16, 16  ;;  %v1462_v49 = vld [vmem:[#allocation2 + $0xc] sm:$0x1] }
  0xbf   : > { %7711 = vmatmul.mubr.bf16.gmra.mxu1 %v9018_v29  ;;  %7666 = vmatprep.mubr.bf16.mxu0 %v6945_v19  ;;  %v9093_v29 = vld [vmem:[%s8848_s27 + $0x178] sm:$0xff]   ;;  %v759_v19 = vshrl.u32 %v479_v47, 16  ;;  %v769_v18 = vor.u32 %v767_v61, %v766_v41  ;;  %v771_v58 = vrot.slane %v766_v41, 4  ;;  %v788_v44 = vrot.slane %v786_v53, 7 }
  0xc0   : > { %7714 = vmatprep.mubr.bf16.mxu1 %v6969_v54  ;;  %7743 = vmatpush3.bf16.msra.mxu0 %v8262_v1  ;;  %v748_v43 = vsel %vm8864_vm8, %v6915_v27, %v747_v57  ;;  %v482_v54 = vld [vmem:[#allocation2 + $0xd0] sm:$0x8]  ;;  %v795_v1 = vshrl.u32 %v9090_v50, 16  ;;  %v6918_v61 = vrot.slane %v803_v24, 11  ;;  %v1460_v27 = vld [vmem:[#allocation2 + $0x4] sm:$0xf] }
  0xc1   : > { %7791 = vmatpush3.bf16.msra.mxu1 %v8263_v2  ;;  %7744 = vmatprep.subr.bf16.mxu0 %v8266_v12  ;;  %v9104_v59 = vcombine.low %v748_v43, %v757_v42  ;;  %v6916_v60 = vrot.slane %v759_v19, 11  ;;  %v798_v2 = vshll.u32 %v9090_v50, 16  ;;  %v781_v33 = vshrl.u32 %v482_v54, 16  ;;  %v1461_v57 = vld [vmem:[#allocation2 + $0x8] sm:$0xf] }
  0xc2   : > { %7792 = vmatprep.subr.bf16.mxu1 %v8267_v32  ;;  %v791_v5 = vor.u32 %v789_v8, %v788_v44  ;;  %v793_v4 = vrot.slane %v788_v44, 4  ;;  %v779_v9 = vsel %vm8864_vm8, %v771_v58, %v778_v37  ;;  %v797_v36 = vrot.slane %v795_v1, 7  ;;  %v2218_v43 = vld [vmem:[#allocation2 + $0x10] sm:$0x8]  ;;  %v1466_v50 = vld [vmem:[#allocation2 + $0x24] sm:$0xf] }
  0xc3   : > { %v770_v15 = vsel %vm8864_vm8, %v6916_v60, %v769_v18  ;;  %v6917_v48 = vrot.slane %v781_v33, 11  ;;  %v832_v41 = vrot.slane %v830_v62, 7  ;;  %v839_v45 = vshrl.u32 %v9134_v25, 16  ;;  %v1465_v62 = vld [vmem:[#allocation2 + $0x1c] sm:$0x1] }
  0xc4   : > { %7745 = vmatpush3.bf16.msra.mxu0 %v8266_v12  ;;  %v808_v12 = vshrl.u32 %v9100_v56, 16  ;;  %v6973_v35 = vcombine.low %v770_v15, %v779_v9  ;;  %v800_v47 = vor.u32 %v798_v2, %v797_v36  ;;  %v842_v53 = vshll.u32 %v9134_v25, 16 }
  0xc5   : > { %7793 = vmatpush3.bf16.msra.mxu1 %v8267_v32  ;;  %7826 = vmatprep.subr.bf16.mxu0 %v9086_v38  ;;  %v6952_v54 = vcombine.low %v9123_v16, %v9134_v25  ;;  %v825_v42 = vshrl.u32 %v488_v30, 16  ;;  %v841_v18 = vrot.slane %v839_v45, 7  ;;  %v837_v60 = vrot.slane %v832_v41, 4 }
  0xc6   : > { %7667 = vmatmul.mubr.bf16.gmra.mxu0 %v6946_v39  ;;  %7874 = vmatprep.subr.bf16.mxu1 %v9093_v29  ;;  %v817_v39 = vshrl.u32 %v9111_v10, 16  ;;  %v810_v11 = vrot.slane %v808_v12, 7  ;;  %v801_v31 = vsel %vm8864_vm8, %v793_v4, %v800_v47  ;;  %v1512_v37 = vshrl.u32 %v1460_v27, 16  ;;  %v2220_v4 = vld [vmem:[#allocation2 + $0x18] sm:$0xf] }
  0xc7   : > { %7715 = vmatmul.mubr.bf16.gmra.mxu1 %v9063_v13  ;;  %7670 = vmatprep.mubr.bf16.mxu0 %v6947_v20  ;;  %v792_v13 = vsel %vm8864_vm8, %v6917_v48, %v791_v5  ;;  %v833_v20 = vshll.u32 %v9123_v16, 16  ;;  %v6919_v8 = vrot.slane %v825_v42, 11  ;;  %v844_v1 = vor.u32 %v842_v53, %v841_v18  ;;  %v2219_v5 = vld [vmem:[#allocation2 + $0x14] sm:$0xf] }
  0xc8   : > { %7718 = vmatprep.mubr.bf16.mxu1 %v6971_v26  ;;  %v819_v28 = vrot.slane %v817_v39, 7  ;;  %v813_v32 = vor.u32 %v811_v14, %v810_v11  ;;  %v815_v26 = vrot.slane %v810_v11, 4  ;;  %v6974_v34 = vcombine.low %v792_v13, %v801_v31 }
  0xc9   : > { %v835_v58 = vor.u32 %v833_v20, %v832_v41  ;;  %v1515_v2 = vshll.u32 %v1460_v27, 16  ;;  %v1521_v15 = vshll.u32 %v1461_v57, 16  ;;  %v1525_v33 = vshrl.u32 %v1461_v57, 16  ;;  %v2221_v27 = vld [vmem:[#allocation2 + $0x20] sm:$0x8] }
  0xca   : > { %v822_v40 = vor.u32 %v820_v17, %v819_v28  ;;  %v814_v19 = vsel %vm8864_vm8, %v6918_v61, %v813_v32  ;;  %v1514_v0 = vrot.slane %v1512_v37, 4  ;;  %v2267_v7 = vshrl.u32 %v2218_v43, 16 }
  0xcb   : > { %v836_v63 = vsel %vm8864_vm8, %v6919_v8, %v835_v58  ;;  %v1517_v9 = vrot.slane %v1515_v2, 5  ;;  %v1523_v36 = vrot.slane %v1521_v15, 5  ;;  %v1527_v6 = vrot.slane %v1525_v33, 4 }
  0xcc   : > { %v823_v51 = vsel %vm8864_vm8, %v815_v26, %v822_v40  ;;  %v7025_v14 = vrot.slane %v2267_v7, 11  ;;  %v2272_v48 = vshrl.u32 %v2219_v5, 16  ;;  %v2275_v47 = vshll.u32 %v2219_v5, 16  ;;  %v1467_v5 = vld [vmem:[#allocation2 + $0x28] sm:$0xf] }
  0xcd   : > { %v6975_v44 = vcombine.low %v814_v19, %v823_v51  ;;  %v1518_v39 = vor.u32 %v1517_v9, %v1514_v0  ;;  %v1528_v17 = vor.u32 %v1527_v6, %v1523_v36  ;;  %v2281_v11 = vshrl.u32 %v2220_v4, 16 }
  0xce   : > { %7671 = vmatmul.mubr.bf16.gmra.mxu0 %v6948_v23  ;;  %v1531_v23 = vshll.u32 %v1462_v49, 16  ;;  %v10851_v24 = vmov 0  ;;  %v2274_v13 = vrot.slane %v2272_v48, 7  ;;  %v2284_v28 = vshll.u32 %v2220_v4, 16  ;;  %v2222_v49 = vld [vmem:[#allocation2 + $0x24] sm:$0xf] }
  0xcf   : > { %7719 = vmatmul.mubr.bf16.gmra.mxu1 %v9104_v59  ;;  %7674 = vmatprep.mubr.bf16.mxu0 %v6949_v52  ;;  %v845_v59 = vsel %vm8864_vm8, %v837_v60, %v844_v1  ;;  %v10852_v24 = vsel %vm9165_vm11, 4294967295, %v10851_v24  ;;  %v1536_v20 = vshrl.u32 %v1463_v55, 16  ;;  %v1539_v30 = vshll.u32 %v1463_v55, 16  ;;  %v1468_v4 = vld [vmem:[#allocation2 + $0x2c] sm:$0x1] }
  0xd0   : > { %7722 = vmatprep.mubr.bf16.mxu1 %v6973_v35  ;;  %v9161_v52 = vcombine.low %v836_v63, %v845_v59  ;;  %v1533_v12 = vrot.slane %v1531_v23, 5  ;;  %v1464_v35 = vld [vmem:[#allocation2 + $0x18] sm:$0xf]  ;;  %10853 = vst [vmem:[#allocation15_spill] sm:$0xff] %v10852_v24  ;;  %v1519_v31 = vrot.slane %v1518_v39, 4  ;;  %v1529_v61 = vrot.slane %v1528_v17, 4 }
  0xd1   : > { %v2283_v32 = vrot.slane %v2281_v11, 7  ;;  %v1545_v26 = vshll.u32 %v1464_v35, 16  ;;  %v2277_v57 = vor.u32 %v2275_v47, %v2274_v13  ;;  %v2279_v40 = vrot.slane %v2274_v13, 4  ;;  %v2224_v55 = vld [vmem:[#allocation2 + $0x30] sm:$0x8] }
  0xd2   : > { %v1538_v41 = vrot.slane %v1536_v20, 4  ;;  %v1541_v45 = vrot.slane %v1539_v30, 5  ;;  %v1524_v43 = vsel %vm9165_vm11, %v1519_v31, %v1523_v36  ;;  %v1534_v19 = vsel %vm9165_vm11, %v1529_v61, %v1533_v12  ;;  %v2225_v13 = vld [vmem:[#allocation2 + $0x34] sm:$0xf] }
  0xd3   : > { %v2286_v53 = vor.u32 %v2284_v28, %v2283_v32  ;;  %v1547_v42 = vrot.slane %v1545_v26, 5  ;;  %v2278_v51 = vsel %vm8864_vm8, %v7025_v14, %v2277_v57  ;;  %v1549_v18 = vshrl.u32 %v1464_v35, 16  ;;  %v2226_v28 = vld [vmem:[#allocation2 + $0x38] sm:$0xf]  ;;  %v1469_v61 = vld [vmem:[#allocation2 + $0x34] sm:$0xf] }
  0xd4   : > { %v1555_v10 = vshll.u32 %v1465_v62, 16  ;;  %v2294_v58 = vshrl.u32 %v2222_v49, 16  ;;  %v2297_v1 = vshll.u32 %v2222_v49, 16  ;;  %v2306_v23 = vshll.u32 %v2223_v22, 16 }
  0xd5   : > { %v2287_v56 = vsel %vm8864_vm8, %v2279_v40, %v2286_v53  ;;  %v1551_v37 = vrot.slane %v1549_v18, 4  ;;  %v1560_v7 = vshrl.u32 %v1466_v50, 16  ;;  %v1563_v6 = vshll.u32 %v1466_v50, 16  ;;  %v1470_v40 = vld [vmem:[#allocation2 + $0x38] sm:$0xf] }
  0xd6   : > { %7675 = vmatmul.mubr.bf16.gmra.mxu0 %v6950_v3  ;;  %v7001_v3 = vcombine.low %v1524_v43, %v1534_v19  ;;  %v7057_v60 = vcombine.low %v2278_v51, %v2287_v56  ;;  %v1557_v2 = vrot.slane %v1555_v10, 5  ;;  %v2296_v33 = vrot.slane %v2294_v58, 7  ;;  %v1471_v53 = vld [vmem:[#allocation2 + $0x3c] sm:$0x1] }
  0xd7   : > { %7723 = vmatmul.mubr.bf16.gmra.mxu1 %v6974_v34  ;;  %7678 = vmatprep.mubr.bf16.mxu0 %v6951_v21  ;;  %v1542_v34 = vor.u32 %v1541_v45, %v1538_v41  ;;  %v2289_v21 = vshrl.u32 %v2221_v27, 16  ;;  %v1552_v0 = vor.u32 %v1551_v37, %v1547_v42  ;;  %v1562_v14 = vrot.slane %v1560_v7, 4  ;;  %v8270_v41 = vld [vmem:[%s8848_s27 + $0x130] sm:$0xff]  }
  0xd8   : > { %7726 = vmatprep.mubr.bf16.mxu1 %v6975_v44  ;;  %v2303_v44 = vshrl.u32 %v2223_v22, 16  ;;  %v2299_v59 = vor.u32 %v2297_v1, %v2296_v33  ;;  %v2301_v9 = vrot.slane %v2296_v33, 4  ;;  %v1569_v48 = vshll.u32 %v1467_v5, 16  ;;  %v2228_v1 = vld [vmem:[#allocation2 + $0x44] sm:$0xf] }
  0xd9   : > { %v1543_v8 = vrot.slane %v1542_v34, 4  ;;  %v7026_v15 = vrot.slane %v2289_v21, 11  ;;  %v1553_v12 = vrot.slane %v1552_v0, 4  ;;  %v1573_v35 = vshrl.u32 %v1467_v5, 16  ;;  %v8271_v21 = vld [vmem:[%s8848_s27 + $0x170] sm:$0xff]   ;;  %v8272_v5 = vld [vmem:[%s8848_s27 + $0x128] sm:$0xff]  }
  0xda   : > { %v2305_v36 = vrot.slane %v2303_v44, 7  ;;  %v1565_v47 = vrot.slane %v1563_v6, 5  ;;  %v1579_v11 = vshll.u32 %v1468_v4, 16  ;;  %v1571_v25 = vrot.slane %v1569_v48, 5  ;;  %v2229_v4 = vld [vmem:[#allocation2 + $0x48] sm:$0xf] }
  0xdb   : > { %v1548_v63 = vsel %vm9165_vm11, %v1543_v8, %v1547_v42  ;;  %v2300_v39 = vsel %vm8864_vm8, %v7026_v15, %v2299_v59  ;;  %v1558_v16 = vsel %vm9165_vm11, %v1553_v12, %v1557_v2  ;;  %v2311_v62 = vshrl.u32 %v2224_v55, 16  ;;  %v2227_v42 = vld [vmem:[#allocation2 + $0x40] sm:$0x8]  ;;  %v8273_v59 = vld [vmem:[%s8848_s27 + $0x168] sm:$0xff]  }
  0xdc   : > { %v2308_v17 = vor.u32 %v2306_v23, %v2305_v36  ;;  %v7002_v20 = vcombine.low %v1548_v63, %v1558_v16  ;;  %v1566_v30 = vor.u32 %v1565_v47, %v1562_v14  ;;  %v1581_v31 = vrot.slane %v1579_v11, 5  ;;  %v1473_v55 = vld [vmem:[#allocation2 + $0x48] sm:$0xf]  ;;  %v1474_v16 = vld [vmem:[#allocation2 + $0x4c] sm:$0x1] }
  0xdd   : > { %v7027_v27 = vrot.slane %v2311_v62, 11  ;;  %v2316_v57 = vshrl.u32 %v2225_v13, 16  ;;  %v2319_v49 = vshll.u32 %v2225_v13, 16  ;;  %v2325_v43 = vshrl.u32 %v2226_v28, 16 }
  0xde   : > { %7679 = vmatmul.mubr.bf16.gmra.mxu0 %v6952_v54  ;;  %v1575_v54 = vrot.slane %v1573_v35, 4  ;;  %v1567_v45 = vrot.slane %v1566_v30, 4  ;;  %v2328_v19 = vshll.u32 %v2226_v28, 16  ;;  %v1587_v51 = vshll.u32 %v1469_v61, 16 }
  0xdf   : > { %7727 = vmatmul.mubr.bf16.gmra.mxu1 %v9161_v52  ;;  %7746 = vmatprep.mubr.bf16.mxu0 %v7001_v3  ;;  %v2309_v52 = vsel %vm8864_vm8, %v2301_v9, %v2308_v17  ;;  %v2318_v50 = vrot.slane %v2316_v57, 7  ;;  %v1584_v3 = vshrl.u32 %v1469_v61, 16  ;;  %v2327_v18 = vrot.slane %v2325_v43, 7 }
  0xe0   : > { %7794 = vmatprep.mubr.bf16.mxu1 %v7057_v60  ;;  %v7058_v32 = vcombine.low %v2300_v39, %v2309_v52  ;;  %v1576_v26 = vor.u32 %v1575_v54, %v1571_v25  ;;  %v1572_v34 = vsel %vm9165_vm11, %v1567_v45, %v1571_v25  ;;  %v1593_v56 = vshll.u32 %v1470_v40, 16  ;;  %v8274_v39 = vld [vmem:[%s8848_s27 + $0x120] sm:$0xff]   ;;  %v2230_v52 = vld [vmem:[#allocation2 + $0x50] sm:$0x8] }
  0xe1   : > { %v1597_v10 = vshrl.u32 %v1470_v40, 16  ;;  %v2321_v60 = vor.u32 %v2319_v49, %v2318_v50  ;;  %v2323_v8 = vrot.slane %v2318_v50, 4  ;;  %v1586_v37 = vrot.slane %v1584_v3, 4  ;;  %v8275_v25 = vld [vmem:[%s8848_s27 + $0x160] sm:$0xff]  }
  0xe2   : > { %v1577_v22 = vrot.slane %v1576_v26, 4  ;;  %v2330_v15 = vor.u32 %v2328_v19, %v2327_v18  ;;  %v1589_v33 = vrot.slane %v1587_v51, 5  ;;  %v1595_v44 = vrot.slane %v1593_v56, 5  ;;  %v2231_v26 = vld [vmem:[#allocation2 + $0x54] sm:$0xf] }
  0xe3   : > { %v2322_v63 = vsel %vm8864_vm8, %v7027_v27, %v2321_v60  ;;  %v1599_v0 = vrot.slane %v1597_v10, 4  ;;  %v1603_v23 = vshll.u32 %v1471_v53, 16  ;;  %v2333_v7 = vshrl.u32 %v2227_v42, 16  ;;  %v2232_v27 = vld [vmem:[#allocation2 + $0x58] sm:$0xf] }
  0xe4   : > { %v1582_v58 = vsel %vm9165_vm11, %v1577_v22, %v1581_v31  ;;  %v1590_v9 = vor.u32 %v1589_v33, %v1586_v37  ;;  %v2338_v36 = vshrl.u32 %v2228_v1, 16  ;;  %v2341_v6 = vshll.u32 %v2228_v1, 16  ;;  %v1475_v42 = vld [vmem:[#allocation2 + $0x54] sm:$0xf] }
  0xe5   : > { %v7003_v2 = vcombine.low %v1572_v34, %v1582_v58  ;;  %v1600_v14 = vor.u32 %v1599_v0, %v1595_v44  ;;  %v1605_v48 = vrot.slane %v1603_v23, 5  ;;  %v7028_v35 = vrot.slane %v2333_v7, 11  ;;  %v8276_v34 = vld [vmem:[%s8848_s27 + $0x118] sm:$0xff]  }
  0xe6   : > { %7747 = vmatmul.mubr.bf16.vlgmr.msra.gmra.mxu0 %v7002_v20  ;;  %v1591_v17 = vrot.slane %v1590_v9, 4  ;;  %v2340_v47 = vrot.slane %v2338_v36, 7  ;;  %v2347_v11 = vshrl.u32 %v2229_v4, 16  ;;  %v2350_v13 = vshll.u32 %v2229_v4, 16  ;;  %v1476_v58 = vld [vmem:[#allocation2 + $0x58] sm:$0xf] }
  0xe7   : > { %7795 = vmatmul.mubr.bf16.vlgmr.msra.gmra.mxu1 %v7058_v32  ;;  %7827 = vmatpush3.bf16.msra.mxu0 %v9086_v38  ;;  %v2331_v38 = vsel %vm8864_vm8, %v2323_v8, %v2330_v15  ;;  %v1601_v54 = vrot.slane %v1600_v14, 4  ;;  %v1617_v20 = vshll.u32 %v1473_v55, 16  ;;  %v1621_v53 = vshrl.u32 %v1473_v55, 16  ;;  %v1477_v0 = vld [vmem:[#allocation2 + $0x5c] sm:$0x1] }
  0xe8   : > { %7875 = vmatpush3.bf16.msra.mxu1 %v9093_v29  ;;  %7828 = vmatprep.subr.bf16.mxu0 %v8270_v41  ;;  %v1472_v29 = vld [vmem:[#allocation2 + $0x44] sm:$0xf]  ;;  %v7059_v12 = vcombine.low %v2322_v63, %v2331_v38  ;;  %v1596_v30 = vsel %vm9165_vm11, %v1591_v17, %v1595_v44  ;;  %v2343_v31 = vor.u32 %v2341_v6, %v2340_v47  ;;  %v2345_v61 = vrot.slane %v2340_v47, 4 }
  0xe9   : > { %7750 = vmatprep.mubr.bf16.mxu0 %v7003_v2  ;;  %7876 = vmatprep.subr.bf16.mxu1 %v8271_v21  ;;  %v1608_v28 = vshrl.u32 %v1472_v29, 16  ;;  %v1611_v62 = vshll.u32 %v1472_v29, 16  ;;  %v2349_v32 = vrot.slane %v2347_v11, 7  ;;  %v1606_v57 = vsel %vm9165_vm11, %v1601_v54, %v1605_v48  ;;  %v8277_v2 = vld [vmem:[%s8848_s27 + $0x158] sm:$0xff]   ;;  %v2233_v29 = vld [vmem:[#allocation2 + $0x60] sm:$0x8] }
  0xea   : > { %7798 = vmatprep.mubr.bf16.mxu1 %v7059_v12  ;;  %v1619_v45 = vrot.slane %v1617_v20, 5  ;;  %v7004_v49 = vcombine.low %v1596_v30, %v1606_v57  ;;  %v2344_v43 = vsel %vm8864_vm8, %v7028_v35, %v2343_v31  ;;  %v1627_v50 = vshll.u32 %v1474_v16, 16  ;;  %v2234_v35 = vld [vmem:[#allocation2 + $0x64] sm:$0xf]  ;;  %v8279_v16 = vld [vmem:[%s8848_s27 + $0x150] sm:$0xff]  }
  0xeb   : > { %7829 = vmatpush3.bf16.msra.mxu0 %v8270_v41  ;;  %v1610_v40 = vrot.slane %v1608_v28, 4  ;;  %v1613_v41 = vrot.slane %v1611_v62, 5  ;;  %v2352_v19 = vor.u32 %v2350_v13, %v2349_v32  ;;  %v2355_v3 = vshrl.u32 %v2230_v52, 16  ;;  %v2235_v13 = vld [vmem:[#allocation2 + $0x68] sm:$0xf] }
  0xec   : > { %7877 = vmatpush3.bf16.msra.mxu1 %v8271_v21  ;;  %7830 = vmatprep.subr.bf16.mxu0 %v8272_v5  ;;  %v2360_v51 = vshrl.u32 %v2231_v26, 16  ;;  %v1623_v56 = vrot.slane %v1621_v53, 4  ;;  %v2363_v10 = vshll.u32 %v2231_v26, 16  ;;  %v2369_v21 = vshrl.u32 %v2232_v27, 16  ;;  %v1478_v20 = vld [vmem:[#allocation2 + $0x64] sm:$0xf] }
  0xed   : > { %7878 = vmatprep.subr.bf16.mxu1 %v8273_v59  ;;  %v1614_v22 = vor.u32 %v1613_v41, %v1610_v40  ;;  %v2353_v18 = vsel %vm8864_vm8, %v2345_v61, %v2352_v19  ;;  %v1629_v37 = vrot.slane %v1627_v50, 5  ;;  %v7029_v1 = vrot.slane %v2355_v3, 11  ;;  %v8280_v52 = vld [vmem:[%s8848_s27 + $0x108] sm:$0xff]   ;;  %v2237_v50 = vld [vmem:[#allocation2 + $0x74] sm:$0xf] }
  0xee   : > { %7751 = vmatmul.mubr.bf16.gmra.mxu0 %v7004_v49  ;;  %v7060_v60 = vcombine.low %v2344_v43, %v2353_v18  ;;  %v1624_v15 = vor.u32 %v1623_v56, %v1619_v45  ;;  %v2362_v33 = vrot.slane %v2360_v51, 7  ;;  %v2371_v44 = vrot.slane %v2369_v21, 7  ;;  %v1479_v26 = vld [vmem:[#allocation2 + $0x68] sm:$0xf]  ;;  %v8282_v56 = vld [vmem:[%s8848_s27 + $0x100] sm:$0xff]  }
  0xef   : > { %7831 = vmatpush3.bf16.msra.mxu0 %v8272_v5  ;;  %v1615_v8 = vrot.slane %v1614_v22, 4  ;;  %v2372_v5 = vshll.u32 %v2232_v27, 16  ;;  %v1632_v23 = vshrl.u32 %v1475_v42, 16  ;;  %v1635_v4 = vshll.u32 %v1475_v42, 16  ;;  %v8281_v49 = vld [vmem:[%s8848_s27 + $0x148] sm:$0xff]  }
  0xf0   : > { %7879 = vmatpush3.bf16.msra.mxu1 %v8273_v59  ;;  %7832 = vmatprep.subr.bf16.mxu0 %v8274_v39  ;;  %v1641_v7 = vshll.u32 %v1476_v58, 16  ;;  %v8278_v59 = vld [vmem:[%s8848_s27 + $0x110] sm:$0xff]   ;;  %v1625_v38 = vrot.slane %v1624_v15, 4  ;;  %v2365_v9 = vor.u32 %v2363_v10, %v2362_v33  ;;  %v2367_v36 = vrot.slane %v2362_v33, 4  ;;  %v8283_v15 = vld [vmem:[%s8848_s27 + $0x140] sm:$0xff]  }
  0xf1   : > { %7880 = vmatprep.subr.bf16.mxu1 %v8275_v25  ;;  %7799 = vmatmul.mubr.bf16.gmra.mxu1 %v7060_v60  ;;  %v1620_v63 = vsel %vm9165_vm11, %v1615_v8, %v1619_v45  ;;  %v2374_v6 = vor.u32 %v2372_v5, %v2371_v44  ;;  %v1634_v55 = vrot.slane %v1632_v23, 4  ;;  %v1637_v12 = vrot.slane %v1635_v4, 5  ;;  %v1480_v45 = vld [vmem:[#allocation2 + $0x6c] sm:$0x1]  ;;  %v2236_v22 = vld [vmem:[#allocation2 + $0x70] sm:$0x8] }
  0xf2   : > { %v1643_v14 = vrot.slane %v1641_v7, 5  ;;  %v1645_v48 = vshrl.u32 %v1476_v58, 16  ;;  %v2366_v17 = vsel %vm8864_vm8, %v7029_v1, %v2365_v9  ;;  %v1651_v11 = vshll.u32 %v1477_v0, 16  ;;  %v2238_v0 = vld [vmem:[#allocation2 + $0x78] sm:$0xf] }
  0xf3   : > { %7833 = vmatpush3.bf16.msra.mxu0 %v8274_v39  ;;  %v1630_v39 = vsel %vm9165_vm11, %v1625_v38, %v1629_v37  ;;  %v2375_v47 = vsel %vm8864_vm8, %v2367_v36, %v2374_v6  ;;  %v1638_v28 = vor.u32 %v1637_v12, %v1634_v55  ;;  %v2377_v31 = vshrl.u32 %v2233_v29, 16  ;;  %v1481_v38 = vld [vmem:[#allocation2 + $0x74] sm:$0xf]  ;;  %v9244_v9 = vld [vmem:[%s8848_s27 + $0x1b8] sm:$0xff]  }
  0xf4   : > { %7834 = vmatprep.subr.bf16.mxu0 %v8276_v34  ;;  %7881 = vmatpush3.bf16.msra.mxu1 %v8275_v25  ;;  %v7005_v25 = vcombine.low %v1620_v63, %v1630_v39  ;;  %v7061_v54 = vcombine.low %v2366_v17, %v2375_v47  ;;  %v1647_v62 = vrot.slane %v1645_v48, 4  ;;  %v1653_v30 = vrot.slane %v1651_v11, 5  ;;  %v1482_v39 = vld [vmem:[#allocation2 + $0x78] sm:$0xf] }
  0xf5   : > { %7882 = vmatprep.subr.bf16.mxu1 %v8277_v2  ;;  %v2382_v61 = vshrl.u32 %v2234_v35, 16  ;;  %v2385_v32 = vshll.u32 %v2234_v35, 16  ;;  %v1639_v27 = vrot.slane %v1638_v28, 4  ;;  %v2391_v40 = vshrl.u32 %v2235_v13, 16  ;;  %v9247_v17 = vld [vmem:[%s8848_s27 + $0x1f8] sm:$0xff]  }
  0xf6   : > { %7754 = vmatprep.mubr.bf16.mxu0 %v7005_v25  ;;  %7802 = vmatprep.mubr.bf16.mxu1 %v7061_v54  ;;  %v1648_v57 = vor.u32 %v1647_v62, %v1643_v14  ;;  %v2394_v41 = vshll.u32 %v2235_v13, 16  ;;  %v7030_v43 = vrot.slane %v2377_v31, 11  ;;  %v1656_v53 = vshrl.u32 %v1478_v20, 16  ;;  %v1483_v13 = vld [vmem:[#allocation2 + $0x7c] sm:$0x1] }
  0xf7   : > { %7835 = vmatpush3.bf16.msra.mxu0 %v8276_v34  ;;  %v2384_v19 = vrot.slane %v2382_v61, 7  ;;  %v1659_v42 = vshll.u32 %v1478_v20, 16  ;;  %v1644_v3 = vsel %vm9165_vm11, %v1639_v27, %v1643_v14  ;;  %v2393_v34 = vrot.slane %v2391_v40, 7 }
  0xf8   : > { %7836 = vmatprep.subr.bf16.mxu0 %v8278_v59  ;;  %7883 = vmatpush3.bf16.msra.mxu1 %v8277_v2  ;;  %v1649_v51 = vrot.slane %v1648_v57, 4  ;;  %v1665_v18 = vshll.u32 %v1479_v26, 16  ;;  %v1658_v58 = vrot.slane %v1656_v53, 4  ;;  %v1669_v2 = vshrl.u32 %v1479_v26, 16  ;;  %v2240_v26 = vld [vmem:[#allocation2 + $0x84] sm:$0xf] }
  0xf9   : > { %7884 = vmatprep.subr.bf16.mxu1 %v8279_v16  ;;  %v2387_v10 = vor.u32 %v2385_v32, %v2384_v19  ;;  %v2389_v21 = vrot.slane %v2384_v19, 4  ;;  %v1661_v60 = vrot.slane %v1659_v42, 5  ;;  %v2396_v37 = vor.u32 %v2394_v41, %v2393_v34 }
  0xfa   : > { %v1654_v8 = vsel %vm9165_vm11, %v1649_v51, %v1653_v30  ;;  %v1667_v1 = vrot.slane %v1665_v18, 5  ;;  %v1675_v63 = vshll.u32 %v1480_v45, 16  ;;  %v1671_v4 = vrot.slane %v1669_v2, 4  ;;  %v2241_v45 = vld [vmem:[#allocation2 + $0x88] sm:$0xf] }
  0xfb   : > { %7837 = vmatpush3.bf16.msra.mxu0 %v8278_v59  ;;  %v7006_v33 = vcombine.low %v1644_v3, %v1654_v8  ;;  %v2388_v44 = vsel %vm8864_vm8, %v7030_v43, %v2387_v10  ;;  %v1662_v5 = vor.u32 %v1661_v60, %v1658_v58  ;;  %v2397_v23 = vsel %vm8864_vm8, %v2389_v21, %v2396_v37  ;;  %v1485_v21 = vld [vmem:[#allocation2 + $0x88] sm:$0xf] }
  0xfc   : > { %7838 = vmatprep.subr.bf16.mxu0 %v8280_v52  ;;  %7885 = vmatpush3.bf16.msra.mxu1 %v8279_v16  ;;  %v2399_v7 = vshrl.u32 %v2236_v22, 16  ;;  %v2404_v59 = vshrl.u32 %v2237_v50, 16  ;;  %v7062_v36 = vcombine.low %v2388_v44, %v2397_v23  ;;  %v1677_v29 = vrot.slane %v1675_v63, 5 }
  0xfd   : > { %7886 = vmatprep.subr.bf16.mxu1 %v8281_v49  ;;  %7755 = vmatmul.mubr.bf16.gmra.mxu0 %v7006_v33  ;;  %v1663_v6 = vrot.slane %v1662_v5, 4  ;;  %v2407_v55 = vshll.u32 %v2237_v50, 16  ;;  %v1672_v12 = vor.u32 %v1671_v4, %v1667_v1  ;;  %v2413_v35 = vshrl.u32 %v2238_v0, 16  ;;  %v2242_v5 = vld [vmem:[#allocation2 + $0x90] sm:$0x8] }
  0xfe   : > { %v7031_v14 = vrot.slane %v2399_v7, 11  ;;  %v2406_v48 = vrot.slane %v2404_v59, 7  ;;  %7803 = vmatmul.mubr.bf16.gmra.mxu1 %v7062_v36  ;;  %v2416_v11 = vshll.u32 %v2238_v0, 16  ;;  %v1680_v16 = vshrl.u32 %v1481_v38, 16  ;;  %v2243_v7 = vld [vmem:[#allocation2 + $0x94] sm:$0xf] }
  0xff   : > { %7839 = vmatpush3.bf16.msra.mxu0 %v8280_v52  ;;  %v1668_v47 = vsel %vm9165_vm11, %v1663_v6, %v1667_v1  ;;  %v1683_v25 = vshll.u32 %v1481_v38, 16  ;;  %v1673_v54 = vrot.slane %v1672_v12, 4  ;;  %v2415_v20 = vrot.slane %v2413_v35, 7  ;;  %v2239_v52 = vld [vmem:[#allocation2 + $0x80] sm:$0x8] }
 0x100   : > { %7840 = vmatprep.subr.bf16.mxu0 %v8282_v56  ;;  %7887 = vmatpush3.bf16.msra.mxu1 %v8281_v49  ;;  %v2409_v28 = vor.u32 %v2407_v55, %v2406_v48  ;;  %v2411_v62 = vrot.slane %v2406_v48, 4  ;;  %v1682_v30 = vrot.slane %v1680_v16, 4  ;;  %v1689_v61 = vshll.u32 %v1482_v39, 16  ;;  %v1484_v49 = vld [vmem:[#allocation2 + $0x84] sm:$0xf] }
 0x101   : > { %7888 = vmatprep.subr.bf16.mxu1 %v8283_v15  ;;  %v1685_v31 = vrot.slane %v1683_v25, 5  ;;  %v1693_v32 = vshrl.u32 %v1482_v39, 16  ;;  %v1678_v27 = vsel %vm9165_vm11, %v1673_v54, %v1677_v29  ;;  %v2418_v40 = vor.u32 %v2416_v11, %v2415_v20  ;;  %v1486_v1 = vld [vmem:[#allocation2 + $0x8c] sm:$0x1]  ;;  %v2244_v29 = vld [vmem:[#allocation2 + $0x98] sm:$0xf] }
 0x102   : > { %v2410_v57 = vsel %vm8864_vm8, %v7031_v14, %v2409_v28  ;;  %v1699_v41 = vshll.u32 %v1483_v13, 16  ;;  %v7007_v43 = vcombine.low %v1668_v47, %v1678_v27  ;;  %v1691_v53 = vrot.slane %v1689_v61, 5  ;;  %v1487_v28 = vld [vmem:[#allocation2 + $0x94] sm:$0xf] }
 0x103   : > { %7841 = vmatpush3.bf16.msra.mxu0 %v8282_v56  ;;  %v1686_v19 = vor.u32 %v1685_v31, %v1682_v30  ;;  %v1695_v42 = vrot.slane %v1693_v32, 4  ;;  %v2419_v22 = vsel %vm8864_vm8, %v2411_v62, %v2418_v40  ;;  %v2421_v3 = vshrl.u32 %v2239_v52, 16  ;;  %v1488_v31 = vld [vmem:[#allocation2 + $0x98] sm:$0xf] }
 0x104   : > { %7922 = vmatprep.subr.bf16.mxu0 %v9244_v9  ;;  %7889 = vmatpush3.bf16.msra.mxu1 %v8283_v15  ;;  %v1701_v50 = vrot.slane %v1699_v41, 5  ;;  %v2426_v51 = vshrl.u32 %v2240_v26, 16  ;;  %v7063_v34 = vcombine.low %v2410_v57, %v2419_v22  ;;  %v2429_v10 = vshll.u32 %v2240_v26, 16  ;;  %v1489_v57 = vld [vmem:[#allocation2 + $0x9c] sm:$0x1] }
 0x105   : > { %7970 = vmatprep.subr.bf16.mxu1 %v9247_v17  ;;  %7758 = vmatprep.mubr.bf16.mxu0 %v7007_v43  ;;  %v1687_v18 = vrot.slane %v1686_v19, 4  ;;  %v1696_v56 = vor.u32 %v1695_v42, %v1691_v53  ;;  %v7032_v58 = vrot.slane %v2421_v3, 11  ;;  %v2435_v8 = vshrl.u32 %v2241_v45, 16  ;;  %v2245_v43 = vld [vmem:[#allocation2 + $0xa0] sm:$0x8] }
 0x106   : > { %v2428_v60 = vrot.slane %v2426_v51, 7  ;;  %v2438_v37 = vshll.u32 %v2241_v45, 16  ;;  %7806 = vmatprep.mubr.bf16.mxu1 %v7063_v34  ;;  %v1704_v33 = vshrl.u32 %v1484_v49, 16  ;;  %v1707_v44 = vshll.u32 %v1484_v49, 16  ;;  %v2246_v19 = vld [vmem:[#allocation2 + $0xa4] sm:$0xf] }
 0x107   : > { %v1692_v2 = vsel %vm9165_vm11, %v1687_v18, %v1691_v53  ;;  %v1697_v15 = vrot.slane %v1696_v56, 4  ;;  %v2437_v23 = vrot.slane %v2435_v8, 7  ;;  %v1713_v4 = vshll.u32 %v1485_v21, 16  ;;  %v2247_v53 = vld [vmem:[#allocation2 + $0xa8] sm:$0xf] }
 0x108   : > { %v2431_v63 = vor.u32 %v2429_v10, %v2428_v60  ;;  %v2433_v0 = vrot.slane %v2428_v60, 4  ;;  %v1706_v38 = vrot.slane %v1704_v33, 4  ;;  %v1709_v36 = vrot.slane %v1707_v44, 5 }
 0x109   : > { %v1702_v59 = vsel %vm9165_vm11, %v1697_v15, %v1701_v50  ;;  %v1717_v6 = vshrl.u32 %v1485_v21, 16  ;;  %v2440_v14 = vor.u32 %v2438_v37, %v2437_v23  ;;  %v1715_v48 = vrot.slane %v1713_v4, 5  ;;  %v1490_v15 = vld [vmem:[#allocation2 + $0xa4] sm:$0xf] }
 0x10a   : > { %v7008_v55 = vcombine.low %v1692_v2, %v1702_v59  ;;  %v2432_v12 = vsel %vm8864_vm8, %v7032_v58, %v2431_v63  ;;  %v1710_v35 = vor.u32 %v1709_v36, %v1706_v38  ;;  %v1723_v47 = vshll.u32 %v1486_v1, 16 }
 0x10b   : > { %v1719_v39 = vrot.slane %v1717_v6, 4  ;;  %v2443_v11 = vshrl.u32 %v2242_v5, 16  ;;  %v2441_v13 = vsel %vm8864_vm8, %v2433_v0, %v2440_v14  ;;  %v2448_v16 = vshrl.u32 %v2243_v7, 16  ;;  %v1491_v0 = vld [vmem:[#allocation2 + $0xa8] sm:$0xf] }
 0x10c   : > { %7759 = vmatmul.mubr.bf16.gmra.mxu0 %v7008_v55  ;;  %v2451_v25 = vshll.u32 %v2243_v7, 16  ;;  %v2457_v54 = vshrl.u32 %v2244_v29, 16  ;;  %v7064_v62 = vcombine.low %v2432_v12, %v2441_v13  ;;  %v1711_v20 = vrot.slane %v1710_v35, 4 }
 0x10d   : > { %v1720_v52 = vor.u32 %v1719_v39, %v1715_v48  ;;  %v1725_v30 = vrot.slane %v1723_v47, 5  ;;  %v7033_v61 = vrot.slane %v2443_v11, 11  ;;  %v2450_v32 = vrot.slane %v2448_v16, 7  ;;  %v2248_v39 = vld [vmem:[#allocation2 + $0xb0] sm:$0x8] }
 0x10e   : > { %v2459_v26 = vrot.slane %v2457_v54, 7  ;;  %v2460_v27 = vshll.u32 %v2244_v29, 16  ;;  %7807 = vmatmul.mubr.bf16.gmra.mxu1 %v7064_v62  ;;  %v1716_v40 = vsel %vm9165_vm11, %v1711_v20, %v1715_v48  ;;  %v1728_v45 = vshrl.u32 %v1487_v28, 16  ;;  %v1492_v29 = vld [vmem:[#allocation2 + $0xac] sm:$0x1] }
 0x10f   : > { %v1721_v41 = vrot.slane %v1720_v52, 4  ;;  %v1731_v49 = vshll.u32 %v1487_v28, 16  ;;  %v2453_v42 = vor.u32 %v2451_v25, %v2450_v32  ;;  %v2455_v22 = vrot.slane %v2450_v32, 4  ;;  %v2249_v25 = vld [vmem:[#allocation2 + $0xb4] sm:$0xf] }
 0x110   : > { %v2462_v50 = vor.u32 %v2460_v27, %v2459_v26  ;;  %v1737_v3 = vshll.u32 %v1488_v31, 16  ;;  %v1730_v34 = vrot.slane %v1728_v45, 4  ;;  %v1741_v56 = vshrl.u32 %v1488_v31, 16  ;;  %v2250_v54 = vld [vmem:[#allocation2 + $0xb8] sm:$0xf] }
 0x111   : > { %v1726_v51 = vsel %vm9165_vm11, %v1721_v41, %v1725_v30  ;;  %v1733_v18 = vrot.slane %v1731_v49, 5  ;;  %v2454_v21 = vsel %vm8864_vm8, %v7033_v61, %v2453_v42  ;;  %v1747_v2 = vshll.u32 %v1489_v57, 16  ;;  %v1493_v30 = vld [vmem:[#allocation2 + $0xb4] sm:$0xf]  ;;  %v1494_v27 = vld [vmem:[#allocation2 + $0xb8] sm:$0xf] }
 0x112   : > { %v7009_v10 = vcombine.low %v1716_v40, %v1726_v51  ;;  %v2463_v58 = vsel %vm8864_vm8, %v2455_v22, %v2462_v50  ;;  %v1739_v60 = vrot.slane %v1737_v3, 5  ;;  %v1743_v1 = vrot.slane %v1741_v56, 4 }
 0x113   : > { %v7065_v8 = vcombine.low %v2454_v21, %v2463_v58  ;;  %v1734_v37 = vor.u32 %v1733_v18, %v1730_v34  ;;  %v2465_v33 = vshrl.u32 %v2245_v43, 16  ;;  %v2470_v44 = vshrl.u32 %v2246_v19, 16  ;;  %v1495_v18 = vld [vmem:[#allocation2 + $0xbc] sm:$0x1] }
 0x114   : > { %7762 = vmatprep.mubr.bf16.mxu0 %v7009_v10  ;;  %v2473_v5 = vshll.u32 %v2246_v19, 16  ;;  %v2479_v63 = vshrl.u32 %v2247_v53, 16  ;;  %v1744_v4 = vor.u32 %v1743_v1, %v1739_v60  ;;  %v1749_v7 = vrot.slane %v1747_v2, 5 }
 0x115   : > { %7810 = vmatprep.mubr.bf16.mxu1 %v7065_v8  ;;  %v1735_v23 = vrot.slane %v1734_v37, 4  ;;  %v2482_v59 = vshll.u32 %v2247_v53, 16  ;;  %v7034_v38 = vrot.slane %v2465_v33, 11  ;;  %v2472_v36 = vrot.slane %v2470_v44, 7  ;;  %v2251_v37 = vld [vmem:[#allocation2 + $0xc0] sm:$0x8] }
 0x116   : > { %v2481_v6 = vrot.slane %v2479_v63, 7  ;;  %v1752_v55 = vshrl.u32 %v1490_v15, 16  ;;  %v1745_v14 = vrot.slane %v1744_v4, 4  ;;  %v1755_v48 = vshll.u32 %v1490_v15, 16  ;;  %v2252_v44 = vld [vmem:[#allocation2 + $0xc4] sm:$0xf] }
 0x117   : > { %v1740_v12 = vsel %vm9165_vm11, %v1735_v23, %v1739_v60  ;;  %v1761_v35 = vshll.u32 %v1491_v0, 16  ;;  %v2475_v47 = vor.u32 %v2473_v5, %v2472_v36  ;;  %v2477_v11 = vrot.slane %v2472_v36, 4  ;;  %v2253_v5 = vld [vmem:[#allocation2 + $0xc8] sm:$0xf] }
 0x118   : > { %v2484_v13 = vor.u32 %v2482_v59, %v2481_v6  ;;  %v1754_v16 = vrot.slane %v1752_v55, 4  ;;  %v1750_v28 = vsel %vm9165_vm11, %v1745_v14, %v1749_v7  ;;  %v1757_v62 = vrot.slane %v1755_v48, 5  ;;  %v1496_v7 = vld [vmem:[#allocation2 + $0xc4] sm:$0xf] }
 0x119   : > { %v1763_v20 = vrot.slane %v1761_v35, 5  ;;  %v1765_v52 = vshrl.u32 %v1491_v0, 16  ;;  %v7010_v31 = vcombine.low %v1740_v12, %v1750_v28  ;;  %v2476_v61 = vsel %vm8864_vm8, %v7034_v38, %v2475_v47 }
 0x11a   : > { %v2485_v32 = vsel %vm8864_vm8, %v2477_v11, %v2484_v13  ;;  %v1771_v26 = vshll.u32 %v1492_v29, 16  ;;  %v1758_v40 = vor.u32 %v1757_v62, %v1754_v16  ;;  %v2487_v45 = vshrl.u32 %v2248_v39, 16  ;;  %v1497_v11 = vld [vmem:[#allocation2 + $0xc8] sm:$0xf] }
 0x11b   : > { %v7066_v57 = vcombine.low %v2476_v61, %v2485_v32  ;;  %v1767_v41 = vrot.slane %v1765_v52, 4  ;;  %7763 = vmatmul.mubr.bf16.gmra.mxu0 %v7010_v31  ;;  %v2492_v43 = vshrl.u32 %v2249_v25, 16  ;;  %v2495_v19 = vshll.u32 %v2249_v25, 16 }
 0x11c   : > { %v1773_v49 = vrot.slane %v1771_v26, 5  ;;  %v2501_v53 = vshrl.u32 %v2250_v54, 16  ;;  %v1759_v42 = vrot.slane %v1758_v40, 4  ;;  %v7035_v50 = vrot.slane %v2487_v45, 11 }
 0x11d   : > { %7811 = vmatmul.mubr.bf16.gmra.mxu1 %v7066_v57  ;;  %v1768_v22 = vor.u32 %v1767_v41, %v1763_v20  ;;  %v2504_v3 = vshll.u32 %v2250_v54, 16  ;;  %v2494_v51 = vrot.slane %v2492_v43, 7  ;;  %v1776_v56 = vshrl.u32 %v1493_v30, 16  ;;  %v2255_v57 = vld [vmem:[#allocation2 + $0xd4] sm:$0xf] }
 0x11e   : > { %v2503_v34 = vrot.slane %v2501_v53, 7  ;;  %v1779_v10 = vshll.u32 %v1493_v30, 16  ;;  %v1764_v21 = vsel %vm9165_vm11, %v1759_v42, %v1763_v20  ;;  %v1785_v60 = vshll.u32 %v1494_v27, 16  ;;  %v1498_v20 = vld [vmem:[#allocation2 + $0xcc] sm:$0x1] }
 0x11f   : > { %v1769_v58 = vrot.slane %v1768_v22, 4  ;;  %v1789_v8 = vshrl.u32 %v1494_v27, 16  ;;  %v2497_v1 = vor.u32 %v2495_v19, %v2494_v51  ;;  %v2499_v2 = vrot.slane %v2494_v51, 4  ;;  %v2254_v27 = vld [vmem:[#allocation2 + $0xd0] sm:$0x8] }
 0x120   : > { %v2506_v15 = vor.u32 %v2504_v3, %v2503_v34  ;;  %v1778_v33 = vrot.slane %v1776_v56, 4  ;;  %v1781_v0 = vrot.slane %v1779_v10, 5  ;;  %v1787_v23 = vrot.slane %v1785_v60, 5  ;;  %v2256_v43 = vld [vmem:[#allocation2 + $0xd8] sm:$0xf] }
 0x121   : > { %v1774_v63 = vsel %vm9165_vm11, %v1769_v58, %v1773_v49  ;;  %v1791_v4 = vrot.slane %v1789_v8, 4  ;;  %v2498_v38 = vsel %vm8864_vm8, %v7035_v50, %v2497_v1  ;;  %v1795_v6 = vshll.u32 %v1495_v18, 16  ;;  %v1499_v58 = vld [vmem:[#allocation2 + $0xd4] sm:$0xf]  ;;  %v1500_v60 = vld [vmem:[#allocation2 + $0xd8] sm:$0xf] }
 0x122   : > { %v7011_v59 = vcombine.low %v1764_v21, %v1774_v63  ;;  %v2507_v36 = vsel %vm8864_vm8, %v2499_v2, %v2506_v15  ;;  %v1782_v55 = vor.u32 %v1781_v0, %v1778_v33  ;;  %v2509_v14 = vshrl.u32 %v2251_v37, 16  ;;  %v1501_v15 = vld [vmem:[#allocation2 + $0xdc] sm:$0x1]  ;;  %v2257_v0 = vld [vmem:[#allocation2 + $0xe0] sm:$0x8] }
 0x123   : > { %v7067_v29 = vcombine.low %v2498_v38, %v2507_v36  ;;  %v1792_v12 = vor.u32 %v1791_v4, %v1787_v23  ;;  %v1797_v48 = vrot.slane %v1795_v6, 5  ;;  %v2514_v35 = vshrl.u32 %v2252_v44, 16  ;;  %v2258_v38 = vld [vmem:[#allocation2 + $0xe4] sm:$0xf] }
 0x124   : > { %7766 = vmatprep.mubr.bf16.mxu0 %v7011_v59  ;;  %v2517_v39 = vshll.u32 %v2252_v44, 16  ;;  %v2523_v47 = vshrl.u32 %v2253_v5, 16  ;;  %v1783_v13 = vrot.slane %v1782_v55, 4  ;;  %v7036_v25 = vrot.slane %v2509_v14, 11 }
 0x125   : > { %7814 = vmatprep.mubr.bf16.mxu1 %v7067_v29  ;;  %v1793_v16 = vrot.slane %v1792_v12, 4  ;;  %v2526_v54 = vshll.u32 %v2253_v5, 16  ;;  %v2516_v28 = vrot.slane %v2514_v35, 7  ;;  %v1800_v52 = vshrl.u32 %v1496_v7, 16  ;;  %v2259_v12 = vld [vmem:[#allocation2 + $0xe8] sm:$0xf] }
 0x126   : > { %v2525_v62 = vrot.slane %v2523_v47, 7  ;;  %v1803_v30 = vshll.u32 %v1496_v7, 16  ;;  %v1788_v31 = vsel %vm9165_vm11, %v1783_v13, %v1787_v23  ;;  %v1809_v32 = vshll.u32 %v1497_v11, 16 }
 0x127   : > { %v1798_v61 = vsel %vm9165_vm11, %v1793_v16, %v1797_v48  ;;  %v1813_v26 = vshrl.u32 %v1497_v11, 16  ;;  %v2519_v41 = vor.u32 %v2517_v39, %v2516_v28  ;;  %v2521_v45 = vrot.slane %v2516_v28, 4 }
 0x128   : > { %v7012_v40 = vcombine.low %v1788_v31, %v1798_v61  ;;  %v2528_v49 = vor.u32 %v2526_v54, %v2525_v62  ;;  %v1802_v19 = vrot.slane %v1800_v52, 4  ;;  %v1805_v53 = vrot.slane %v1803_v30, 5 }
 0x129   : > { %v1811_v42 = vrot.slane %v1809_v32, 5  ;;  %v1815_v22 = vrot.slane %v1813_v26, 4  ;;  %v2520_v50 = vsel %vm8864_vm8, %v7036_v25, %v2519_v41  ;;  %v1819_v51 = vshll.u32 %v1498_v20, 16  ;;  %v1502_v20 = vld [vmem:[#allocation2 + $0xe4] sm:$0xf] }
 0x12a   : > { %7767 = vmatmul.mubr.bf16.gmra.mxu0 %v7012_v40  ;;  %v2529_v3 = vsel %vm8864_vm8, %v2521_v45, %v2528_v49  ;;  %v2531_v34 = vshrl.u32 %v2254_v27, 16  ;;  %v1806_v56 = vor.u32 %v1805_v53, %v1802_v19  ;;  %v2536_v21 = vshrl.u32 %v2255_v57, 16  ;;  %v1503_v32 = vld [vmem:[#allocation2 + $0xe8] sm:$0xf]  ;;  %v1504_v41 = vld [vmem:[#allocation2 + $0xec] sm:$0x1] }
 0x12b   : > { %v7068_v18 = vcombine.low %v2520_v50, %v2529_v3  ;;  %v1816_v10 = vor.u32 %v1815_v22, %v1811_v42  ;;  %v1821_v8 = vrot.slane %v1819_v51, 5  ;;  %v2539_v1 = vshll.u32 %v2255_v57, 16  ;;  %v2260_v53 = vld [vmem:[#allocation2 + $0xf0] sm:$0x8]  ;;  %v2261_v51 = vld [vmem:[#allocation2 + $0xf4] sm:$0xf] }
 0x12c   : > { %v7037_v37 = vrot.slane %v2531_v34, 11  ;;  %v2545_v2 = vshrl.u32 %v2256_v43, 16  ;;  %v1807_v33 = vrot.slane %v1806_v56, 4  ;;  %v2538_v5 = vrot.slane %v2536_v21, 7 }
 0x12d   : > { %7815 = vmatmul.mubr.bf16.gmra.mxu1 %v7068_v18  ;;  %v1817_v44 = vrot.slane %v1816_v10, 4  ;;  %v2548_v63 = vshll.u32 %v2256_v43, 16  ;;  %v1824_v4 = vshrl.u32 %v1499_v58, 16  ;;  %v1827_v7 = vshll.u32 %v1499_v58, 16 }
 0x12e   : > { %v2547_v23 = vrot.slane %v2545_v2, 7  ;;  %v1833_v59 = vshll.u32 %v1500_v60, 16  ;;  %v1812_v36 = vsel %vm9165_vm11, %v1807_v33, %v1811_v42  ;;  %v2541_v29 = vor.u32 %v2539_v1, %v2538_v5 }
 0x12f   : > { %v1822_v6 = vsel %vm9165_vm11, %v1817_v44, %v1821_v8  ;;  %v2543_v55 = vrot.slane %v2538_v5, 4  ;;  %v1826_v35 = vrot.slane %v1824_v4, 4  ;;  %v1829_v39 = vrot.slane %v1827_v7, 5 }
 0x130   : > { %v7013_v14 = vcombine.low %v1812_v36, %v1822_v6  ;;  %v2550_v48 = vor.u32 %v2548_v63, %v2547_v23  ;;  %v2542_v47 = vsel %vm8864_vm8, %v7037_v37, %v2541_v29  ;;  %v1835_v11 = vrot.slane %v1833_v59, 5  ;;  %v1505_v23 = vld [vmem:[#allocation2 + $0xf4] sm:$0xf]  ;;  %v1506_v36 = vld [vmem:[#allocation2 + $0xf8] sm:$0xf] }
 0x131   : > { %v1837_v13 = vshrl.u32 %v1500_v60, 16  ;;  %v1843_v16 = vshll.u32 %v1501_v15, 16  ;;  %v1830_v54 = vor.u32 %v1829_v39, %v1826_v35  ;;  %v2553_v28 = vshrl.u32 %v2257_v0, 16  ;;  %v9313_v15 = vld [vmem:[#allocation2 + $0xf8] sm:$0xf] }
 0x132   : > { %7770 = vmatprep.mubr.bf16.mxu0 %v7013_v14  ;;  %v2551_v25 = vsel %vm8864_vm8, %v2543_v55, %v2550_v48  ;;  %v2558_v62 = vshrl.u32 %v2258_v38, 16  ;;  %v2561_v61 = vshll.u32 %v2258_v38, 16  ;;  %v2567_v40 = vshrl.u32 %v2259_v12, 16  ;;  %v1507_v14 = vld [vmem:[#allocation2 + $0xfc] sm:$0x1] }
 0x133   : > { %v7069_v52 = vcombine.low %v2542_v47, %v2551_v25  ;;  %v1839_v30 = vrot.slane %v1837_v13, 4  ;;  %v1845_v31 = vrot.slane %v1843_v16, 5  ;;  %v1831_v26 = vrot.slane %v1830_v54, 4  ;;  %v9321_v13 = vld [vmem:[#allocation2 + $0x104] sm:$0xf] }
 0x134   : > { %v7038_v27 = vrot.slane %v2553_v28, 11  ;;  %v2560_v57 = vrot.slane %v2558_v62, 7  ;;  %v2570_v49 = vshll.u32 %v2259_v12, 16  ;;  %v1848_v43 = vshrl.u32 %v1502_v20, 16 }
 0x135   : > { %7818 = vmatprep.mubr.bf16.mxu1 %v7069_v52  ;;  %v1840_v45 = vor.u32 %v1839_v30, %v1835_v11  ;;  %v1851_v19 = vshll.u32 %v1502_v20, 16  ;;  %v1836_v42 = vsel %vm9165_vm11, %v1831_v26, %v1835_v11  ;;  %v2569_v3 = vrot.slane %v2567_v40, 7  ;;  %v2263_v11 = vld [vmem:[#allocation2 + $0x100] sm:$0x8] }
 0x136   : > { %v2563_v22 = vor.u32 %v2561_v61, %v2560_v57  ;;  %v2565_v50 = vrot.slane %v2560_v57, 4  ;;  %v1850_v18 = vrot.slane %v1848_v43, 4  ;;  %v1857_v10 = vshll.u32 %v1503_v32, 16 }
 0x137   : > { %v1841_v34 = vrot.slane %v1840_v45, 4  ;;  %v1853_v56 = vrot.slane %v1851_v19, 5  ;;  %v2572_v58 = vor.u32 %v2570_v49, %v2569_v3  ;;  %v1861_v60 = vshrl.u32 %v1503_v32, 16  ;;  %v9327_v45 = vld [vmem:[#allocation2 + $0x108] sm:$0xf] }
 0x138   : > { %v2564_v21 = vsel %vm8864_vm8, %v7038_v27, %v2563_v22  ;;  %v1867_v8 = vshll.u32 %v1504_v41, 16  ;;  %v1859_v2 = vrot.slane %v1857_v10, 5  ;;  %v2575_v33 = vshrl.u32 %v2260_v53, 16  ;;  %v3295_v22 = vld [vmem:[#allocation2 + $0x18] sm:$0xf] }
 0x139   : > { %v1846_v37 = vsel %vm9165_vm11, %v1841_v34, %v1845_v31  ;;  %v1854_v1 = vor.u32 %v1853_v56, %v1850_v18  ;;  %v2573_v5 = vsel %vm8864_vm8, %v2565_v50, %v2572_v58  ;;  %v1863_v63 = vrot.slane %v1861_v60, 4  ;;  %v3296_v18 = vld [vmem:[#allocation2 + $0x1c] sm:$0x1] }
 0x13a   : > { %v7014_v44 = vcombine.low %v1836_v42, %v1846_v37  ;;  %v1869_v0 = vrot.slane %v1867_v8, 5  ;;  %v7070_v4 = vcombine.low %v2564_v21, %v2573_v5  ;;  %v7039_v59 = vrot.slane %v2575_v33, 11  ;;  %v3294_v42 = vld [vmem:[#allocation2 + $0x14] sm:$0xf] }
 0x13b   : > { %v1855_v7 = vrot.slane %v1854_v1, 4  ;;  %v2580_v38 = vshrl.u32 %v2261_v51, 16  ;;  %v1864_v6 = vor.u32 %v1863_v63, %v1859_v2  ;;  %v2583_v29 = vshll.u32 %v2261_v51, 16  ;;  %v8348_v37 = vld [vmem:[#allocation2 + $0x14] sm:$0xf] }
 0x13c   : > { %7771 = vmatmul.mubr.bf16.gmra.mxu0 %v7014_v44  ;;  %v2589_v55 = vshrl.u32 %v9313_v15, 16  ;;  %v2592_v12 = vshll.u32 %v9313_v15, 16  ;;  %7819 = vmatmul.mubr.bf16.gmra.mxu1 %v7070_v4  ;;  %v1872_v39 = vshrl.u32 %v1505_v23, 16  ;;  %v1875_v47 = vshll.u32 %v1505_v23, 16  ;;  %v8349_v1 = vld [vmem:[#allocation2 + $0x18] sm:$0xf] }
 0x13d   : > { %v1860_v48 = vsel %vm9165_vm11, %v1855_v7, %v1859_v2  ;;  %v2582_v35 = vrot.slane %v2580_v38, 7  ;;  %v1865_v16 = vrot.slane %v1864_v6, 4  ;;  %v1881_v54 = vshll.u32 %v1506_v36, 16  ;;  %v3297_v23 = vld [vmem:[#allocation2 + $0x24] sm:$0xf] }
 0x13e   : > { %v2591_v25 = vrot.slane %v2589_v55, 7  ;;  %v1885_v28 = vshrl.u32 %v1506_v36, 16  ;;  %v1874_v52 = vrot.slane %v1872_v39, 4  ;;  %v1877_v30 = vrot.slane %v1875_v47, 5  ;;  %v8350_v39 = vld [vmem:[#allocation2 + $0x24] sm:$0xf] }
 0x13f   : > { %v2585_v62 = vor.u32 %v2583_v29, %v2582_v35  ;;  %v2587_v20 = vrot.slane %v2582_v35, 4  ;;  %v1870_v31 = vsel %vm9165_vm11, %v1865_v16, %v1869_v0  ;;  %v1883_v32 = vrot.slane %v1881_v54, 5  ;;  %v8351_v47 = vld [vmem:[#allocation2 + $0x28] sm:$0xf] }
 0x140   : > { %v2594_v61 = vor.u32 %v2592_v12, %v2591_v25  ;;  %v1887_v26 = vrot.slane %v1885_v28, 4  ;;  %v7015_v27 = vcombine.low %v1860_v48, %v1870_v31  ;;  %v1878_v40 = vor.u32 %v1877_v30, %v1874_v52  ;;  %v3298_v12 = vld [vmem:[#allocation2 + $0x28] sm:$0xf]  ;;  %v3300_v25 = vld [vmem:[#allocation2 + $0x34] sm:$0xf] }
 0x141   : > { %v2586_v57 = vsel %vm8864_vm8, %v7039_v59, %v2585_v62  ;;  %v1891_v41 = vshll.u32 %v1507_v14, 16  ;;  %v2597_v19 = vshrl.u32 %v2263_v11, 16  ;;  %v2602_v53 = vshrl.u32 %v9321_v13, 16  ;;  %v3299_v14 = vld [vmem:[#allocation2 + $0x2c] sm:$0x1] }
 0x142   : > { %v2595_v49 = vsel %vm8864_vm8, %v2587_v20, %v2594_v61  ;;  %v1888_v43 = vor.u32 %v1887_v26, %v1883_v32  ;;  %7774 = vmatprep.mubr.bf16.mxu0 %v7015_v27  ;;  %v1879_v3 = vrot.slane %v1878_v40, 4  ;;  %v2605_v34 = vshll.u32 %v9321_v13, 16  ;;  %v3301_v52 = vld [vmem:[#allocation2 + $0x38] sm:$0xf] }
 0x143   : > { %v7071_v50 = vcombine.low %v2586_v57, %v2595_v49  ;;  %v1893_v51 = vrot.slane %v1891_v41, 5  ;;  %v7040_v10 = vrot.slane %v2597_v19, 11  ;;  %v2604_v21 = vrot.slane %v2602_v53, 7  ;;  %v8353_v19 = vld [vmem:[#allocation2 + $0x38] sm:$0xf] }
 0x144   : > { %v1889_v56 = vrot.slane %v1888_v43, 4  ;;  %v2611_v58 = vshrl.u32 %v9327_v45, 16  ;;  %v1884_v60 = vsel %vm9165_vm11, %v1879_v3, %v1883_v32  ;;  %v2614_v8 = vshll.u32 %v9327_v45, 16  ;;  %v8352_v43 = vld [vmem:[#allocation2 + $0x34] sm:$0xf] }
 0x145   : > { %7822 = vmatprep.mubr.bf16.mxu1 %v7071_v50  ;;  %v9337_v2 = vcombine.low %v8348_v37, %v8349_v1  ;;  %v3343_v33 = vshrl.u32 %v3294_v42, 16  ;;  %v2607_v5 = vor.u32 %v2605_v34, %v2604_v21  ;;  %v2609_v63 = vrot.slane %v2604_v21, 4  ;;  %v3302_v34 = vld [vmem:[#allocation2 + $0x3c] sm:$0x1] }
 0x146   : > { %v1894_v44 = vsel %vm9165_vm11, %v1889_v56, %v1893_v51  ;;  %v2613_v0 = vrot.slane %v2611_v58, 7  ;;  %v3346_v59 = vshll.u32 %v3294_v42, 16  ;;  %v3352_v38 = vshll.u32 %v3295_v22, 16  ;;  %v8290_v58 = vld [vmem:[%s8848_s27 + $0x1b0] sm:$0xff]  }
 0x147   : > { %10854 = vst [vmem:[#allocation16_spill] sm:$0xff] %v9337_v2  ;;  %v7016_v4 = vcombine.low %v1884_v60, %v1894_v44  ;;  %v3345_v7 = vrot.slane %v3343_v33, 4  ;;  %v2608_v36 = vsel %vm8864_vm8, %v7040_v10, %v2607_v5  ;;  %v3356_v29 = vshrl.u32 %v3295_v22, 16  ;;  %v3303_v33 = vld [vmem:[#allocation2 + $0x44] sm:$0xf] }
 0x148   : > { %v2616_v6 = vor.u32 %v2614_v8, %v2613_v0  ;;  %v3362_v55 = vshll.u32 %v3296_v18, 16  ;;  %v3348_v48 = vrot.slane %v3346_v59, 5  ;;  %v3354_v35 = vrot.slane %v3352_v38, 5  ;;  %v3304_v44 = vld [vmem:[#allocation2 + $0x48] sm:$0xf] }
 0x149   : > { %7775 = vmatmul.mubr.bf16.gmra.mxu0 %v7016_v4  ;;  %v9343_v11 = vcombine.low %v8350_v39, %v8351_v47  ;;  %v3367_v16 = vshrl.u32 %v3297_v23, 16  ;;  %v3358_v28 = vrot.slane %v3356_v29, 4  ;;  %v3370_v20 = vshll.u32 %v3297_v23, 16  ;;  %v3305_v4 = vld [vmem:[#allocation2 + $0x4c] sm:$0x1] }
 0x14a   : > { %v2617_v54 = vsel %vm8864_vm8, %v2609_v63, %v2616_v6  ;;  %7842 = vmatprep.mubr.bf16.mxu0 %v9337_v2  ;;  %v3364_v62 = vrot.slane %v3362_v55, 5  ;;  %v3349_v31 = vor.u32 %v3348_v48, %v3345_v7  ;;  %v3376_v32 = vshll.u32 %v3298_v12, 16  ;;  %v8355_v6 = vld [vmem:[#allocation2 + $0x48] sm:$0xf]  ;;  %v3306_v55 = vld [vmem:[#allocation2 + $0x54] sm:$0xf] }
 0x14b   : > { %10855 = vst [vmem:[#allocation17_spill] sm:$0xff] %v9343_v11  ;;  %v7072_v30 = vcombine.low %v2608_v36, %v2617_v54  ;;  %v3369_v61 = vrot.slane %v3367_v16, 4  ;;  %v3359_v26 = vor.u32 %v3358_v28, %v3354_v35  ;;  %v3372_v27 = vrot.slane %v3370_v20, 5  ;;  %v8354_v36 = vld [vmem:[#allocation2 + $0x44] sm:$0xf]  ;;  %v8294_v39 = vld [vmem:[%s8848_s27 + $0x1a8] sm:$0xff]  }
 0x14c   : > { %v3380_v57 = vshrl.u32 %v3298_v12, 16  ;;  %v3386_v40 = vshll.u32 %v3299_v14, 16  ;;  %v3350_v41 = vrot.slane %v3349_v31, 4  ;;  %v3378_v49 = vrot.slane %v3376_v32, 5 }
 0x14d   : > { %7823 = vmatmul.mubr.bf16.gmra.mxu1 %v7072_v30  ;;  %v9348_v53 = vcombine.low %v8352_v43, %v8353_v19  ;;  %v3391_v42 = vshrl.u32 %v3300_v25, 16  ;;  %v3360_v22 = vrot.slane %v3359_v26, 4  ;;  %v3373_v50 = vor.u32 %v3372_v27, %v3369_v61  ;;  %v3307_v26 = vld [vmem:[#allocation2 + $0x58] sm:$0xf]  ;;  %v3308_v43 = vld [vmem:[#allocation2 + $0x5c] sm:$0x1] }
 0x14e   : > { %v3382_v3 = vrot.slane %v3380_v57, 4  ;;  %v3388_v51 = vrot.slane %v3386_v40, 5  ;;  %v3355_v18 = vsel %vm9165_vm11, %v3350_v41, %v3354_v35  ;;  %v3394_v10 = vshll.u32 %v3300_v25, 16  ;;  %v8356_v40 = vld [vmem:[#allocation2 + $0x54] sm:$0xf] }
 0x14f   : > { %10856 = vst [vmem:[#allocation18_spill] sm:$0xff] %v9348_v53  ;;  %v3393_v56 = vrot.slane %v3391_v42, 4  ;;  %v3400_v21 = vshll.u32 %v3301_v52, 16  ;;  %v3365_v60 = vsel %vm9165_vm11, %v3360_v22, %v3364_v62  ;;  %v3374_v8 = vrot.slane %v3373_v50, 4  ;;  %v8357_v41 = vld [vmem:[#allocation2 + $0x58] sm:$0xf] }
 0x150   : > { %v3383_v37 = vor.u32 %v3382_v3, %v3378_v49  ;;  %v3404_v1 = vshrl.u32 %v3301_v52, 16  ;;  %v7137_v5 = vcombine.low %v3355_v18, %v3365_v60  ;;  %v3396_v63 = vrot.slane %v3394_v10, 5  ;;  %v8291_v52 = vld [vmem:[%s8848_s27 + $0x1f0] sm:$0xff]   ;;  %v8295_v42 = vld [vmem:[%s8848_s27 + $0x1e8] sm:$0xff]   ;;  %v8298_v22 = vld [vmem:[%s8848_s27 + $0x1a0] sm:$0xff]  }
 0x151   : > { %7843 = vmatmul.mubr.bf16.vlgmr.msra.gmra.mxu0 %v9343_v11  ;;  %v3402_v0 = vrot.slane %v3400_v21, 5  ;;  %v3410_v23 = vshll.u32 %v3302_v34, 16  ;;  %v3379_v7 = vsel %vm9165_vm11, %v3374_v8, %v3378_v49  ;;  %v9360_v29 = vcombine.low %v8354_v36, %v8355_v6  ;;  %v3309_v18 = vld [vmem:[#allocation2 + $0x64] sm:$0xf]  ;;  %v3311_v8 = vld [vmem:[#allocation2 + $0x6c] sm:$0x1] }
 0x152   : > { %v3384_v59 = vrot.slane %v3383_v37, 4  ;;  %7923 = vmatpush3.bf16.msra.mxu0 %v9244_v9  ;;  %7846 = vmatprep.mubr.bf16.mxu0 %v9348_v53  ;;  %v3406_v38 = vrot.slane %v3404_v1, 4  ;;  %v3397_v12 = vor.u32 %v3396_v63, %v3393_v56  ;;  %v3415_v48 = vshrl.u32 %v3303_v33, 16  ;;  %v3310_v56 = vld [vmem:[#allocation2 + $0x68] sm:$0xf]  ;;  %v8302_v37 = vld [vmem:[%s8848_s27 + $0x198] sm:$0xff]  }
 0x153   : > { %10857 = vst [vmem:[#allocation19_spill] sm:$0xff] %v9360_v29  ;;  %7890 = vmatprep.mubr.bf16.mxu1 %v7137_v5  ;;  %v3412_v14 = vrot.slane %v3410_v23, 5  ;;  %v3418_v35 = vshll.u32 %v3303_v33, 16  ;;  %7924 = vmatprep.subr.bf16.mxu0 %v8290_v58  ;;  %v3424_v16 = vshll.u32 %v3304_v44, 16  ;;  %v3428_v25 = vshrl.u32 %v3304_v44, 16 }
 0x154   : > { %v3389_v47 = vsel %vm9165_vm11, %v3384_v59, %v3388_v51  ;;  %v3407_v9 = vor.u32 %v3406_v38, %v3402_v0  ;;  %v3398_v28 = vrot.slane %v3397_v12, 4  ;;  %v3417_v62 = vrot.slane %v3415_v48, 4  ;;  %v8359_v23 = vld [vmem:[#allocation2 + $0x68] sm:$0xf] }
 0x155   : > { %v7138_v54 = vcombine.low %v3379_v7, %v3389_v47  ;;  %v3420_v20 = vrot.slane %v3418_v35, 5  ;;  %v3426_v31 = vrot.slane %v3424_v16, 5  ;;  %v3430_v61 = vrot.slane %v3428_v25, 4 }
 0x156   : > { %v3408_v30 = vrot.slane %v3407_v9, 4  ;;  %v3434_v32 = vshll.u32 %v3305_v4, 16  ;;  %7925 = vmatpush3.bf16.msra.mxu0 %v8290_v58  ;;  %v3403_v27 = vsel %vm9165_vm11, %v3398_v28, %v3402_v0  ;;  %v9368_v49 = vcombine.low %v8356_v40, %v8357_v41  ;;  %v8358_v0 = vld [vmem:[#allocation2 + $0x64] sm:$0xf] }
 0x157   : > { %7891 = vmatmul.mubr.bf16.vlgmr.msra.gmra.mxu1 %v7138_v54  ;;  %v3421_v57 = vor.u32 %v3420_v20, %v3417_v62  ;;  %v3439_v19 = vshrl.u32 %v3306_v55, 16  ;;  %7926 = vmatprep.subr.bf16.mxu0 %v8294_v39  ;;  %v3431_v3 = vor.u32 %v3430_v61, %v3426_v31  ;;  %v3442_v34 = vshll.u32 %v3306_v55, 16  ;;  %v3312_v55 = vld [vmem:[#allocation2 + $0x74] sm:$0xf]  ;;  %v3313_v54 = vld [vmem:[#allocation2 + $0x78] sm:$0xf] }
 0x158   : > { %10858 = vst [vmem:[#allocation20_spill] sm:$0xff] %v9368_v49  ;;  %7971 = vmatpush3.bf16.msra.mxu1 %v9247_v17  ;;  %v3413_v50 = vsel %vm9165_vm11, %v3408_v30, %v3412_v14  ;;  %v3436_v51 = vrot.slane %v3434_v32, 5  ;;  %v3448_v60 = vshll.u32 %v3307_v26, 16  ;;  %v3452_v33 = vshrl.u32 %v3307_v26, 16  ;;  %v8360_v20 = vld [vmem:[#allocation2 + $0x74] sm:$0xf] }
 0x159   : > { %v7139_v10 = vcombine.low %v3403_v27, %v3413_v50  ;;  %7847 = vmatmul.mubr.bf16.gmra.mxu0 %v9360_v29  ;;  %v3422_v21 = vrot.slane %v3421_v57, 4  ;;  %7972 = vmatprep.subr.bf16.mxu1 %v8291_v52  ;;  %v3441_v58 = vrot.slane %v3439_v19, 4  ;;  %v3432_v1 = vrot.slane %v3431_v3, 4  ;;  %v8306_v32 = vld [vmem:[%s8848_s27 + $0x190] sm:$0xff]   ;;  %v3315_v41 = vld [vmem:[#allocation2 + $0x84] sm:$0xf] }
 0x15a   : > { %7850 = vmatprep.mubr.bf16.mxu0 %v9368_v49  ;;  %v3444_v17 = vrot.slane %v3442_v34, 5  ;;  %v3458_v44 = vshll.u32 %v3308_v43, 16  ;;  %7927 = vmatpush3.bf16.msra.mxu0 %v8294_v39  ;;  %v3450_v63 = vrot.slane %v3448_v60, 5  ;;  %v9380_v4 = vcombine.low %v8358_v0, %v8359_v23  ;;  %v8299_v39 = vld [vmem:[%s8848_s27 + $0x1e0] sm:$0xff]   ;;  %v3316_v3 = vld [vmem:[#allocation2 + $0x88] sm:$0xf] }
 0x15b   : > { %7894 = vmatprep.mubr.bf16.mxu1 %v7139_v10  ;;  %v3427_v5 = vsel %vm9165_vm11, %v3422_v21, %v3426_v31  ;;  %v3463_v7 = vshrl.u32 %v3309_v18, 16  ;;  %7928 = vmatprep.subr.bf16.mxu0 %v8298_v22  ;;  %v3437_v59 = vsel %vm9165_vm11, %v3432_v1, %v3436_v51  ;;  %v3454_v36 = vrot.slane %v3452_v33, 4  ;;  %v3314_v31 = vld [vmem:[#allocation2 + $0x7c] sm:$0x1]  ;;  %v8310_v1 = vld [vmem:[%s8848_s27 + $0x188] sm:$0xff]  }
 0x15c   : > { %10859 = vst [vmem:[#allocation21_spill] sm:$0xff] %v9380_v4  ;;  %7973 = vmatpush3.bf16.msra.mxu1 %v8291_v52  ;;  %v3445_v38 = vor.u32 %v3444_v17, %v3441_v58  ;;  %v3460_v6 = vrot.slane %v3458_v44, 5  ;;  %v7140_v12 = vcombine.low %v3427_v5, %v3437_v59  ;;  %v3466_v48 = vshll.u32 %v3309_v18, 16  ;;  %v8361_v52 = vld [vmem:[#allocation2 + $0x78] sm:$0xf] }
 0x15d   : > { %v3465_v14 = vrot.slane %v3463_v7, 4  ;;  %v3472_v35 = vshll.u32 %v3310_v56, 16  ;;  %7974 = vmatprep.subr.bf16.mxu1 %v8295_v42  ;;  %v3455_v9 = vor.u32 %v3454_v36, %v3450_v63  ;;  %v3476_v16 = vshrl.u32 %v3310_v56, 16  ;;  %v8303_v51 = vld [vmem:[%s8848_s27 + $0x1d8] sm:$0xff]   ;;  %v8363_v0 = vld [vmem:[#allocation2 + $0x88] sm:$0xf] }
 0x15e   : > { %v3446_v47 = vrot.slane %v3445_v38, 4  ;;  %v3482_v25 = vshll.u32 %v3311_v8, 16  ;;  %7929 = vmatpush3.bf16.msra.mxu0 %v8298_v22  ;;  %v3468_v28 = vrot.slane %v3466_v48, 5  ;;  %v9385_v30 = vcombine.low %v8360_v20, %v8361_v52  ;;  %v3317_v38 = vld [vmem:[#allocation2 + $0x8c] sm:$0x1]  ;;  %v8314_v52 = vld [vmem:[%s8848_s27 + $0x180] sm:$0xff]  }
 0x15f   : > { %7895 = vmatmul.mubr.bf16.gmra.mxu1 %v7140_v12  ;;  %v3474_v62 = vrot.slane %v3472_v35, 5  ;;  %v3487_v61 = vshrl.u32 %v3312_v55, 16  ;;  %7930 = vmatprep.subr.bf16.mxu0 %v8302_v37  ;;  %v3456_v27 = vrot.slane %v3455_v9, 4  ;;  %v3478_v57 = vrot.slane %v3476_v16, 4  ;;  %v9411_v9 = vld [vmem:[#allocation2 + $0x98] sm:$0xf] }
 0x160   : > { %10860 = vst [vmem:[#allocation22_spill] sm:$0xff] %v9385_v30  ;;  %v3451_v26 = vsel %vm9165_vm11, %v3446_v47, %v3450_v63  ;;  %v3484_v40 = vrot.slane %v3482_v25, 5  ;;  %7975 = vmatpush3.bf16.msra.mxu1 %v8295_v42  ;;  %v3469_v43 = vor.u32 %v3468_v28, %v3465_v14  ;;  %v3490_v22 = vshll.u32 %v3312_v55, 16  ;;  %v8362_v63 = vld [vmem:[#allocation2 + $0x84] sm:$0xf]  ;;  %v8307_v55 = vld [vmem:[%s8848_s27 + $0x1d0] sm:$0xff]  }
 0x161   : > { %7851 = vmatmul.mubr.bf16.gmra.mxu0 %v9380_v4  ;;  %v3489_v19 = vrot.slane %v3487_v61, 4  ;;  %v3496_v50 = vshll.u32 %v3313_v54, 16  ;;  %7976 = vmatprep.subr.bf16.mxu1 %v8299_v39  ;;  %v3461_v34 = vsel %vm9165_vm11, %v3456_v27, %v3460_v6  ;;  %v3479_v18 = vor.u32 %v3478_v57, %v3474_v62  ;;  %v3318_v47 = vld [vmem:[#allocation2 + $0x94] sm:$0xf]  ;;  %v3320_v20 = vld [vmem:[#allocation2 + $0x9c] sm:$0x1] }
 0x162   : > { %7854 = vmatprep.mubr.bf16.mxu0 %v9385_v30  ;;  %v3500_v56 = vshrl.u32 %v3313_v54, 16  ;;  %v3506_v10 = vshll.u32 %v3314_v31, 16  ;;  %7931 = vmatpush3.bf16.msra.mxu0 %v8302_v37  ;;  %v7141_v21 = vcombine.low %v3451_v26, %v3461_v34  ;;  %v3470_v58 = vrot.slane %v3469_v43, 4  ;;  %v8364_v43 = vld [vmem:[#allocation2 + $0x94] sm:$0xf] }
 0x163   : > { %v3492_v60 = vrot.slane %v3490_v22, 5  ;;  %v3498_v8 = vrot.slane %v3496_v50, 5  ;;  %7932 = vmatprep.subr.bf16.mxu0 %v8306_v32  ;;  %v3480_v33 = vrot.slane %v3479_v18, 4  ;;  %v9400_v23 = vcombine.low %v8362_v63, %v8363_v0  ;;  %v9435_v63 = vld [vmem:[%s8848_s27 + $0x238] sm:$0xff]  }
 0x164   : > { %v3502_v44 = vrot.slane %v3500_v56, 4  ;;  %v3508_v5 = vrot.slane %v3506_v10, 5  ;;  %7977 = vmatpush3.bf16.msra.mxu1 %v8299_v39  ;;  %7898 = vmatprep.mubr.bf16.mxu1 %v7141_v21  ;;  %v3475_v7 = vsel %vm9165_vm11, %v3470_v58, %v3474_v62  ;;  %v3511_v36 = vshrl.u32 %v3315_v41, 16  ;;  %v3321_v21 = vld [vmem:[#allocation2 + $0xa4] sm:$0xf] }
 0x165   : > { %10861 = vst [vmem:[#allocation23_spill] sm:$0xff] %v9400_v23  ;;  %v3493_v59 = vor.u32 %v3492_v60, %v3489_v19  ;;  %v3514_v6 = vshll.u32 %v3315_v41, 16  ;;  %7978 = vmatprep.subr.bf16.mxu1 %v8303_v51  ;;  %v3485_v14 = vsel %vm9165_vm11, %v3480_v33, %v3484_v40  ;;  %v3520_v35 = vshll.u32 %v3316_v3, 16  ;;  %v8365_v19 = vld [vmem:[#allocation2 + $0x98] sm:$0xf] }
 0x166   : > { %v9395_v42 = vpop.f32.mrf.mxu0  ;;  %v3503_v48 = vor.u32 %v3502_v44, %v3498_v8  ;;  %v3524_v39 = vshrl.u32 %v3316_v3, 16  ;;  %7933 = vmatpush3.bf16.msra.mxu0 %v8306_v32  ;;  %v7142_v25 = vcombine.low %v3475_v7, %v3485_v14  ;;  %v3513_v28 = vrot.slane %v3511_v36, 4  ;;  %v8311_v3 = vld [vmem:[%s8848_s27 + $0x1c8] sm:$0xff]   ;;  %v8315_v36 = vld [vmem:[%s8848_s27 + $0x1c0] sm:$0xff]  }
 0x167   : > { %v9398_v17 = vpop.f32.mrf.mxu1  ;;  %v3494_v54 = vrot.slane %v3493_v59, 4  ;;  %v3516_v62 = vrot.slane %v3514_v6, 5  ;;  %7934 = vmatprep.subr.bf16.mxu0 %v8310_v1  ;;  %v3522_v26 = vrot.slane %v3520_v35, 5  ;;  %v3530_v57 = vshll.u32 %v3317_v38, 16  ;;  %v3322_v38 = vld [vmem:[#allocation2 + $0xa8] sm:$0xf] }
 0x168   : > { %v9402_v37 = vpop.f32.mrf.mxu0  ;;  %v3504_v61 = vrot.slane %v3503_v48, 4  ;;  %v3526_v27 = vrot.slane %v3524_v39, 4  ;;  %7979 = vmatpush3.bf16.msra.mxu1 %v8303_v51  ;;  %v9423_v22 = vcombine.low %v8364_v43, %v8365_v19  ;;  %v3535_v50 = vshrl.u32 %v3318_v47, 16  ;;  %v8366_v35 = vld [vmem:[#allocation2 + $0xa4] sm:$0xf] }
 0x169   : > { %v9407_v12 = vpop.f32.mrf.mxu1  ;;  %7899 = vmatmul.mubr.bf16.gmra.mxu1 %v7142_v25  ;;  %v3499_v32 = vsel %vm9165_vm11, %v3494_v54, %v3498_v8  ;;  %7855 = vmatmul.mubr.bf16.gmra.mxu0 %v9400_v23  ;;  %v3517_v41 = vor.u32 %v3516_v62, %v3513_v28  ;;  %v3532_v56 = vrot.slane %v3530_v57, 5  ;;  %v3538_v10 = vshll.u32 %v3318_v47, 16  ;;  %v8367_v39 = vld [vmem:[#allocation2 + $0xa8] sm:$0xf]  ;;  %v3323_v25 = vld [vmem:[#allocation2 + $0xac] sm:$0x1] }
 0x16a   : > { %v9413_v16 = vpop.f32.mrf.mxu0  ;;  %10862 = vst [vmem:[#allocation24_spill] sm:$0xff] %v9423_v22  ;;  %v3509_v51 = vsel %vm9165_vm11, %v3504_v61, %v3508_v5  ;;  %v3527_v18 = vor.u32 %v3526_v27, %v3522_v26  ;;  %7980 = vmatprep.subr.bf16.mxu1 %v8307_v55  ;;  %7935 = vmatpush3.bf16.msra.mxu0 %v8310_v1  ;;  %v3537_v33 = vrot.slane %v3535_v50, 4  ;;  %v3544_v44 = vshll.u32 %v9411_v9, 16  ;;  %v3324_v28 = vld [vmem:[#allocation2 + $0xb4] sm:$0xf] }
 0x16b   : > { %v9416_v31 = vpop.f32.mrf.mxu1  ;;  %v7143_v60 = vcombine.low %v3499_v32, %v3509_v51  ;;  %v3518_v8 = vrot.slane %v3517_v41, 4  ;;  %7858 = vmatprep.mubr.bf16.mxu0 %v9423_v22  ;;  %7936 = vmatprep.subr.bf16.mxu0 %v8314_v52  ;;  %v3540_v7 = vrot.slane %v3538_v10, 5  ;;  %v3548_v59 = vshrl.u32 %v9411_v9, 16  ;;  %v3325_v27 = vld [vmem:[#allocation2 + $0xb8] sm:$0xf] }
 0x16c   : > { %v9418_v40 = vpop.f32.mrf.mxu0  ;;  %v3528_v0 = vrot.slane %v3527_v18, 4  ;;  %v3554_v1 = vshll.u32 %v3320_v20, 16  ;;  %7981 = vmatpush3.bf16.msra.mxu1 %v8307_v55  ;;  %v3546_v48 = vrot.slane %v3544_v44, 5  ;;  %v9445_v47 = vcombine.low %v8366_v35, %v8367_v39  ;;  %v3326_v19 = vld [vmem:[#allocation2 + $0xbc] sm:$0x1] }
 0x16d   : > { %v9426_v34 = vpop.f32.mrf.mxu1  ;;  %7902 = vmatprep.mubr.bf16.mxu1 %v7143_v60  ;;  %v3523_v14 = vsel %vm9165_vm11, %v3518_v8, %v3522_v26  ;;  %v3559_v54 = vshrl.u32 %v3321_v21, 16  ;;  %7982 = vmatprep.subr.bf16.mxu1 %v8311_v3  ;;  %v3541_v62 = vor.u32 %v3540_v7, %v3537_v33  ;;  %v3550_v20 = vrot.slane %v3548_v59, 4  ;;  %v8369_v33 = vld [vmem:[#allocation2 + $0xb8] sm:$0xf] }
 0x16e   : > { %v9430_v58 = vpop.f32.mrf.mxu0  ;;  %10863 = vst [vmem:[#allocation25_spill] sm:$0xff] %v9445_v47  ;;  %v3533_v55 = vsel %vm9165_vm11, %v3528_v0, %v3532_v56  ;;  %v3556_v61 = vrot.slane %v3554_v1, 5  ;;  %7937 = vmatpush3.bf16.msra.mxu0 %v8314_v52  ;;  %v3562_v41 = vshll.u32 %v3321_v21, 16  ;;  %v3568_v43 = vshll.u32 %v3322_v38, 16  ;;  %v8368_v21 = vld [vmem:[#allocation2 + $0xb4] sm:$0xf] }
 0x16f   : > { %v9437_v5 = vpop.f32.mrf.mxu1  ;;  %v7144_v57 = vcombine.low %v3523_v14, %v3533_v55  ;;  %v3561_v32 = vrot.slane %v3559_v54, 4  ;;  %8018 = vmatprep.subr.bf16.mxu0 %v9435_v63  ;;  %v3542_v51 = vrot.slane %v3541_v62, 4  ;;  %v3551_v18 = vor.u32 %v3550_v20, %v3546_v48  ;;  %v9462_v7 = vld [vmem:[%s8848_s27 + $0x278] sm:$0xff]  }
 0x170   : > { %v9441_v6 = vpop.f32.mrf.mxu0  ;;  %v3572_v56 = vshrl.u32 %v3322_v38, 16  ;;  %v3578_v10 = vshll.u32 %v3323_v25, 16  ;;  %7983 = vmatpush3.bf16.msra.mxu1 %v8311_v3  ;;  %v3564_v52 = vrot.slane %v3562_v41, 5  ;;  %v3570_v8 = vrot.slane %v3568_v43, 5  ;;  %v3327_v43 = vld [vmem:[#allocation2 + $0xc4] sm:$0xf] }
 0x171   : > { %v9447_v9 = vpop.f32.mrf.mxu1  ;;  %7903 = vmatmul.mubr.bf16.gmra.mxu1 %v7144_v57  ;;  %7859 = vmatmul.mubr.bf16.gmra.mxu0 %v9445_v47  ;;  %v9459_v44 = vcombine.low %v8368_v21, %v8369_v33  ;;  %v3583_v0 = vshrl.u32 %v3324_v28, 16  ;;  %v3547_v1 = vsel %vm9165_vm11, %v3542_v51, %v3546_v48  ;;  %v3552_v3 = vrot.slane %v3551_v18, 4  ;;  %v3328_v51 = vld [vmem:[#allocation2 + $0xc8] sm:$0xf]  ;;  %v3329_v21 = vld [vmem:[#allocation2 + $0xcc] sm:$0x1] }
 0x172   : > { %v9451_v26 = vpop.f32.mrf.mxu0  ;;  %v3574_v38 = vrot.slane %v3572_v56, 4  ;;  %v3580_v14 = vrot.slane %v3578_v10, 5  ;;  %7984 = vmatprep.subr.bf16.mxu1 %v8315_v36  ;;  %v3565_v39 = vor.u32 %v3564_v52, %v3561_v32  ;;  %v3586_v54 = vshll.u32 %v3324_v28, 16  ;;  %v3331_v23 = vld [vmem:[#allocation2 + $0xd8] sm:$0xf] }
 0x173   : > { %v9454_v50 = vpop.f32.mrf.mxu1  ;;  %10864 = vst [vmem:[#allocation26_spill] sm:$0xff] %v9459_v44  ;;  %7862 = vmatprep.mubr.bf16.mxu0 %v9459_v44  ;;  %v3585_v25 = vrot.slane %v3583_v0, 4  ;;  %v3592_v55 = vshll.u32 %v3325_v27, 16  ;;  %v3557_v20 = vsel %vm9165_vm11, %v3552_v3, %v3556_v61  ;;  %v3596_v41 = vshrl.u32 %v3325_v27, 16  ;;  %v8370_v3 = vld [vmem:[#allocation2 + $0xc4] sm:$0xf] }
 0x174   : > { %v9456_v60 = vpop.f32.mrf.mxu0  ;;  %v3575_v57 = vor.u32 %v3574_v38, %v3570_v8  ;;  %v3602_v48 = vshll.u32 %v3326_v19, 16  ;;  %7985 = vmatpush3.bf16.msra.mxu1 %v8315_v36  ;;  %v7145_v56 = vcombine.low %v3547_v1, %v3557_v20  ;;  %v3566_v32 = vrot.slane %v3565_v39, 4  ;;  %v8371_v27 = vld [vmem:[#allocation2 + $0xc8] sm:$0xf]  ;;  %v3330_v38 = vld [vmem:[#allocation2 + $0xd4] sm:$0xf] }
 0x175   : > { %v9464_v59 = vpop.f32.mrf.mxu1  ;;  %v3588_v10 = vrot.slane %v3586_v54, 5  ;;  %v3594_v52 = vrot.slane %v3592_v55, 5  ;;  %8066 = vmatprep.subr.bf16.mxu1 %v9462_v7  ;;  %v3598_v0 = vrot.slane %v3596_v41, 4  ;;  %v9480_v19 = vcombine.low %v8370_v3, %v8371_v27 }
 0x176   : > { %v9468_v35 = vpop.f32.mrf.mxu0  ;;  %v3576_v33 = vrot.slane %v3575_v57, 4  ;;  %v3604_v61 = vrot.slane %v3602_v48, 5  ;;  %7906 = vmatprep.mubr.bf16.mxu1 %v7145_v56  ;;  %v3571_v1 = vsel %vm9165_vm11, %v3566_v32, %v3570_v8  ;;  %v3607_v54 = vshrl.u32 %v3327_v43, 16 }
 0x177   : > { %v9471_v62 = vpop.f32.mrf.mxu1  ;;  %10865 = vst [vmem:[#allocation27_spill] sm:$0xff] %v9480_v19  ;;  %v3589_v39 = vor.u32 %v3588_v10, %v3585_v25  ;;  %v3610_v55 = vshll.u32 %v3327_v43, 16  ;;  %v3599_v41 = vor.u32 %v3598_v0, %v3594_v52  ;;  %v3616_v48 = vshll.u32 %v3328_v51, 16  ;;  %v8373_v0 = vld [vmem:[#allocation2 + $0xd8] sm:$0xf] }
 0x178   : > { %v9475_v18 = vpop.f32.mrf.mxu0  ;;  %v3581_v57 = vsel %vm9165_vm11, %v3576_v33, %v3580_v14  ;;  %v3620_v44 = vshrl.u32 %v3328_v51, 16  ;;  %v3609_v56 = vrot.slane %v3607_v54, 4  ;;  %v3626_v10 = vshll.u32 %v3329_v21, 16  ;;  %v8372_v33 = vld [vmem:[#allocation2 + $0xd4] sm:$0xf] }
 0x179   : > { %v9478_v28 = vpop.f32.mrf.mxu1  ;;  %v7146_v27 = vcombine.low %v3571_v1, %v3581_v57  ;;  %v3590_v47 = vrot.slane %v3589_v39, 4  ;;  %7863 = vmatmul.mubr.bf16.gmra.mxu0 %v9480_v19  ;;  %v3612_v22 = vrot.slane %v3610_v55, 5  ;;  %v3600_v25 = vrot.slane %v3599_v41, 4  ;;  %v3332_v39 = vld [vmem:[#allocation2 + $0xdc] sm:$0x1] }
 0x17a   : > { %v9482_v36 = vpop.f32.mrf.mxu0  ;;  %v3618_v43 = vrot.slane %v3616_v48, 5  ;;  %v3622_v32 = vrot.slane %v3620_v44, 4  ;;  %v9499_v1 = vcombine.low %v8372_v33, %v8373_v0  ;;  %v3631_v54 = vshrl.u32 %v3330_v38, 16  ;;  %v3333_v48 = vld [vmem:[#allocation2 + $0xe4] sm:$0xf] }
 0x17b   : > { %v9486_v20 = vpop.f32.mrf.mxu1  ;;  %7907 = vmatmul.mubr.bf16.gmra.mxu1 %v7146_v27  ;;  %v3595_v14 = vsel %vm9165_vm11, %v3590_v47, %v3594_v52  ;;  %v3613_v51 = vor.u32 %v3612_v22, %v3609_v56  ;;  %v3605_v44 = vsel %vm9165_vm11, %v3600_v25, %v3604_v61  ;;  %v3628_v57 = vrot.slane %v3626_v10, 5  ;;  %v3334_v27 = vld [vmem:[#allocation2 + $0xe8] sm:$0xf]  ;;  %v3335_v33 = vld [vmem:[#allocation2 + $0xec] sm:$0x1] }
 0x17c   : > { %v9490_v3 = vpop.f32.mrf.mxu0  ;;  %10866 = vst [vmem:[#allocation28_spill] sm:$0xff] %v9499_v1  ;;  %v3623_v21 = vor.u32 %v3622_v32, %v3618_v43  ;;  %v3634_v41 = vshll.u32 %v3330_v38, 16  ;;  %v7147_v47 = vcombine.low %v3595_v14, %v3605_v44  ;;  %7866 = vmatprep.mubr.bf16.mxu0 %v9499_v1  ;;  %v3633_v52 = vrot.slane %v3631_v54, 4  ;;  %v8374_v10 = vld [vmem:[#allocation2 + $0xe4] sm:$0xf] }
 0x17d   : > { %v9493_v8 = vpop.f32.mrf.mxu1  ;;  %v3614_v22 = vrot.slane %v3613_v51, 4  ;;  %v3640_v56 = vshll.u32 %v3331_v23, 16  ;;  %v3644_v29 = vshrl.u32 %v3331_v23, 16  ;;  %v3650_v61 = vshll.u32 %v3332_v39, 16  ;;  %v8375_v14 = vld [vmem:[#allocation2 + $0xe8] sm:$0xf] }
 0x17e   : > { %v9495_v30 = vpop.f32.mrf.mxu0  ;;  %v3624_v4 = vrot.slane %v3623_v21, 4  ;;  %v3636_v49 = vrot.slane %v3634_v41, 5  ;;  %7910 = vmatprep.mubr.bf16.mxu1 %v7147_v47  ;;  %v9514_v51 = vcombine.low %v8374_v10, %v8375_v14  ;;  %v3655_v54 = vshrl.u32 %v3333_v48, 16  ;;  %v3336_v1 = vld [vmem:[#allocation2 + $0xf4] sm:$0xf] }
 0x17f   : > { %v9501_v55 = vpop.f32.mrf.mxu1  ;;  %v3619_v38 = vsel %vm9165_vm11, %v3614_v22, %v3618_v43  ;;  %v3642_v32 = vrot.slane %v3640_v56, 5  ;;  %v3646_v23 = vrot.slane %v3644_v29, 4  ;;  %v3652_v39 = vrot.slane %v3650_v61, 5  ;;  %v3338_v61 = vld [vmem:[#allocation2 + $0xfc] sm:$0x1] }
 0x180   : > { %v9505_v19 = vpop.f32.mrf.mxu0  ;;  %10868 = vst [vmem:[#allocation30_spill] sm:$0xff] %v9514_v51  ;;  %v3629_v21 = vsel %vm9165_vm11, %v3624_v4, %v3628_v57  ;;  %v3637_v41 = vor.u32 %v3636_v49, %v3633_v52  ;;  %v3657_v43 = vrot.slane %v3655_v54, 4  ;;  %v3658_v22 = vshll.u32 %v3333_v48, 16  ;;  %v8376_v57 = vld [vmem:[#allocation2 + $0xf4] sm:$0xf] }
 0x181   : > { %v9508_v0 = vpop.f32.mrf.mxu1  ;;  %v7148_v47 = vcombine.low %v3619_v38, %v3629_v21  ;;  %7867 = vmatmul.mubr.bf16.gmra.mxu0 %v9514_v51  ;;  %v3664_v56 = vshll.u32 %v3334_v27, 16  ;;  %v3647_v11 = vor.u32 %v3646_v23, %v3642_v32  ;;  %v3668_v2 = vshrl.u32 %v3334_v27, 16 }
 0x182   : > { %v9510_v25 = vpop.f32.mrf.mxu0  ;;  %v3638_v14 = vrot.slane %v3637_v41, 4  ;;  %v3660_v29 = vrot.slane %v3658_v22, 5  ;;  %v9528_v52 = vcombine.low %v8376_v57, %v9313_v15  ;;  %v3679_v38 = vshrl.u32 %v3336_v1, 16  ;;  %v3339_v41 = vld [vmem:[#allocation2 + $0x104] sm:$0xf] }
 0x183   : > { %10867 = vst [vmem:[#allocation29_spill] sm:$0xff] %v9510_v25  ;;  %v9516_v44 = vpop.f32.mrf.mxu1  ;;  %v3337_v25 = vld [vmem:[#allocation2 + $0xf8] sm:$0xf]  ;;  %7911 = vmatmul.mubr.bf16.gmra.mxu1 %v7148_v47  ;;  %v3666_v49 = vrot.slane %v3664_v56, 5  ;;  %v3648_v21 = vrot.slane %v3647_v11, 4  ;;  %v3670_v27 = vrot.slane %v3668_v2, 4 }
 0x184   : > { %10869 = vst [vmem:[#allocation31_spill] sm:$0xff] %v9516_v44  ;;  %v9520_v53 = vpop.f32.mrf.mxu0  ;;  %v3674_v44 = vshll.u32 %v3335_v33, 16  ;;  %10872 = vst [vmem:[#allocation34_spill] sm:$0xff] %v9528_v52  ;;  %v3643_v54 = vsel %vm9165_vm11, %v3638_v14, %v3642_v32  ;;  %v3661_v47 = vor.u32 %v3660_v29, %v3657_v43  ;;  %7870 = vmatprep.mubr.bf16.mxu0 %v9528_v52  ;;  %v3681_v22 = vrot.slane %v3679_v38, 4  ;;  %v3340_v57 = vld [vmem:[#allocation2 + $0x108] sm:$0xf] }
 0x185   : > { %10870 = vst [vmem:[#allocation32_spill] sm:$0xff] %v9520_v53  ;;  %v9523_v10 = vpop.f32.mrf.mxu1  ;;  %v3682_v56 = vshll.u32 %v3336_v1, 16  ;;  %v3688_v15 = vshll.u32 %v3337_v25, 16  ;;  %v3671_v53 = vor.u32 %v3670_v27, %v3666_v49  ;;  %v3692_v32 = vshrl.u32 %v3337_v25, 16 }
 0x186   : > { %10871 = vst [vmem:[#allocation33_spill] sm:$0xff] %v9523_v10  ;;  %v9525_v4 = vpop.f32.mrf.mxu0  ;;  %v3676_v33 = vrot.slane %v3674_v44, 5  ;;  %v3653_v10 = vsel %vm9165_vm11, %v3648_v21, %v3652_v39  ;;  %v3698_v11 = vshll.u32 %v3338_v61, 16  ;;  %v3662_v14 = vrot.slane %v3661_v47, 4  ;;  %v4049_v47 = vld [vmem:[#allocation2 + $0x20] sm:$0x8] }
 0x187   : > { %v9530_v48 = vpop.f32.mrf.mxu1  ;;  %v7149_v44 = vcombine.low %v3643_v54, %v3653_v10  ;;  %v3690_v43 = vrot.slane %v3688_v15, 5  ;;  %v3672_v38 = vrot.slane %v3671_v53, 4  ;;  %v3694_v1 = vrot.slane %v3692_v32, 4  ;;  %v3341_v10 = vld [vmem:[#allocation2 + $0x10c] sm:$0x1] }
 0x188   : > { %10873 = vst [vmem:[#allocation35_spill] sm:$0xff] %v9530_v48  ;;  %v9534_v23 = vpop.f32.mrf.mxu0  ;;  %v3700_v52 = vrot.slane %v3698_v11, 5  ;;  %v3667_v25 = vsel %vm9165_vm11, %v3662_v14, %v3666_v49  ;;  %v3703_v61 = vshrl.u32 %v3339_v41, 16  ;;  %v3706_v54 = vshll.u32 %v3339_v41, 16  ;;  %v4051_v41 = vld [vmem:[#allocation2 + $0x28] sm:$0xf] }
 0x189   : > { %10874 = vst [vmem:[#allocation36_spill] sm:$0xff] %v9534_v23  ;;  %v9537_v51 = vpop.f32.mrf.mxu1  ;;  %v3684_v23 = vrot.slane %v3682_v56, 5  ;;  %7914 = vmatprep.mubr.bf16.mxu1 %v7149_v44  ;;  %v3677_v53 = vsel %vm9165_vm11, %v3672_v38, %v3676_v33  ;;  %v3695_v27 = vor.u32 %v3694_v1, %v3690_v43  ;;  %v9558_v56 = vld [vmem:[#allocation2 + $0x24] sm:$0xf]  ;;  %v3722_v38 = vshll.u32 %v3341_v10, 16 }
 0x18a   : > { %10875 = vst [vmem:[#allocation37_spill] sm:$0xff] %v9537_v51  ;;  %v9541_v2 = vpop.f32.mrf.mxu0  ;;  %v9547_v51 = vcombine.low %v9321_v13, %v9327_v45  ;;  %v3712_v13 = vshll.u32 %v3340_v57, 16  ;;  %v3716_v45 = vshrl.u32 %v3340_v57, 16  ;;  %v7150_v49 = vcombine.low %v3667_v25, %v3677_v53  ;;  %v4052_v10 = vld [vmem:[#allocation2 + $0x30] sm:$0x8] }
 0x18b   : > { %v9543_v29 = vpop.f32.mrf.mxu1  ;;  %v3685_v39 = vor.u32 %v3684_v23, %v3681_v22  ;;  %v3705_v22 = vrot.slane %v3703_v61, 4  ;;  %v3708_v32 = vrot.slane %v3706_v54, 5  ;;  %v3696_v44 = vrot.slane %v3695_v27, 4 }
 0x18c   : > { %10876 = vst [vmem:[#allocation38_spill] sm:$0xff] %v9547_v51  ;;  %v9549_v48 = vpop.f32.mrf.mxu0  ;;  %7871 = vmatmul.mubr.bf16.gmra.mxu0 %v9547_v51  ;;  %v3714_v14 = vrot.slane %v3712_v13, 5  ;;  %v3718_v33 = vrot.slane %v3716_v45, 4  ;;  %7915 = vmatmul.mubr.bf16.gmra.mxu1 %v7150_v49  ;;  %v4103_v25 = vshrl.u32 %v9558_v56, 16  ;;  %v3724_v53 = vrot.slane %v3722_v38, 5 }
 0x18d   : > { %v9553_v21 = vpop.f32.mrf.mxu1  ;;  %v3686_v23 = vrot.slane %v3685_v39, 4  ;;  %v3709_v51 = vor.u32 %v3708_v32, %v3705_v22  ;;  %v3701_v61 = vsel %vm9165_vm11, %v3696_v44, %v3700_v52  ;;  %v4106_v27 = vshll.u32 %v9558_v56, 16  ;;  %v9581_v44 = vld [vmem:[#allocation2 + $0x38] sm:$0xf] }
 0x18e   : > { %10877 = vst [vmem:[#allocation39_spill] sm:$0xff] %v9553_v21  ;;  %v9560_v15 = vpop.f32.mrf.mxu0  ;;  %v4098_v21 = vshrl.u32 %v4049_v47, 16  ;;  %v3719_v54 = vor.u32 %v3718_v33, %v3714_v14  ;;  %v4112_v32 = vshrl.u32 %v4051_v41, 16  ;;  %v7233_v52 = vcombine.low %v9558_v56, %v4051_v41 }
 0x18f   : > { %v9562_v11 = vpop.f32.mrf.mxu1  ;;  %v3691_v57 = vsel %vm9165_vm11, %v3686_v23, %v3690_v43  ;;  %v3710_v49 = vrot.slane %v3709_v51, 4  ;;  %v4105_v43 = vrot.slane %v4103_v25, 7  ;;  %v9576_v23 = vld [vmem:[#allocation2 + $0x34] sm:$0xf] }
 0x190   : > { %v9564_v1 = vpop.f32.mrf.mxu0  ;;  %v7151_v45 = vcombine.low %v3691_v57, %v3701_v61  ;;  %v3720_v22 = vrot.slane %v3719_v54, 4  ;;  %v9589_v57 = vadd.f32 %v9398_v17, %v9395_v42  ;;  %v4114_v56 = vrot.slane %v4112_v32, 7  ;;  %v4055_v17 = vld [vmem:[#allocation2 + $0x40] sm:$0x8] }
 0x191   : > { %10878 = vst [vmem:[#allocation40_spill] sm:$0xff] %v9564_v1  ;;  %v9569_v39 = vpop.f32.mrf.mxu1  ;;  %v7161_v1 = vrot.slane %v4098_v21, 11  ;;  %v3715_v38 = vsel %vm9165_vm11, %v3710_v49, %v3714_v14  ;;  %v4108_v51 = vor.u32 %v4106_v27, %v4105_v43  ;;  %v4110_v21 = vrot.slane %v4105_v43, 4 }
 0x192   : > { %10879 = vst [vmem:[#allocation41_spill] sm:$0xff] %v9569_v39  ;;  %v9574_v13 = vpop.f32.mrf.mxu0  ;;  %v4115_v39 = vshll.u32 %v4051_v41, 16  ;;  %7918 = vmatprep.mubr.bf16.mxu1 %v7151_v45  ;;  %10881 = vst [vmem:[#allocation43_spill] sm:$0xff] %v9589_v57  ;;  %v3725_v61 = vsel %vm9165_vm11, %v3720_v22, %v3724_v53  ;;  %v4120_v41 = vshrl.u32 %v4052_v10, 16  ;;  %v4125_v54 = vshrl.u32 %v9576_v23, 16 }
 0x193   : > { %v9578_v47 = vpop.f32.mrf.mxu1  ;;  %v7152_v45 = vcombine.low %v3715_v38, %v3725_v61  ;;  %v4109_v14 = vsel %vm8864_vm8, %v7161_v1, %v4108_v51  ;;  %v4128_v27 = vshll.u32 %v9576_v23, 16  ;;  %v4134_v42 = vshrl.u32 %v9581_v44, 16  ;;  %v9605_v22 = vld [vmem:[#allocation2 + $0x44] sm:$0xf]  ;;  %v4057_v61 = vld [vmem:[#allocation2 + $0x48] sm:$0xf] }
 0x194   : > { %v9583_v33 = vpop.f32.mrf.mxu0  ;;  %v4117_v43 = vor.u32 %v4115_v39, %v4114_v56  ;;  %v7162_v24 = vrot.slane %v4120_v41, 11  ;;  %v4127_v53 = vrot.slane %v4125_v54, 7  ;;  %v4137_v10 = vshll.u32 %v9581_v44, 16 }
 0x195   : > { %10880 = vst [vmem:[#allocation42_spill] sm:$0xff] %v9583_v33  ;;  %v9591_v25 = vpop.f32.mrf.mxu1  ;;  %7919 = vmatmul.mubr.bf16.gmra.mxu1 %v7152_v45  ;;  %v4136_v38 = vrot.slane %v4134_v42, 7  ;;  %v9611_v1 = vadd.f32 %v9407_v12, %v9402_v37  ;;  %v9615_v51 = vadd.f32 %v9416_v31, %v9413_v16  ;;  %v7234_v45 = vcombine.low %v9576_v23, %v9581_v44  ;;  %v4058_v31 = vld [vmem:[#allocation2 + $0x50] sm:$0x8] }
 0x196   : > { %10882 = vst [vmem:[#allocation44_spill] sm:$0xff] %v9591_v25  ;;  %v9596_v33 = vpop.f32.mrf.mxu0  ;;  %v4118_v56 = vsel %vm8864_vm8, %v4110_v21, %v4117_v43  ;;  %7986 = vmatprep.mubr.bf16.mxu1 %v7233_v52  ;;  %v4130_v41 = vor.u32 %v4128_v27, %v4127_v53  ;;  %v4132_v54 = vrot.slane %v4127_v53, 4  ;;  %v4147_v16 = vshrl.u32 %v9605_v22, 16  ;;  %v9631_v43 = vld [vmem:[#allocation2 + $0x54] sm:$0xf] }
 0x197   : > { %v9602_v49 = vpop.f32.mrf.mxu1  ;;  %10883 = vst [vmem:[#allocation45_spill] sm:$0xff] %v9611_v1  ;;  %10884 = vst [vmem:[#allocation46_spill] sm:$0xff] %v9615_v51  ;;  %v7193_v37 = vcombine.low %v4109_v14, %v4118_v56  ;;  %v4139_v12 = vor.u32 %v4137_v10, %v4136_v38  ;;  %v4142_v1 = vshrl.u32 %v4055_v17, 16  ;;  %v4150_v52 = vshll.u32 %v9605_v22, 16  ;;  %v9638_v10 = vld [vmem:[#allocation2 + $0x58] sm:$0xf] }
 0x198   : > { %v9607_v32 = vpop.f32.mrf.mxu0  ;;  %v4131_v57 = vsel %vm8864_vm8, %v7162_v24, %v4130_v41  ;;  %v4156_v21 = vshrl.u32 %v4057_v61, 16  ;;  %v4159_v27 = vshll.u32 %v4057_v61, 16  ;;  %v4149_v17 = vrot.slane %v4147_v16, 7 }
 0x199   : > { %v9617_v39 = vpop.f32.mrf.mxu1  ;;  %7938 = vmatprep.mubr.bf16.mxu0 %v7193_v37  ;;  %v4140_v44 = vsel %vm8864_vm8, %v4132_v54, %v4139_v12  ;;  %v7163_v14 = vrot.slane %v4142_v1, 11  ;;  %v7235_v53 = vcombine.low %v9605_v22, %v4057_v61  ;;  %v9644_v41 = vadd.f32 %v9437_v5, %v9430_v58  ;;  %v8322_v22 = vld [vmem:[%s8848_s27 + $0x230] sm:$0xff]  }
 0x19a   : > { %v9623_v42 = vpop.f32.mrf.mxu0  ;;  %v7194_v38 = vcombine.low %v4131_v57, %v4140_v44  ;;  %v4158_v56 = vrot.slane %v4156_v21, 7  ;;  %v4164_v37 = vshrl.u32 %v4058_v31, 16  ;;  %v4152_v25 = vor.u32 %v4150_v52, %v4149_v17  ;;  %v8323_v61 = vld [vmem:[%s8848_s27 + $0x270] sm:$0xff]   ;;  %v4061_v52 = vld [vmem:[#allocation2 + $0x60] sm:$0x8] }
 0x19b   : > { %v9626_v51 = vpop.f32.mrf.mxu1  ;;  %10886 = vst [vmem:[#allocation48_spill] sm:$0xff] %v9644_v41  ;;  %v4154_v54 = vrot.slane %v4149_v17, 4  ;;  %v4169_v1 = vshrl.u32 %v9631_v43, 16  ;;  %v4172_v12 = vshll.u32 %v9631_v43, 16  ;;  %v9656_v57 = vadd.f32 %v9426_v34, %v9418_v40  ;;  %v9669_v34 = vld [vmem:[#allocation2 + $0x64] sm:$0xf] }
 0x19c   : > { %v9633_v23 = vpop.f32.mrf.mxu0  ;;  %7939 = vmatmul.mubr.bf16.vlgmr.msra.gmra.mxu0 %v7194_v38  ;;  %v4161_v58 = vor.u32 %v4159_v27, %v4158_v56  ;;  %v4178_v5 = vshrl.u32 %v9638_v10, 16  ;;  %v4181_v31 = vshll.u32 %v9638_v10, 16  ;;  %v4153_v44 = vsel %vm8864_vm8, %v7163_v14, %v4152_v25  ;;  %v9671_v27 = vld [vmem:[#allocation2 + $0x68] sm:$0xf]  ;;  %v4064_v41 = vld [vmem:[#allocation2 + $0x70] sm:$0x8] }
 0x19d   : > { %10885 = vst [vmem:[#allocation47_spill] sm:$0xff] %v9633_v23  ;;  %v9640_v24 = vpop.f32.mrf.mxu1  ;;  %10887 = vst [vmem:[#allocation49_spill] sm:$0xff] %v9656_v57  ;;  %7987 = vmatmul.mubr.bf16.vlgmr.msra.gmra.mxu1 %v7234_v45  ;;  %8019 = vmatpush3.bf16.msra.mxu0 %v9435_v63  ;;  %v7164_v17 = vrot.slane %v4164_v37, 11  ;;  %v4171_v38 = vrot.slane %v4169_v1, 7  ;;  %v9667_v40 = vadd.f32 %v9447_v9, %v9441_v6  ;;  %v8326_v9 = vld [vmem:[%s8848_s27 + $0x228] sm:$0xff]   ;;  %v8330_v57 = vld [vmem:[%s8848_s27 + $0x220] sm:$0xff]  }
 0x19e   : > { %v9646_v23 = vpop.f32.mrf.mxu0  ;;  %8067 = vmatpush3.bf16.msra.mxu1 %v9462_v7  ;;  %v4162_v63 = vsel %vm8864_vm8, %v4154_v54, %v4161_v58  ;;  %7990 = vmatprep.mubr.bf16.mxu1 %v7235_v53  ;;  %v4180_v25 = vrot.slane %v4178_v5, 7  ;;  %v7236_v45 = vcombine.low %v9631_v43, %v9638_v10  ;;  %v9682_v6 = vadd.f32 %v9454_v50, %v9451_v26  ;;  %v8327_v54 = vld [vmem:[%s8848_s27 + $0x268] sm:$0xff]   ;;  %v9693_v50 = vld [vmem:[#allocation2 + $0x74] sm:$0xf] }
 0x19f   : > { %v9652_v16 = vpop.f32.mrf.mxu1  ;;  %10888 = vst [vmem:[#allocation50_spill] sm:$0xff] %v9667_v40  ;;  %v7195_v37 = vcombine.low %v4153_v44, %v4162_v63  ;;  %v4174_v1 = vor.u32 %v4172_v12, %v4171_v38  ;;  %v4176_v40 = vrot.slane %v4171_v38, 4  ;;  %8020 = vmatprep.subr.bf16.mxu0 %v8322_v22  ;;  %8068 = vmatprep.subr.bf16.mxu1 %v8323_v61  ;;  %v4186_v7 = vshrl.u32 %v4061_v52, 16  ;;  %v9702_v38 = vld [vmem:[#allocation2 + $0x78] sm:$0xf] }
 0x1a0   : > { %v9660_v21 = vpop.f32.mrf.mxu0  ;;  %10889 = vst [vmem:[#allocation51_spill] sm:$0xff] %v9682_v6  ;;  %v4183_v58 = vor.u32 %v4181_v31, %v4180_v25  ;;  %v4191_v43 = vshrl.u32 %v9669_v34, 16  ;;  %v4194_v10 = vshll.u32 %v9669_v34, 16  ;;  %v4200_v26 = vshrl.u32 %v9671_v27, 16 }
 0x1a1   : > { %v9673_v56 = vpop.f32.mrf.mxu1  ;;  %7942 = vmatprep.mubr.bf16.mxu0 %v7195_v37  ;;  %v4175_v12 = vsel %vm8864_vm8, %v7164_v17, %v4174_v1  ;;  %8021 = vmatpush3.bf16.msra.mxu0 %v8322_v22  ;;  %v7165_v52 = vrot.slane %v4186_v7, 11  ;;  %v4203_v44 = vshll.u32 %v9671_v27, 16  ;;  %v7237_v31 = vcombine.low %v9669_v34, %v9671_v27 }
 0x1a2   : > { %v9685_v14 = vpop.f32.mrf.mxu0  ;;  %v4184_v25 = vsel %vm8864_vm8, %v4176_v40, %v4183_v58  ;;  %8069 = vmatpush3.bf16.msra.mxu1 %v8323_v61  ;;  %v4193_v37 = vrot.slane %v4191_v43, 7  ;;  %v4202_v6 = vrot.slane %v4200_v26, 7  ;;  %v9710_v22 = vadd.f32 %v9471_v62, %v9468_v35  ;;  %8022 = vmatprep.subr.bf16.mxu0 %v8326_v9  ;;  %v4067_v35 = vld [vmem:[#allocation2 + $0x80] sm:$0x8] }
 0x1a3   : > { %v9688_v53 = vpop.f32.mrf.mxu1  ;;  %v7196_v1 = vcombine.low %v4175_v12, %v4184_v25  ;;  %v4208_v34 = vshrl.u32 %v4064_v41, 16  ;;  %v4213_v27 = vshrl.u32 %v9693_v50, 16  ;;  %v4216_v7 = vshll.u32 %v9693_v50, 16  ;;  %8070 = vmatprep.subr.bf16.mxu1 %v8327_v54  ;;  %v8331_v62 = vld [vmem:[%s8848_s27 + $0x260] sm:$0xff]  }
 0x1a4   : > { %v9695_v5 = vpop.f32.mrf.mxu0  ;;  %10892 = vst [vmem:[#allocation54_spill] sm:$0xff] %v9710_v22  ;;  %v4196_v61 = vor.u32 %v4194_v10, %v4193_v37  ;;  %v4198_v58 = vrot.slane %v4193_v37, 4  ;;  %v4205_v43 = vor.u32 %v4203_v44, %v4202_v6  ;;  %v4222_v26 = vshrl.u32 %v9702_v38, 16 }
 0x1a5   : > { %10890 = vst [vmem:[#allocation52_spill] sm:$0xff] %v9695_v5  ;;  %v9704_v63 = vpop.f32.mrf.mxu1  ;;  %7943 = vmatmul.mubr.bf16.gmra.mxu0 %v7196_v1  ;;  %7991 = vmatmul.mubr.bf16.gmra.mxu1 %v7236_v45  ;;  %v9725_v41 = vadd.f32 %v9464_v59, %v9456_v60  ;;  %v7166_v12 = vrot.slane %v4208_v34, 11  ;;  %v4215_v25 = vrot.slane %v4213_v27, 7  ;;  %v4068_v5 = vld [vmem:[#allocation2 + $0x84] sm:$0xf]  ;;  %v9736_v60 = vadd.f32 %v9478_v28, %v9475_v18 }
 0x1a6   : > { %10891 = vst [vmem:[#allocation53_spill] sm:$0xff] %v9704_v63  ;;  %v9712_v17 = vpop.f32.mrf.mxu0  ;;  %v4225_v63 = vshll.u32 %v9702_v38, 16  ;;  %v4197_v6 = vsel %vm8864_vm8, %v7165_v52, %v4196_v61  ;;  %v4206_v44 = vsel %vm8864_vm8, %v4198_v58, %v4205_v43  ;;  %7994 = vmatprep.mubr.bf16.mxu1 %v7237_v31  ;;  %v4224_v45 = vrot.slane %v4222_v26, 7  ;;  %8023 = vmatpush3.bf16.msra.mxu0 %v8326_v9  ;;  %v4069_v59 = vld [vmem:[#allocation2 + $0x88] sm:$0xf]  ;;  %v8334_v31 = vld [vmem:[%s8848_s27 + $0x218] sm:$0xff]  }
 0x1a7   : > { %v9717_v40 = vpop.f32.mrf.mxu1  ;;  %10893 = vst [vmem:[#allocation55_spill] sm:$0xff] %v9725_v41  ;;  %10894 = vst [vmem:[#allocation56_spill] sm:$0xff] %v9736_v60  ;;  %v7197_v1 = vcombine.low %v4197_v6, %v4206_v44  ;;  %v4218_v34 = vor.u32 %v4216_v7, %v4215_v25  ;;  %v4220_v27 = vrot.slane %v4215_v25, 4  ;;  %8071 = vmatpush3.bf16.msra.mxu1 %v8327_v54  ;;  %8024 = vmatprep.subr.bf16.mxu0 %v8330_v57  ;;  %v4070_v58 = vld [vmem:[#allocation2 + $0x90] sm:$0x8]  ;;  %v8335_v43 = vld [vmem:[%s8848_s27 + $0x258] sm:$0xff]  }
 0x1a8   : > { %v9721_v22 = vpop.f32.mrf.mxu0  ;;  %v9742_v52 = vadd.f32 %v9486_v20, %v9482_v36  ;;  %v4227_v61 = vor.u32 %v4225_v63, %v4224_v45  ;;  %v7238_v9 = vcombine.low %v9693_v50, %v9702_v38  ;;  %v4230_v18 = vshrl.u32 %v4067_v35, 16  ;;  %8072 = vmatprep.subr.bf16.mxu1 %v8331_v62  ;;  %v9752_v25 = vld [vmem:[#allocation2 + $0x94] sm:$0xf]  ;;  %v9758_v44 = vld [vmem:[#allocation2 + $0x98] sm:$0xf] }
 0x1a9   : > { %v9728_v10 = vpop.f32.mrf.mxu1  ;;  %v4235_v28 = vshrl.u32 %v4068_v5, 16  ;;  %7946 = vmatprep.mubr.bf16.mxu0 %v7197_v1  ;;  %v4219_v54 = vsel %vm8864_vm8, %v7166_v12, %v4218_v34  ;;  %v4238_v7 = vshll.u32 %v4068_v5, 16  ;;  %v4244_v36 = vshrl.u32 %v4069_v59, 16 }
 0x1aa   : > { %v9738_v37 = vpop.f32.mrf.mxu0  ;;  %10895 = vst [vmem:[#allocation57_spill] sm:$0xff] %v9742_v52  ;;  %v4247_v20 = vshll.u32 %v4069_v59, 16  ;;  %v4228_v50 = vsel %vm8864_vm8, %v4220_v27, %v4227_v61  ;;  %v7167_v38 = vrot.slane %v4230_v18, 11  ;;  %v7239_v6 = vcombine.low %v4068_v5, %v4069_v59  ;;  %8025 = vmatpush3.bf16.msra.mxu0 %v8330_v57  ;;  %v8338_v52 = vld [vmem:[%s8848_s27 + $0x210] sm:$0xff]   ;;  %v4073_v18 = vld [vmem:[#allocation2 + $0xa0] sm:$0x8] }
 0x1ab   : > { %v9748_v26 = vpop.f32.mrf.mxu1  ;;  %v4237_v35 = vrot.slane %v4235_v28, 7  ;;  %v7198_v45 = vcombine.low %v4219_v54, %v4228_v50  ;;  %v4246_v12 = vrot.slane %v4244_v36, 7  ;;  %v9762_v1 = vadd.f32 %v9501_v55, %v9495_v30  ;;  %8073 = vmatpush3.bf16.msra.mxu1 %v8331_v62  ;;  %8026 = vmatprep.subr.bf16.mxu0 %v8334_v31  ;;  %v8339_v5 = vld [vmem:[%s8848_s27 + $0x250] sm:$0xff]  }
 0x1ac   : > { %v9754_v63 = vpop.f32.mrf.mxu0  ;;  %v4252_v34 = vshrl.u32 %v4070_v58, 16  ;;  %v4257_v27 = vshrl.u32 %v9752_v25, 16  ;;  %v4260_v61 = vshll.u32 %v9752_v25, 16  ;;  %8074 = vmatprep.subr.bf16.mxu1 %v8335_v43  ;;  %v9772_v30 = vadd.f32 %v9493_v8, %v9490_v3  ;;  %v4074_v3 = vld [vmem:[#allocation2 + $0xa4] sm:$0xf] }
 0x1ad   : > { %10896 = vst [vmem:[#allocation58_spill] sm:$0xff] %v9762_v1  ;;  %v4240_v60 = vor.u32 %v4238_v7, %v4237_v35  ;;  %v4242_v41 = vrot.slane %v4237_v35, 4  ;;  %v9768_v59 = vpop.f32.mrf.mxu1  ;;  %7947 = vmatmul.mubr.bf16.gmra.mxu0 %v7198_v45  ;;  %7995 = vmatmul.mubr.bf16.gmra.mxu1 %v7238_v9  ;;  %v4249_v55 = vor.u32 %v4247_v20, %v4246_v12  ;;  %v4266_v57 = vshrl.u32 %v9758_v44, 16  ;;  %v4075_v8 = vld [vmem:[#allocation2 + $0xa8] sm:$0xf]  ;;  %v10899_v35 = vld [vmem:[#allocation29_spill] sm:$0xff] }
 0x1ae   : > { %10897 = vst [vmem:[#allocation59_spill] sm:$0xff] %v9772_v30  ;;  %v4269_v62 = vshll.u32 %v9758_v44, 16  ;;  %v9776_v28 = vpop.f32.mrf.mxu0  ;;  %7998 = vmatprep.mubr.bf16.mxu1 %v7239_v6  ;;  %v7168_v54 = vrot.slane %v4252_v34, 11  ;;  %v4259_v7 = vrot.slane %v4257_v27, 7  ;;  %v9782_v9 = vadd.f32 %v9508_v0, %v9505_v19  ;;  %8027 = vmatpush3.bf16.msra.mxu0 %v8334_v31  ;;  %v8342_v6 = vld [vmem:[%s8848_s27 + $0x208] sm:$0xff]  }
 0x1af   : > { %v4241_v58 = vsel %vm8864_vm8, %v7167_v38, %v4240_v60  ;;  %v4250_v36 = vsel %vm8864_vm8, %v4242_v41, %v4249_v55  ;;  %v4268_v20 = vrot.slane %v4266_v57, 7  ;;  %v7240_v50 = vcombine.low %v9752_v25, %v9758_v44  ;;  %v10900_v60 = vld [vmem:[#allocation31_spill] sm:$0xff]  ;;  %8075 = vmatpush3.bf16.msra.mxu1 %v8335_v43  ;;  %8028 = vmatprep.subr.bf16.mxu0 %v8338_v52  ;;  %v4076_v34 = vld [vmem:[#allocation2 + $0xb0] sm:$0x8]  ;;  %v9796_v44 = vld [vmem:[#allocation2 + $0xb4] sm:$0xf] }
 0x1b0   : > { %10898 = vst [vmem:[#allocation60_spill] sm:$0xff] %v9782_v9  ;;  %v9790_v38 = vadd.f32 %v10900_v60, %v10899_v35  ;;  %v7199_v19 = vcombine.low %v4241_v58, %v4250_v36  ;;  %v4262_v0 = vor.u32 %v4260_v61, %v4259_v7  ;;  %v4264_v45 = vrot.slane %v4259_v7, 4  ;;  %8076 = vmatprep.subr.bf16.mxu1 %v8339_v5  ;;  %v8343_v31 = vld [vmem:[%s8848_s27 + $0x248] sm:$0xff]   ;;  %v9798_v35 = vpop.f32.mrf.mxu0  ;;  %v9802_v7 = vld [vmem:[#allocation2 + $0xb8] sm:$0xf] }
 0x1b1   : > { %v4274_v12 = vshrl.u32 %v4073_v18, 16  ;;  %v9794_v27 = vpop.f32.mrf.mxu1  ;;  %v4271_v41 = vor.u32 %v4269_v62, %v4268_v20  ;;  %v4279_v55 = vshrl.u32 %v4074_v3, 16  ;;  %v4282_v57 = vshll.u32 %v4074_v3, 16  ;;  %v10902_v60 = vld [vmem:[#allocation35_spill] sm:$0xff] }
 0x1b2   : > { %10901 = vst [vmem:[#allocation29_spill] sm:$0xff] %v9790_v38  ;;  %v4288_v25 = vshrl.u32 %v4075_v8, 16  ;;  %7950 = vmatprep.mubr.bf16.mxu0 %v7199_v19  ;;  %v4263_v43 = vsel %vm8864_vm8, %v7168_v54, %v4262_v0  ;;  %v4291_v58 = vshll.u32 %v4075_v8, 16  ;;  %v7241_v18 = vcombine.low %v4074_v3, %v4075_v8  ;;  %8029 = vmatpush3.bf16.msra.mxu0 %v8338_v52  ;;  %v8346_v52 = vld [vmem:[%s8848_s27 + $0x200] sm:$0xff]   ;;  %v4081_v30 = vld [vmem:[#allocation2 + $0xc8] sm:$0xf] }
 0x1b3   : > { %v7169_v61 = vrot.slane %v4274_v12, 11  ;;  %v4272_v62 = vsel %vm8864_vm8, %v4264_v45, %v4271_v41  ;;  %v4281_v36 = vrot.slane %v4279_v55, 7  ;;  %v9808_v38 = vadd.f32 %v10902_v60, %v9525_v4  ;;  %8077 = vmatpush3.bf16.msra.mxu1 %v8339_v5  ;;  %8030 = vmatprep.subr.bf16.mxu0 %v8342_v6  ;;  %v9810_v54 = vpop.f32.mrf.mxu1  ;;  %v8347_v12 = vld [vmem:[%s8848_s27 + $0x240] sm:$0xff]   ;;  %v9817_v5 = vpop.f32.mrf.mxu0  ;;  %v10904_v60 = vld [vmem:[#allocation32_spill] sm:$0xff] }
 0x1b4   : > { %v4290_v20 = vrot.slane %v4288_v25, 7  ;;  %v7200_v19 = vcombine.low %v4263_v43, %v4272_v62  ;;  %v4296_v0 = vshrl.u32 %v4076_v34, 16  ;;  %v4301_v3 = vshrl.u32 %v9796_v44, 16  ;;  %8078 = vmatprep.subr.bf16.mxu1 %v8343_v31  ;;  %v4079_v25 = vld [vmem:[#allocation2 + $0xc0] sm:$0x8]  ;;  %v10905_v43 = vld [vmem:[#allocation33_spill] sm:$0xff] }
 0x1b5   : > { %10903 = vst [vmem:[#allocation31_spill] sm:$0xff] %v9808_v38  ;;  %v4304_v8 = vshll.u32 %v9796_v44, 16  ;;  %7999 = vmatmul.mubr.bf16.gmra.mxu1 %v7240_v50  ;;  %v4284_v45 = vor.u32 %v4282_v57, %v4281_v36  ;;  %v4286_v41 = vrot.slane %v4281_v36, 4  ;;  %v4310_v4 = vshrl.u32 %v9802_v7, 16  ;;  %v4080_v1 = vld [vmem:[#allocation2 + $0xc4] sm:$0xf] }
 0x1b6   : > { %v4293_v55 = vor.u32 %v4291_v58, %v4290_v20  ;;  %7951 = vmatmul.mubr.bf16.gmra.mxu0 %v7200_v19  ;;  %v9821_v34 = vadd.f32 %v10905_v43, %v10904_v60  ;;  %8002 = vmatprep.mubr.bf16.mxu1 %v7241_v18  ;;  %v7170_v62 = vrot.slane %v4296_v0, 11  ;;  %v4303_v38 = vrot.slane %v4301_v3, 7  ;;  %v10906_v36 = vld [vmem:[#allocation36_spill] sm:$0xff]  ;;  %v10907_v20 = vld [vmem:[#allocation37_spill] sm:$0xff]  ;;  %v9832_v18 = vpop.f32.mrf.mxu1 }
 0x1b7   : > { %v4313_v9 = vshll.u32 %v9802_v7, 16  ;;  %v4285_v50 = vsel %vm8864_vm8, %v7169_v61, %v4284_v45  ;;  %v4312_v58 = vrot.slane %v4310_v4, 7  ;;  %v9830_v19 = vadd.f32 %v10907_v20, %v10906_v36  ;;  %8031 = vmatpush3.bf16.msra.mxu0 %v8342_v6  ;;  %8079 = vmatpush3.bf16.msra.mxu1 %v8343_v31  ;;  %v4082_v4 = vld [vmem:[#allocation2 + $0xd0] sm:$0x8]  ;;  %v9840_v6 = vpop.f32.mrf.mxu0 }
 0x1b8   : > { %v4294_v57 = vsel %vm8864_vm8, %v4286_v41, %v4293_v55  ;;  %v4306_v3 = vor.u32 %v4304_v8, %v4303_v38  ;;  %v4308_v60 = vrot.slane %v4303_v38, 4  ;;  %v9836_v43 = vadd.f32 %v9543_v29, %v9541_v2  ;;  %8032 = vmatprep.subr.bf16.mxu0 %v8346_v52  ;;  %8080 = vmatprep.subr.bf16.mxu1 %v8347_v12  ;;  %v4083_v2 = vld [vmem:[#allocation2 + $0xd4] sm:$0xf] }
 0x1b9   : > { %v7201_v0 = vcombine.low %v4285_v50, %v4294_v57  ;;  %v4315_v61 = vor.u32 %v4313_v9, %v4312_v58  ;;  %v7242_v45 = vcombine.low %v9796_v44, %v9802_v7  ;;  %v4318_v41 = vshrl.u32 %v4079_v25, 16  ;;  %v4084_v44 = vld [vmem:[#allocation2 + $0xd8] sm:$0xf]  ;;  %v9846_v7 = vpop.f32.mrf.mxu1 }
 0x1ba   : > { %10908 = vst [vmem:[#allocation35_spill] sm:$0xff] %v9836_v43  ;;  %v4323_v55 = vshrl.u32 %v4080_v1, 16  ;;  %v4307_v31 = vsel %vm8864_vm8, %v7170_v62, %v4306_v3  ;;  %v4326_v38 = vshll.u32 %v4080_v1, 16  ;;  %v4332_v8 = vshrl.u32 %v4081_v30, 16 }
 0x1bb   : > { %7954 = vmatprep.mubr.bf16.mxu0 %v7201_v0  ;;  %v4335_v50 = vshll.u32 %v4081_v30, 16  ;;  %v4316_v29 = vsel %vm8864_vm8, %v4308_v60, %v4315_v61  ;;  %v7171_v9 = vrot.slane %v4318_v41, 11  ;;  %v7243_v58 = vcombine.low %v4080_v1, %v4081_v30  ;;  %8033 = vmatpush3.bf16.msra.mxu0 %v8346_v52  ;;  %v10910_v1 = vld [vmem:[#allocation39_spill] sm:$0xff] }
 0x1bc   : > { %v4325_v57 = vrot.slane %v4323_v55, 7  ;;  %8081 = vmatpush3.bf16.msra.mxu1 %v8347_v12  ;;  %v7202_v25 = vcombine.low %v4307_v31, %v4316_v29  ;;  %v4334_v36 = vrot.slane %v4332_v8, 7  ;;  %v9850_v62 = vadd.f32 %v9562_v11, %v9560_v15  ;;  %v4085_v55 = vld [vmem:[#allocation2 + $0xe0] sm:$0x8]  ;;  %v10913_v31 = vld [vmem:[#allocation41_spill] sm:$0xff] }
 0x1bd   : > { %v4340_v20 = vshrl.u32 %v4082_v4, 16  ;;  %8003 = vmatmul.mubr.bf16.gmra.mxu1 %v7242_v45  ;;  %v4345_v43 = vshrl.u32 %v4083_v2, 16  ;;  %v4348_v60 = vshll.u32 %v4083_v2, 16  ;;  %v9852_v61 = vpop.f32.mrf.mxu0  ;;  %v9856_v30 = vadd.f32 %v10910_v1, %v9549_v48  ;;  %v10912_v4 = vld [vmem:[#allocation40_spill] sm:$0xff]  ;;  %v4086_v8 = vld [vmem:[#allocation2 + $0xe4] sm:$0xf] }
 0x1be   : > { %10909 = vst [vmem:[#allocation32_spill] sm:$0xff] %v9850_v62  ;;  %v4328_v0 = vor.u32 %v4326_v38, %v4325_v57  ;;  %v4330_v3 = vrot.slane %v4325_v57, 4  ;;  %7955 = vmatmul.mubr.bf16.gmra.mxu0 %v7202_v25  ;;  %v4337_v52 = vor.u32 %v4335_v50, %v4334_v36  ;;  %8006 = vmatprep.mubr.bf16.mxu1 %v7243_v58  ;;  %v4354_v12 = vshrl.u32 %v4084_v44, 16  ;;  %v4087_v29 = vld [vmem:[#allocation2 + $0xe8] sm:$0xf]  ;;  %v9864_v57 = vpop.f32.mrf.mxu1 }
 0x1bf   : > { %10911 = vst [vmem:[#allocation33_spill] sm:$0xff] %v9856_v30  ;;  %v4357_v41 = vshll.u32 %v4084_v44, 16  ;;  %v7172_v11 = vrot.slane %v4340_v20, 11  ;;  %v4347_v45 = vrot.slane %v4345_v43, 7  ;;  %v9862_v38 = vadd.f32 %v10913_v31, %v10912_v4  ;;  %v4088_v1 = vld [vmem:[#allocation2 + $0xf0] sm:$0x8] }
 0x1c0   : > { %v4329_v15 = vsel %vm8864_vm8, %v7171_v9, %v4328_v0  ;;  %v4338_v48 = vsel %vm8864_vm8, %v4330_v3, %v4337_v52  ;;  %v4356_v50 = vrot.slane %v4354_v12, 7  ;;  %v7244_v58 = vcombine.low %v4083_v2, %v4084_v44  ;;  %v9872_v9 = vpop.f32.mrf.mxu0  ;;  %v4089_v30 = vld [vmem:[#allocation2 + $0xf4] sm:$0xf]  ;;  %v9876_v52 = vpop.f32.mrf.mxu1 }
 0x1c1   : > { %10914 = vst [vmem:[#allocation36_spill] sm:$0xff] %v9862_v38  ;;  %v9870_v25 = vadd.f32 %v9578_v47, %v9574_v13  ;;  %v7203_v43 = vcombine.low %v4329_v15, %v4338_v48  ;;  %v4350_v36 = vor.u32 %v4348_v60, %v4347_v45  ;;  %v4352_v20 = vrot.slane %v4347_v45, 4  ;;  %v4090_v47 = vld [vmem:[#allocation2 + $0xf8] sm:$0xf] }
 0x1c2   : > { %v4362_v0 = vshrl.u32 %v4085_v55, 16  ;;  %v4359_v4 = vor.u32 %v4357_v41, %v4356_v50  ;;  %v4367_v31 = vshrl.u32 %v4086_v8, 16  ;;  %v4370_v38 = vshll.u32 %v4086_v8, 16  ;;  %v9884_v15 = vpop.f32.mrf.mxu0 }
 0x1c3   : > { %v4376_v62 = vshrl.u32 %v4087_v29, 16  ;;  %7958 = vmatprep.mubr.bf16.mxu0 %v7203_v43  ;;  %v4351_v2 = vsel %vm8864_vm8, %v7172_v11, %v4350_v36  ;;  %v4379_v3 = vshll.u32 %v4087_v29, 16  ;;  %v7245_v13 = vcombine.low %v4086_v8, %v4087_v29 }
 0x1c4   : > { %v7173_v44 = vrot.slane %v4362_v0, 11  ;;  %v4360_v60 = vsel %vm8864_vm8, %v4352_v20, %v4359_v4  ;;  %v4369_v12 = vrot.slane %v4367_v31, 7  ;;  %v9882_v41 = vadd.f32 %v9602_v49, %v9596_v33  ;;  %v4091_v0 = vld [vmem:[#allocation2 + $0x100] sm:$0x8]  ;;  %v4092_v33 = vld [vmem:[#allocation2 + $0x104] sm:$0xf]  ;;  %v9886_v49 = vpop.f32.mrf.mxu1 }
 0x1c5   : > { %v4378_v55 = vrot.slane %v4376_v62, 7  ;;  %v7204_v45 = vcombine.low %v4351_v2, %v4360_v60  ;;  %8007 = vmatmul.mubr.bf16.gmra.mxu1 %v7244_v58  ;;  %v4384_v11 = vshrl.u32 %v4088_v1, 16  ;;  %v4389_v48 = vshrl.u32 %v4089_v30, 16 }
 0x1c6   : > { %v4392_v50 = vshll.u32 %v4089_v30, 16  ;;  %v4372_v8 = vor.u32 %v4370_v38, %v4369_v12  ;;  %v4374_v29 = vrot.slane %v4369_v12, 4  ;;  %8010 = vmatprep.mubr.bf16.mxu1 %v7245_v13  ;;  %v4398_v36 = vshrl.u32 %v4090_v47, 16  ;;  %v9896_v13 = vpop.f32.mrf.mxu0 }
 0x1c7   : > { %v4381_v43 = vor.u32 %v4379_v3, %v4378_v55  ;;  %7959 = vmatmul.mubr.bf16.gmra.mxu0 %v7204_v45  ;;  %v7174_v20 = vrot.slane %v4384_v11, 11  ;;  %v4391_v62 = vrot.slane %v4389_v48, 7  ;;  %v4401_v4 = vshll.u32 %v4090_v47, 16  ;;  %v4093_v3 = vld [vmem:[#allocation2 + $0x108] sm:$0xf]  ;;  %v10917_v55 = vld [vmem:[#allocation42_spill] sm:$0xff] }
 0x1c8   : > { %v7246_v31 = vcombine.low %v4089_v30, %v4090_v47  ;;  %v4373_v58 = vsel %vm8864_vm8, %v7173_v44, %v4372_v8  ;;  %v4400_v38 = vrot.slane %v4398_v36, 7  ;;  %v9894_v2 = vadd.f32 %v9617_v39, %v9607_v32  ;;  %v10918_v44 = vld [vmem:[#allocation44_spill] sm:$0xff]  ;;  %v4095_v36 = vld [vmem:[#allocation2 + $0x114] sm:$0xf] }
 0x1c9   : > { %v4382_v1 = vsel %vm8864_vm8, %v4374_v29, %v4381_v43  ;;  %v4394_v12 = vor.u32 %v4392_v50, %v4391_v62  ;;  %v4396_v30 = vrot.slane %v4391_v62, 4  ;;  %v9900_v47 = vadd.f32 %v9626_v51, %v9623_v42  ;;  %v4094_v29 = vld [vmem:[#allocation2 + $0x110] sm:$0x8]  ;;  %v9908_v62 = vpop.f32.mrf.mxu1 }
 0x1ca   : > { %10915 = vst [vmem:[#allocation37_spill] sm:$0xff] %v9894_v2  ;;  %v7205_v60 = vcombine.low %v4373_v58, %v4382_v1  ;;  %v9904_v45 = vadd.f32 %v10918_v44, %v10917_v55  ;;  %v4403_v11 = vor.u32 %v4401_v4, %v4400_v38  ;;  %v4406_v48 = vshrl.u32 %v4091_v0, 16  ;;  %v4096_v4 = vld [vmem:[#allocation2 + $0x118] sm:$0xf] }
 0x1cb   : > { %10916 = vst [vmem:[#allocation39_spill] sm:$0xff] %v9900_v47  ;;  %v4411_v8 = vshrl.u32 %v4092_v33, 16  ;;  %v4395_v32 = vsel %vm8864_vm8, %v7174_v20, %v4394_v12  ;;  %v4414_v39 = vshll.u32 %v4092_v33, 16  ;;  %v4420_v43 = vshrl.u32 %v4093_v3, 16 }
 0x1cc   : > { %7962 = vmatprep.mubr.bf16.mxu0 %v7205_v60  ;;  %v4423_v50 = vshll.u32 %v4093_v3, 16  ;;  %v4404_v51 = vsel %vm8864_vm8, %v4396_v30, %v4403_v11  ;;  %v7175_v42 = vrot.slane %v4406_v48, 11  ;;  %v7247_v1 = vcombine.low %v4092_v33, %v4093_v3  ;;  %v9912_v0 = vpop.f32.mrf.mxu0  ;;  %v10919_v30 = vld [vmem:[#allocation47_spill] sm:$0xff] }
 0x1cd   : > { %v4413_v58 = vrot.slane %v4411_v8, 7  ;;  %v7206_v38 = vcombine.low %v4395_v32, %v4404_v51  ;;  %8011 = vmatmul.mubr.bf16.gmra.mxu1 %v7246_v31  ;;  %v4422_v60 = vrot.slane %v4420_v43, 7  ;;  %v9916_v20 = vadd.f32 %v9652_v16, %v9646_v23  ;;  %v5125_v31 = vld [vmem:[#allocation2 + $0x24] sm:$0xf] }
 0x1ce   : > { %v4428_v12 = vshrl.u32 %v4094_v29, 16  ;;  %8014 = vmatprep.mubr.bf16.mxu1 %v7247_v1  ;;  %v4433_v47 = vshrl.u32 %v4095_v36, 16  ;;  %v4436_v2 = vshll.u32 %v4095_v36, 16  ;;  %v9920_v33 = vadd.f32 %v9640_v24, %v10919_v30  ;;  %v9922_v8 = vpop.f32.mrf.mxu1  ;;  %v9930_v43 = vpop.f32.mrf.mxu0  ;;  %v5127_v1 = vld [vmem:[#allocation2 + $0x2c] sm:$0x1] }
 0x1cf   : > { %v4416_v55 = vor.u32 %v4414_v39, %v4413_v58  ;;  %v4418_v44 = vrot.slane %v4413_v58, 4  ;;  %7963 = vmatmul.mubr.bf16.gmra.mxu0 %v7206_v38  ;;  %v4425_v3 = vor.u32 %v4423_v50, %v4422_v60  ;;  %v4442_v11 = vshrl.u32 %v4096_v4, 16  ;;  %v5126_v39 = vld [vmem:[#allocation2 + $0x28] sm:$0xf] }
 0x1d0   : > { %v4445_v48 = vshll.u32 %v4096_v4, 16  ;;  %v7176_v16 = vrot.slane %v4428_v12, 11  ;;  %v4435_v29 = vrot.slane %v4433_v47, 7  ;;  %v9928_v32 = vadd.f32 %v9673_v56, %v9660_v21 }
 0x1d1   : > { %v4417_v23 = vsel %vm8864_vm8, %v7175_v42, %v4416_v55  ;;  %v4426_v24 = vsel %vm8864_vm8, %v4418_v44, %v4425_v3  ;;  %v4444_v50 = vrot.slane %v4442_v11, 7  ;;  %v7248_v51 = vcombine.low %v4095_v36, %v4096_v4  ;;  %v9938_v42 = vpop.f32.mrf.mxu1  ;;  %v5129_v3 = vld [vmem:[#allocation2 + $0x38] sm:$0xf]  ;;  %v9944_v11 = vpop.f32.mrf.mxu0 }
 0x1d2   : > { %10920 = vst [vmem:[#allocation40_spill] sm:$0xff] %v9928_v32  ;;  %v9936_v58 = vadd.f32 %v9688_v53, %v9685_v14  ;;  %v7207_v47 = vcombine.low %v4417_v23, %v4426_v24  ;;  %v4438_v38 = vor.u32 %v4436_v2, %v4435_v29  ;;  %v4440_v60 = vrot.slane %v4435_v29, 4  ;;  %v5128_v32 = vld [vmem:[#allocation2 + $0x34] sm:$0xf]  ;;  %v10921_v14 = vld [vmem:[#allocation43_spill] sm:$0xff] }
 0x1d3   : > { %v5174_v21 = vshrl.u32 %v5125_v31, 16  ;;  %v4447_v56 = vor.u32 %v4445_v48, %v4444_v50  ;;  %v5177_v12 = vshll.u32 %v5125_v31, 16  ;;  %v5183_v55 = vshll.u32 %v5126_v39, 16  ;;  %v5130_v29 = vld [vmem:[#allocation2 + $0x3c] sm:$0x1]  ;;  %v10922_v50 = vld [vmem:[#allocation16_spill] sm:$0xff] }
 0x1d4   : > { %v5187_v30 = vshrl.u32 %v5126_v39, 16  ;;  %7966 = vmatprep.mubr.bf16.mxu0 %v7207_v47  ;;  %v4439_v36 = vsel %vm8864_vm8, %v7176_v16, %v4438_v38  ;;  %v5193_v44 = vshll.u32 %v5127_v1, 16  ;;  %v2187_v53 = vadd.f32 %v9712_v17, %v10921_v14  ;;  %v9948_v39 = vpop.f32.mrf.mxu1 }
 0x1d5   : > { %v5176_v4 = vrot.slane %v5174_v21, 4  ;;  %v4448_v2 = vsel %vm8864_vm8, %v4440_v60, %v4447_v56  ;;  %8015 = vmatmul.mubr.bf16.gmra.mxu1 %v7248_v51  ;;  %v5179_v48 = vrot.slane %v5177_v12, 5  ;;  %v5185_v31 = vrot.slane %v5183_v55, 5  ;;  %v10924_v12 = vld [vmem:[#allocation45_spill] sm:$0xff] }
 0x1d6   : > { %v5189_v23 = vrot.slane %v5187_v30, 4  ;;  %v7208_v24 = vcombine.low %v4439_v36, %v4448_v2  ;;  %v5195_v16 = vrot.slane %v5193_v44, 5  ;;  %8082 = vmatprep.mubr.bf16.mxu1 %v10922_v50  ;;  %v9952_v1 = vadd.f32 %v9717_v40, %v2187_v53  ;;  %v9956_v30 = vpop.f32.mrf.mxu0  ;;  %v5131_v40 = vld [vmem:[#allocation2 + $0x44] sm:$0xf]  ;;  %v9958_v53 = vpop.f32.mrf.mxu1 }
 0x1d7   : > { %v5198_v17 = vshrl.u32 %v5128_v32, 16  ;;  %v5180_v47 = vor.u32 %v5179_v48, %v5176_v4  ;;  %v5201_v21 = vshll.u32 %v5128_v32, 16  ;;  %v5207_v46 = vshll.u32 %v5129_v3, 16  ;;  %10925 = vst [vmem:[#allocation42_spill] sm:$0xff] %v9958_v53  ;;  %v10926_v4 = vld [vmem:[#allocation52_spill] sm:$0xff]  ;;  %v10927_v48 = vld [vmem:[#allocation53_spill] sm:$0xff] }
 0x1d8   : > { %10923 = vst [vmem:[#allocation41_spill] sm:$0xff] %v9952_v1  ;;  %v5190_v38 = vor.u32 %v5189_v23, %v5185_v31  ;;  %7967 = vmatmul.mubr.bf16.gmra.mxu0 %v7208_v24  ;;  %v5211_v60 = vshrl.u32 %v5129_v3, 16  ;;  %v5217_v56 = vshll.u32 %v5130_v29, 16  ;;  %v2185_v55 = vadd.f32 %v9721_v22, %v10924_v12  ;;  %v10929_v29 = vld [vmem:[#allocation46_spill] sm:$0xff]  ;;  %v5132_v24 = vld [vmem:[#allocation2 + $0x48] sm:$0xf] }
 0x1d9   : > { %v5200_v51 = vrot.slane %v5198_v17, 4  ;;  %v5181_v36 = vrot.slane %v5180_v47, 4  ;;  %v5203_v14 = vrot.slane %v5201_v21, 5  ;;  %v5209_v2 = vrot.slane %v5207_v46, 5  ;;  %v5133_v46 = vld [vmem:[#allocation2 + $0x4c] sm:$0x1] }
 0x1da   : > { %v5191_v44 = vrot.slane %v5190_v38, 4  ;;  %v9962_v32 = vadd.f32 %v10927_v48, %v10926_v4  ;;  %v5213_v23 = vrot.slane %v5211_v60, 4  ;;  %v9965_v3 = vadd.f32 %v9728_v10, %v2185_v55 }
 0x1db   : > { %v2188_v22 = vadd.f32 %v9738_v37, %v10929_v29  ;;  %v5186_v17 = vsel %vm9165_vm11, %v5181_v36, %v5185_v31  ;;  %v5204_v38 = vor.u32 %v5203_v14, %v5200_v51  ;;  %v5219_v21 = vrot.slane %v5217_v56, 5  ;;  %v9976_v55 = vpop.f32.mrf.mxu0  ;;  %v10932_v37 = vld [vmem:[#allocation17_spill] sm:$0xff] }
 0x1dc   : > { %10928 = vst [vmem:[#allocation44_spill] sm:$0xff] %v9965_v3  ;;  %v5196_v47 = vsel %vm9165_vm11, %v5191_v44, %v5195_v16  ;;  %v5214_v4 = vor.u32 %v5213_v23, %v5209_v2  ;;  %v5222_v10 = vshrl.u32 %v5131_v40, 16  ;;  %v10933_v29 = vld [vmem:[#allocation49_spill] sm:$0xff]  ;;  %v5225_v36 = vshll.u32 %v5131_v40, 16  ;;  %v10934_v23 = vld [vmem:[#allocation18_spill] sm:$0xff] }
 0x1dd   : > { %v7273_v12 = vcombine.low %v5186_v17, %v5196_v47  ;;  %v9974_v60 = vadd.f32 %v9748_v26, %v2188_v22  ;;  %v5205_v48 = vrot.slane %v5204_v38, 4  ;;  %8083 = vmatmul.mubr.bf16.vlgmr.msra.gmra.mxu1 %v10932_v37  ;;  %v2186_v31 = vadd.f32 %v9754_v63, %v10933_v29  ;;  %v5134_v16 = vld [vmem:[#allocation2 + $0x54] sm:$0xf]  ;;  %v9981_v51 = vpop.f32.mrf.mxu1  ;;  %v10935_v38 = vld [vmem:[#allocation48_spill] sm:$0xff]  ;;  %v5135_v40 = vld [vmem:[#allocation2 + $0x58] sm:$0xf] }
 0x1de   : > { %v5231_v53 = vshll.u32 %v5132_v24, 16  ;;  %v5215_v56 = vrot.slane %v5214_v4, 4  ;;  %v5224_v44 = vrot.slane %v5222_v10, 4  ;;  %v5235_v14 = vshrl.u32 %v5132_v24, 16  ;;  %8086 = vmatprep.mubr.bf16.mxu1 %v10934_v23  ;;  %v5136_v4 = vld [vmem:[#allocation2 + $0x5c] sm:$0x1]  ;;  %v9990_v24 = vpop.f32.mrf.mxu0 }
 0x1df   : > { %10931 = vst [vmem:[#allocation47_spill] sm:$0xff] %v9974_v60  ;;  %8034 = vmatprep.mubr.bf16.mxu0 %v7273_v12  ;;  %v5241_v26 = vshll.u32 %v5133_v46, 16  ;;  %v5210_v22 = vsel %vm9165_vm11, %v5205_v48, %v5209_v2  ;;  %v5227_v17 = vrot.slane %v5225_v36, 5  ;;  %v2191_v63 = vadd.f32 %v9776_v28, %v10935_v38 }
 0x1e0   : > { %v5233_v47 = vrot.slane %v5231_v53, 5  ;;  %v5220_v37 = vsel %vm9165_vm11, %v5215_v56, %v5219_v21  ;;  %v5237_v29 = vrot.slane %v5235_v14, 4  ;;  %v5246_v10 = vshrl.u32 %v5134_v16, 16  ;;  %v9995_v53 = vpop.f32.mrf.mxu1 }
 0x1e1   : > { %v5243_v12 = vrot.slane %v5241_v26, 5  ;;  %v7274_v46 = vcombine.low %v5210_v22, %v5220_v37  ;;  %v5228_v23 = vor.u32 %v5227_v17, %v5224_v44  ;;  %v9993_v60 = vadd.f32 %v9794_v27, %v2191_v63  ;;  %v10936_v26 = vld [vmem:[#allocation50_spill] sm:$0xff]  ;;  %v10937_v17 = vld [vmem:[#allocation51_spill] sm:$0xff]  ;;  %v10001_v63 = vpop.f32.mrf.mxu0 }
 0x1e2   : > { %v5249_v2 = vshll.u32 %v5134_v16, 16  ;;  %v5238_v48 = vor.u32 %v5237_v29, %v5233_v47  ;;  %v5248_v28 = vrot.slane %v5246_v10, 4  ;;  %v5255_v36 = vshll.u32 %v5135_v40, 16  ;;  %v5137_v16 = vld [vmem:[#allocation2 + $0x64] sm:$0xf] }
 0x1e3   : > { %v5259_v38 = vshrl.u32 %v5135_v40, 16  ;;  %8035 = vmatmul.mubr.bf16.vlgmr.msra.gmra.mxu0 %v7274_v46  ;;  %v5229_v21 = vrot.slane %v5228_v23, 4  ;;  %v5265_v14 = vshll.u32 %v5136_v4, 16  ;;  %v2189_v3 = vadd.f32 %v9798_v35, %v10936_v26  ;;  %v10938_v4 = vld [vmem:[#allocation19_spill] sm:$0xff]  ;;  %v10012_v46 = vpop.f32.mrf.mxu1 }
 0x1e4   : > { %v5251_v56 = vrot.slane %v5249_v2, 5  ;;  %v5239_v1 = vrot.slane %v5238_v48, 4  ;;  %v5257_v22 = vrot.slane %v5255_v36, 5  ;;  %v2192_v27 = vadd.f32 %v9817_v5, %v10937_v17  ;;  %v5138_v10 = vld [vmem:[#allocation2 + $0x68] sm:$0xf]  ;;  %v10940_v48 = vld [vmem:[#allocation20_spill] sm:$0xff] }
 0x1e5   : > { %v5261_v44 = vrot.slane %v5259_v38, 4  ;;  %v10004_v37 = vadd.f32 %v9768_v59, %v2186_v31  ;;  %v5234_v40 = vsel %vm9165_vm11, %v5229_v21, %v5233_v47  ;;  %8087 = vmatmul.mubr.bf16.gmra.mxu1 %v10938_v4  ;;  %v10010_v35 = vadd.f32 %v9810_v54, %v2189_v3  ;;  %v5139_v31 = vld [vmem:[#allocation2 + $0x6c] sm:$0x1]  ;;  %v10941_v3 = vld [vmem:[#allocation55_spill] sm:$0xff]  ;;  %v5140_v17 = vld [vmem:[#allocation2 + $0x74] sm:$0xf] }
 0x1e6   : > { %v5252_v29 = vor.u32 %v5251_v56, %v5248_v28  ;;  %v5244_v5 = vsel %vm9165_vm11, %v5239_v1, %v5243_v12  ;;  %v5267_v2 = vrot.slane %v5265_v14, 5  ;;  %v10017_v59 = vadd.f32 %v9832_v18, %v2192_v27  ;;  %8090 = vmatprep.mubr.bf16.mxu1 %v10940_v48  ;;  %v10022_v1 = vpop.f32.mrf.mxu0  ;;  %v5141_v27 = vld [vmem:[#allocation2 + $0x78] sm:$0xf]  ;;  %v10942_v4 = vld [vmem:[#allocation54_spill] sm:$0xff] }
 0x1e7   : > { %v5262_v23 = vor.u32 %v5261_v44, %v5257_v22  ;;  %v7275_v47 = vcombine.low %v5234_v40, %v5244_v5  ;;  %v5270_v36 = vshrl.u32 %v5137_v16, 16  ;;  %v5273_v38 = vshll.u32 %v5137_v16, 16  ;;  %v10026_v40 = vpop.f32.mrf.mxu1  ;;  %v5142_v5 = vld [vmem:[#allocation2 + $0x7c] sm:$0x1] }
 0x1e8   : > { %10939 = vst [vmem:[#allocation43_spill] sm:$0xff] %v10017_v59  ;;  %v5253_v28 = vrot.slane %v5252_v29, 4  ;;  %v2190_v21 = vadd.f32 %v9840_v6, %v10941_v3  ;;  %v5279_v56 = vshll.u32 %v5138_v10, 16  ;;  %v5283_v26 = vshrl.u32 %v5138_v10, 16  ;;  %v10943_v59 = vld [vmem:[#allocation21_spill] sm:$0xff] }
 0x1e9   : > { %v5263_v54 = vrot.slane %v5262_v23, 4  ;;  %8038 = vmatprep.mubr.bf16.mxu0 %v7275_v47  ;;  %v5272_v12 = vrot.slane %v5270_v36, 4  ;;  %v5275_v14 = vrot.slane %v5273_v38, 5  ;;  %v5289_v44 = vshll.u32 %v5139_v31, 16 }
 0x1ea   : > { %v5258_v18 = vsel %vm9165_vm11, %v5253_v28, %v5257_v22  ;;  %v5281_v29 = vrot.slane %v5279_v56, 5  ;;  %v5285_v6 = vrot.slane %v5283_v26, 4  ;;  %v2195_v10 = vadd.f32 %v9852_v61, %v10942_v4  ;;  %v10035_v38 = vpop.f32.mrf.mxu0 }
 0x1eb   : > { %v5268_v16 = vsel %vm9165_vm11, %v5263_v54, %v5267_v2  ;;  %v5276_v48 = vor.u32 %v5275_v14, %v5272_v12  ;;  %v5291_v47 = vrot.slane %v5289_v44, 5  ;;  %v5294_v3 = vshrl.u32 %v5140_v17, 16  ;;  %v10944_v44 = vld [vmem:[#allocation56_spill] sm:$0xff] }
 0x1ec   : > { %v7276_v23 = vcombine.low %v5258_v18, %v5268_v16  ;;  %v5286_v22 = vor.u32 %v5285_v6, %v5281_v29  ;;  %v10033_v28 = vadd.f32 %v9864_v57, %v2195_v10  ;;  %v5297_v31 = vshll.u32 %v5140_v17, 16  ;;  %v5143_v16 = vld [vmem:[#allocation2 + $0x84] sm:$0xf]  ;;  %v10945_v17 = vld [vmem:[#allocation22_spill] sm:$0xff]  ;;  %v10946_v10 = vld [vmem:[#allocation57_spill] sm:$0xff] }
 0x1ed   : > { %v5303_v36 = vshll.u32 %v5141_v27, 16  ;;  %v5277_v2 = vrot.slane %v5276_v48, 4  ;;  %v5296_v54 = vrot.slane %v5294_v3, 4  ;;  %v5307_v56 = vshrl.u32 %v5141_v27, 16  ;;  %8091 = vmatmul.mubr.bf16.gmra.mxu1 %v10943_v59  ;;  %v10038_v61 = vpop.f32.mrf.mxu1 }
 0x1ee   : > { %8039 = vmatmul.mubr.bf16.gmra.mxu0 %v7276_v23  ;;  %v5313_v26 = vshll.u32 %v5142_v5, 16  ;;  %v5287_v18 = vrot.slane %v5286_v22, 4  ;;  %v5299_v12 = vrot.slane %v5297_v31, 5  ;;  %v2193_v57 = vadd.f32 %v9872_v9, %v10944_v44  ;;  %8094 = vmatprep.mubr.bf16.mxu1 %v10945_v17  ;;  %v5144_v5 = vld [vmem:[#allocation2 + $0x88] sm:$0xf]  ;;  %v10055_v31 = vpop.f32.mrf.mxu0 }
 0x1ef   : > { %v5305_v14 = vrot.slane %v5303_v36, 5  ;;  %v10044_v6 = vadd.f32 %v9846_v7, %v2190_v21  ;;  %v5282_v27 = vsel %vm9165_vm11, %v5277_v2, %v5281_v29  ;;  %v5309_v4 = vrot.slane %v5307_v56, 4  ;;  %v5145_v22 = vld [vmem:[#allocation2 + $0x8c] sm:$0x1]  ;;  %v10060_v2 = vpop.f32.mrf.mxu1  ;;  %v10949_v56 = vld [vmem:[#allocation59_spill] sm:$0xff] }
 0x1f0   : > { %v2196_v59 = vadd.f32 %v9884_v15, %v10946_v10  ;;  %v5292_v23 = vsel %vm9165_vm11, %v5287_v18, %v5291_v47  ;;  %v5300_v48 = vor.u32 %v5299_v12, %v5296_v54  ;;  %v5315_v3 = vrot.slane %v5313_v26, 5  ;;  %v5146_v18 = vld [vmem:[#allocation2 + $0x94] sm:$0xf] }
 0x1f1   : > { %v10053_v9 = vadd.f32 %v9876_v52, %v2193_v57  ;;  %v7277_v7 = vcombine.low %v5282_v27, %v5292_v23  ;;  %v5310_v21 = vor.u32 %v5309_v4, %v5305_v14  ;;  %v5318_v36 = vshrl.u32 %v5143_v16, 16  ;;  %v10950_v4 = vld [vmem:[#allocation58_spill] sm:$0xff]  ;;  %v10068_v23 = vpop.f32.mrf.mxu0 }
 0x1f2   : > { %v10058_v29 = vadd.f32 %v9886_v49, %v2196_v59  ;;  %v5301_v15 = vrot.slane %v5300_v48, 4  ;;  %v2194_v47 = vadd.f32 %v9896_v13, %v10949_v56  ;;  %v5321_v54 = vshll.u32 %v5143_v16, 16  ;;  %v5147_v59 = vld [vmem:[#allocation2 + $0x98] sm:$0xf]  ;;  %v10952_v56 = vld [vmem:[#allocation24_spill] sm:$0xff] }
 0x1f3   : > { %10947 = vst [vmem:[#allocation16_spill] sm:$0xff] %v10053_v9  ;;  %v5327_v26 = vshll.u32 %v5144_v5, 16  ;;  %8042 = vmatprep.mubr.bf16.mxu0 %v7277_v7  ;;  %v5311_v52 = vrot.slane %v5310_v21, 4  ;;  %v5320_v12 = vrot.slane %v5318_v36, 4  ;;  %v5331_v44 = vshrl.u32 %v5144_v5, 16  ;;  %v10951_v5 = vld [vmem:[#allocation23_spill] sm:$0xff]  ;;  %v10081_v9 = vpop.f32.mrf.mxu0 }
 0x1f4   : > { %10948 = vst [vmem:[#allocation45_spill] sm:$0xff] %v10058_v29  ;;  %v5337_v57 = vshll.u32 %v5145_v22, 16  ;;  %v5306_v17 = vsel %vm9165_vm11, %v5301_v15, %v5305_v14  ;;  %v5323_v49 = vrot.slane %v5321_v54, 5  ;;  %v2199_v10 = vadd.f32 %v9912_v0, %v10950_v4  ;;  %v5148_v7 = vld [vmem:[#allocation2 + $0x9c] sm:$0x1]  ;;  %v10073_v22 = vpop.f32.mrf.mxu1  ;;  %v10953_v29 = vld [vmem:[#allocation60_spill] sm:$0xff] }
 0x1f5   : > { %v5329_v27 = vrot.slane %v5327_v26, 5  ;;  %v5316_v13 = vsel %vm9165_vm11, %v5311_v52, %v5315_v3  ;;  %v5333_v16 = vrot.slane %v5331_v44, 4  ;;  %v5342_v21 = vshrl.u32 %v5146_v18, 16  ;;  %8095 = vmatmul.mubr.bf16.gmra.mxu1 %v10951_v5 }
 0x1f6   : > { %v5339_v48 = vrot.slane %v5337_v57, 5  ;;  %v7278_v14 = vcombine.low %v5306_v17, %v5316_v13  ;;  %v5324_v36 = vor.u32 %v5323_v49, %v5320_v12  ;;  %v10076_v15 = vadd.f32 %v9922_v8, %v2199_v10  ;;  %8098 = vmatprep.mubr.bf16.mxu1 %v10952_v56  ;;  %v10954_v49 = vld [vmem:[#allocation29_spill] sm:$0xff]  ;;  %v5149_v10 = vld [vmem:[#allocation2 + $0xa4] sm:$0xf]  ;;  %v10085_v13 = vpop.f32.mrf.mxu1 }
 0x1f7   : > { %v5345_v0 = vshll.u32 %v5146_v18, 16  ;;  %v5334_v54 = vor.u32 %v5333_v16, %v5329_v27  ;;  %v5344_v26 = vrot.slane %v5342_v21, 4  ;;  %v5351_v4 = vshll.u32 %v5147_v59, 16 }
 0x1f8   : > { %v5355_v3 = vshrl.u32 %v5147_v59, 16  ;;  %8043 = vmatmul.mubr.bf16.gmra.mxu0 %v7278_v14  ;;  %v5325_v52 = vrot.slane %v5324_v36, 4  ;;  %v5361_v57 = vshll.u32 %v5148_v7, 16  ;;  %v2197_v5 = vadd.f32 %v9930_v43, %v10953_v29  ;;  %v5150_v29 = vld [vmem:[#allocation2 + $0xa8] sm:$0xf] }
 0x1f9   : > { %v5347_v44 = vrot.slane %v5345_v0, 5  ;;  %v5335_v12 = vrot.slane %v5334_v54, 4  ;;  %v5353_v17 = vrot.slane %v5351_v4, 5  ;;  %v2200_v18 = vadd.f32 %v9944_v11, %v10954_v49  ;;  %v5151_v0 = vld [vmem:[#allocation2 + $0xac] sm:$0x1]  ;;  %v10956_v49 = vld [vmem:[#allocation26_spill] sm:$0xff] }
 0x1fa   : > { %v5357_v8 = vrot.slane %v5355_v3, 4  ;;  %v10088_v59 = vadd.f32 %v9908_v62, %v2194_v47  ;;  %v5330_v16 = vsel %vm9165_vm11, %v5325_v52, %v5329_v27  ;;  %v10093_v43 = vadd.f32 %v9938_v42, %v2197_v5  ;;  %v10955_v52 = vld [vmem:[#allocation25_spill] sm:$0xff] }
 0x1fb   : > { %v5348_v7 = vor.u32 %v5347_v44, %v5344_v26  ;;  %v5340_v21 = vsel %vm9165_vm11, %v5335_v12, %v5339_v48  ;;  %v5363_v36 = vrot.slane %v5361_v57, 5  ;;  %v10098_v11 = vadd.f32 %v9948_v39, %v2200_v18  ;;  %v5152_v48 = vld [vmem:[#allocation2 + $0xb4] sm:$0xf] }
 0x1fc   : > { %v5358_v14 = vor.u32 %v5357_v8, %v5353_v17  ;;  %v7279_v56 = vcombine.low %v5330_v16, %v5340_v21  ;;  %v5366_v47 = vshrl.u32 %v5149_v10, 16  ;;  %v5369_v54 = vshll.u32 %v5149_v10, 16  ;;  %v10100_v4 = vpop.f32.mrf.mxu0  ;;  %v10107_v44 = vpop.f32.mrf.mxu1  ;;  %v5153_v8 = vld [vmem:[#allocation2 + $0xb8] sm:$0xf]  ;;  %v10957_v16 = vld [vmem:[#allocation31_spill] sm:$0xff] }
 0x1fd   : > { %v5349_v62 = vrot.slane %v5348_v7, 4  ;;  %v10104_v42 = vadd.f32 %v9956_v30, %v9821_v34  ;;  %v5375_v26 = vshll.u32 %v5150_v29, 16  ;;  %v5379_v3 = vshrl.u32 %v5150_v29, 16  ;;  %8099 = vmatmul.mubr.bf16.gmra.mxu1 %v10955_v52  ;;  %v5154_v29 = vld [vmem:[#allocation2 + $0xbc] sm:$0x1] }
 0x1fe   : > { %v5359_v27 = vrot.slane %v5358_v14, 4  ;;  %8046 = vmatprep.mubr.bf16.mxu0 %v7279_v56  ;;  %v5368_v57 = vrot.slane %v5366_v47, 4  ;;  %v5371_v5 = vrot.slane %v5369_v54, 5  ;;  %v5385_v12 = vshll.u32 %v5151_v0, 16  ;;  %8102 = vmatprep.mubr.bf16.mxu1 %v10956_v49  ;;  %v10112_v18 = vpop.f32.mrf.mxu0  ;;  %v10121_v52 = vpop.f32.mrf.mxu1 }
 0x1ff   : > { %v5354_v39 = vsel %vm9165_vm11, %v5349_v62, %v5353_v17  ;;  %v5377_v30 = vrot.slane %v5375_v26, 5  ;;  %v5381_v10 = vrot.slane %v5379_v3, 4  ;;  %v2203_v7 = vadd.f32 %v9976_v55, %v10957_v16 }
 0x200   : > { %v5364_v34 = vsel %vm9165_vm11, %v5359_v27, %v5363_v36  ;;  %v5372_v14 = vor.u32 %v5371_v5, %v5368_v57  ;;  %v5387_v17 = vrot.slane %v5385_v12, 5  ;;  %v5390_v56 = vshrl.u32 %v5152_v48, 16  ;;  %v10123_v49 = vpop.f32.mrf.mxu0  ;;  %v5155_v12 = vld [vmem:[#allocation2 + $0xc4] sm:$0xf] }
 0x201   : > { %v7280_v21 = vcombine.low %v5354_v39, %v5364_v34  ;;  %v5382_v62 = vor.u32 %v5381_v10, %v5377_v30  ;;  %v10119_v0 = vadd.f32 %v9981_v51, %v2203_v7  ;;  %v5393_v47 = vshll.u32 %v5152_v48, 16  ;;  %v10958_v10 = vld [vmem:[#allocation35_spill] sm:$0xff] }
 0x202   : > { %v5399_v54 = vshll.u32 %v5153_v8, 16  ;;  %v5373_v36 = vrot.slane %v5372_v14, 4  ;;  %v5392_v27 = vrot.slane %v5390_v56, 4  ;;  %v5403_v26 = vshrl.u32 %v5153_v8, 16  ;;  %v5156_v7 = vld [vmem:[#allocation2 + $0xc8] sm:$0xf] }
 0x203   : > { %8047 = vmatmul.mubr.bf16.gmra.mxu0 %v7280_v21  ;;  %v5409_v55 = vshll.u32 %v5154_v29, 16  ;;  %v5383_v3 = vrot.slane %v5382_v62, 4  ;;  %v5395_v39 = vrot.slane %v5393_v47, 5  ;;  %v2201_v5 = vadd.f32 %v9990_v24, %v9830_v19  ;;  %v10959_v14 = vld [vmem:[#allocation33_spill] sm:$0xff]  ;;  %v5157_v24 = vld [vmem:[#allocation2 + $0xcc] sm:$0x1]  ;;  %v10141_v62 = vpop.f32.mrf.mxu0 }
 0x204   : > { %v5401_v57 = vrot.slane %v5399_v54, 5  ;;  %v5378_v51 = vsel %vm9165_vm11, %v5373_v36, %v5377_v30  ;;  %v5405_v48 = vrot.slane %v5403_v26, 4  ;;  %v2204_v16 = vadd.f32 %v10001_v63, %v10958_v10  ;;  %v10960_v56 = vld [vmem:[#allocation27_spill] sm:$0xff]  ;;  %v10139_v30 = vpop.f32.mrf.mxu1  ;;  %v10961_v36 = vld [vmem:[#allocation28_spill] sm:$0xff] }
 0x205   : > { %v5411_v34 = vrot.slane %v5409_v55, 5  ;;  %v5388_v8 = vsel %vm9165_vm11, %v5383_v3, %v5387_v17  ;;  %v5396_v29 = vor.u32 %v5395_v39, %v5392_v27  ;;  %v10134_v21 = vadd.f32 %v9995_v53, %v2201_v5  ;;  %8103 = vmatmul.mubr.bf16.gmra.mxu1 %v10960_v56  ;;  %v5158_v55 = vld [vmem:[#allocation2 + $0xd4] sm:$0xf] }
 0x206   : > { %v2202_v19 = vadd.f32 %v10022_v1, %v10959_v14  ;;  %v7281_v47 = vcombine.low %v5378_v51, %v5388_v8  ;;  %v5406_v63 = vor.u32 %v5405_v48, %v5401_v57  ;;  %v10144_v54 = vadd.f32 %v10012_v46, %v2204_v16  ;;  %8106 = vmatprep.mubr.bf16.mxu1 %v10961_v36  ;;  %v10963_v16 = vld [vmem:[#allocation32_spill] sm:$0xff]  ;;  %v10154_v14 = vpop.f32.mrf.mxu1 }
 0x207   : > { %v5414_v17 = vshrl.u32 %v5155_v12, 16  ;;  %v5397_v53 = vrot.slane %v5396_v29, 4  ;;  %v5417_v1 = vshll.u32 %v5155_v12, 16  ;;  %v5423_v26 = vshll.u32 %v5156_v7, 16  ;;  %v5159_v29 = vld [vmem:[#allocation2 + $0xd8] sm:$0xf] }
 0x208   : > { %v10148_v27 = vadd.f32 %v10026_v40, %v2202_v19  ;;  %8050 = vmatprep.mubr.bf16.mxu0 %v7281_v47  ;;  %v5407_v3 = vrot.slane %v5406_v63, 4  ;;  %v5427_v5 = vshrl.u32 %v5156_v7, 16  ;;  %v5433_v10 = vshll.u32 %v5157_v24, 16  ;;  %v5160_v7 = vld [vmem:[#allocation2 + $0xdc] sm:$0x1] }
 0x209   : > { %v5416_v39 = vrot.slane %v5414_v17, 4  ;;  %v5402_v51 = vsel %vm9165_vm11, %v5397_v53, %v5401_v57  ;;  %v5419_v46 = vrot.slane %v5417_v1, 5  ;;  %v5425_v48 = vrot.slane %v5423_v26, 5  ;;  %v10156_v40 = vpop.f32.mrf.mxu0 }
 0x20a   : > { %10962 = vst [vmem:[#allocation52_spill] sm:$0xff] %v10148_v27  ;;  %v2207_v8 = vadd.f32 %v10035_v38, %v10963_v16  ;;  %v5412_v12 = vsel %vm9165_vm11, %v5407_v3, %v5411_v34  ;;  %v5429_v19 = vrot.slane %v5427_v5, 4  ;;  %v5435_v56 = vrot.slane %v5433_v10, 5  ;;  %v10965_v3 = vld [vmem:[#allocation36_spill] sm:$0xff]  ;;  %v10966_v10 = vld [vmem:[#allocation30_spill] sm:$0xff] }
 0x20b   : > { %v5438_v24 = vshrl.u32 %v5158_v55, 16  ;;  %v7282_v47 = vcombine.low %v5402_v51, %v5412_v12  ;;  %v5420_v63 = vor.u32 %v5419_v46, %v5416_v39  ;;  %v5441_v17 = vshll.u32 %v5158_v55, 16  ;;  %v10163_v36 = vpop.f32.mrf.mxu0  ;;  %v10967_v12 = vld [vmem:[#allocation34_spill] sm:$0xff] }
 0x20c   : > { %v10161_v57 = vadd.f32 %v10038_v61, %v2207_v8  ;;  %v5430_v38 = vor.u32 %v5429_v19, %v5425_v48  ;;  %v5447_v1 = vshll.u32 %v5159_v29, 16  ;;  %v5451_v26 = vshrl.u32 %v5159_v29, 16  ;;  %v5161_v29 = vld [vmem:[#allocation2 + $0xe4] sm:$0xf] }
 0x20d   : > { %v5440_v53 = vrot.slane %v5438_v24, 4  ;;  %8051 = vmatmul.mubr.bf16.gmra.mxu0 %v7282_v47  ;;  %v5421_v16 = vrot.slane %v5420_v63, 4  ;;  %v5443_v27 = vrot.slane %v5441_v17, 5  ;;  %v5457_v34 = vshll.u32 %v5160_v7, 16  ;;  %8107 = vmatmul.mubr.bf16.gmra.mxu1 %v10966_v10  ;;  %v10168_v39 = vpop.f32.mrf.mxu1  ;;  %v10170_v61 = vpop.f32.mrf.mxu0  ;;  %v5162_v47 = vld [vmem:[#allocation2 + $0xe8] sm:$0xf] }
 0x20e   : > { %10964 = vst [vmem:[#allocation53_spill] sm:$0xff] %v10161_v57  ;;  %v2205_v5 = vadd.f32 %v10055_v31, %v10965_v3  ;;  %v5431_v55 = vrot.slane %v5430_v38, 4  ;;  %v5449_v51 = vrot.slane %v5447_v1, 5  ;;  %v5453_v46 = vrot.slane %v5451_v26, 4  ;;  %8110 = vmatprep.mubr.bf16.mxu1 %v10967_v12 }
 0x20f   : > { %v2208_v8 = vadd.f32 %v10068_v23, %v9870_v25  ;;  %v5426_v19 = vsel %vm9165_vm11, %v5421_v16, %v5425_v48  ;;  %v5444_v7 = vor.u32 %v5443_v27, %v5440_v53  ;;  %v5459_v31 = vrot.slane %v5457_v34, 5  ;;  %v10180_v63 = vpop.f32.mrf.mxu1  ;;  %v10182_v17 = vpop.f32.mrf.mxu0  ;;  %v5163_v27 = vld [vmem:[#allocation2 + $0xec] sm:$0x1] }
 0x210   : > { %v10178_v24 = vadd.f32 %v10060_v2, %v2205_v5  ;;  %v5436_v38 = vsel %vm9165_vm11, %v5431_v55, %v5435_v56  ;;  %v5454_v25 = vor.u32 %v5453_v46, %v5449_v51  ;;  %v2206_v48 = vadd.f32 %v10081_v9, %v9904_v45 }
 0x211   : > { %v10187_v23 = vadd.f32 %v10073_v22, %v2208_v8  ;;  %v7283_v53 = vcombine.low %v5426_v19, %v5436_v38  ;;  %v5445_v1 = vrot.slane %v5444_v7, 4  ;;  %v5462_v2 = vshrl.u32 %v5161_v29, 16  ;;  %v10191_v16 = vpop.f32.mrf.mxu1  ;;  %v10193_v34 = vpop.f32.mrf.mxu0  ;;  %v5164_v22 = vld [vmem:[#allocation2 + $0xf4] sm:$0xf]  ;;  %v5165_v8 = vld [vmem:[#allocation2 + $0xf8] sm:$0xf] }
 0x212   : > { %10968 = vst [vmem:[#allocation46_spill] sm:$0xff] %v10178_v24  ;;  %v5465_v26 = vshll.u32 %v5161_v29, 16  ;;  %v5455_v3 = vrot.slane %v5454_v25, 4  ;;  %v10196_v5 = vadd.f32 %v10085_v13, %v2206_v48  ;;  %v5471_v56 = vshll.u32 %v5162_v47, 16  ;;  %v5166_v38 = vld [vmem:[#allocation2 + $0xfc] sm:$0x1] }
 0x213   : > { %10969 = vst [vmem:[#allocation15_spill] sm:$0xff] %v10187_v23  ;;  %v5475_v10 = vshrl.u32 %v5162_v47, 16  ;;  %8054 = vmatprep.mubr.bf16.mxu0 %v7283_v53  ;;  %v5450_v45 = vsel %vm9165_vm11, %v5445_v1, %v5449_v51  ;;  %v5464_v9 = vrot.slane %v5462_v2, 4  ;;  %v5481_v46 = vshll.u32 %v5163_v27, 16  ;;  %v10200_v29 = vpop.f32.mrf.mxu1  ;;  %v10202_v12 = vpop.f32.mrf.mxu0  ;;  %v10971_v1 = vld [vmem:[#allocation38_spill] sm:$0xff] }
 0x214   : > { %10970 = vst [vmem:[#allocation17_spill] sm:$0xff] %v10196_v5  ;;  %v5467_v55 = vrot.slane %v5465_v26, 5  ;;  %v5460_v19 = vsel %vm9165_vm11, %v5455_v3, %v5459_v31  ;;  %v5473_v13 = vrot.slane %v5471_v56, 5  ;;  %v2211_v47 = vadd.f32 %v10100_v4, %v9882_v41 }
 0x215   : > { %v5477_v7 = vrot.slane %v5475_v10, 4  ;;  %v7284_v25 = vcombine.low %v5450_v45, %v5460_v19  ;;  %v5483_v51 = vrot.slane %v5481_v46, 5  ;;  %v5486_v53 = vshrl.u32 %v5164_v22, 16  ;;  %8111 = vmatmul.mubr.bf16.gmra.mxu1 %v10971_v1  ;;  %v10209_v27 = vpop.f32.mrf.mxu0  ;;  %v10973_v19 = vld [vmem:[#allocation37_spill] sm:$0xff]  ;;  %v5167_v1 = vld [vmem:[#allocation2 + $0x104] sm:$0xf] }
 0x216   : > { %v5468_v48 = vor.u32 %v5467_v55, %v5464_v9  ;;  %v10212_v26 = vadd.f32 %v10107_v44, %v2211_v47  ;;  %v5489_v5 = vshll.u32 %v5164_v22, 16  ;;  %v5495_v31 = vshll.u32 %v5165_v8, 16 }
 0x217   : > { %v5478_v2 = vor.u32 %v5477_v7, %v5473_v13  ;;  %8055 = vmatmul.mubr.bf16.gmra.mxu0 %v7284_v25  ;;  %v5488_v56 = vrot.slane %v5486_v53, 4  ;;  %v5499_v10 = vshrl.u32 %v5165_v8, 16  ;;  %v5505_v41 = vshll.u32 %v5166_v38, 16  ;;  %v10214_v4 = vpop.f32.mrf.mxu1  ;;  %v10216_v45 = vpop.f32.mrf.mxu0  ;;  %v10974_v25 = vld [vmem:[#allocation39_spill] sm:$0xff] }
 0x218   : > { %10972 = vst [vmem:[#allocation49_spill] sm:$0xff] %v10212_v26  ;;  %v5469_v3 = vrot.slane %v5468_v48, 4  ;;  %v5491_v55 = vrot.slane %v5489_v5, 5  ;;  %v5497_v46 = vrot.slane %v5495_v31, 5  ;;  %v2209_v7 = vadd.f32 %v10112_v18, %v10973_v19  ;;  %v5168_v38 = vld [vmem:[#allocation2 + $0x108] sm:$0xf] }
 0x219   : > { %v5479_v9 = vrot.slane %v5478_v2, 4  ;;  %v5501_v22 = vrot.slane %v5499_v10, 4  ;;  %v5507_v47 = vrot.slane %v5505_v41, 5  ;;  %v2212_v8 = vadd.f32 %v10123_v49, %v10974_v25  ;;  %v10224_v48 = vpop.f32.mrf.mxu1  ;;  %v10226_v53 = vpop.f32.mrf.mxu0  ;;  %v5169_v31 = vld [vmem:[#allocation2 + $0x10c] sm:$0x1] }
 0x21a   : > { %v5474_v44 = vsel %vm9165_vm11, %v5469_v3, %v5473_v13  ;;  %v5492_v2 = vor.u32 %v5491_v55, %v5488_v56  ;;  %v10231_v18 = vadd.f32 %v10121_v52, %v2209_v7  ;;  %v2210_v13 = vadd.f32 %v10141_v62, %v9920_v33 }
 0x21b   : > { %v5484_v5 = vsel %vm9165_vm11, %v5479_v9, %v5483_v51  ;;  %v5502_v10 = vor.u32 %v5501_v22, %v5497_v46  ;;  %v10236_v49 = vadd.f32 %v10139_v30, %v2212_v8  ;;  %v5510_v41 = vshrl.u32 %v5167_v1, 16  ;;  %v10238_v19 = vpop.f32.mrf.mxu1  ;;  %v10240_v25 = vpop.f32.mrf.mxu0  ;;  %v5170_v9 = vld [vmem:[#allocation2 + $0x114] sm:$0xf] }
 0x21c   : > { %10975 = vst [vmem:[#allocation18_spill] sm:$0xff] %v10231_v18  ;;  %v7285_v3 = vcombine.low %v5474_v44, %v5484_v5  ;;  %v5493_v26 = vrot.slane %v5492_v2, 4  ;;  %v10243_v51 = vadd.f32 %v10154_v14, %v2210_v13  ;;  %v5513_v52 = vshll.u32 %v5167_v1, 16  ;;  %v5171_v2 = vld [vmem:[#allocation2 + $0x118] sm:$0xf] }
 0x21d   : > { %10976 = vst [vmem:[#allocation48_spill] sm:$0xff] %v10236_v49  ;;  %v5519_v56 = vshll.u32 %v5168_v38, 16  ;;  %v5503_v33 = vrot.slane %v5502_v10, 4  ;;  %v5512_v62 = vrot.slane %v5510_v41, 4  ;;  %v5523_v55 = vshrl.u32 %v5168_v38, 16  ;;  %v3892_v44 = vpop.f32.mrf.mxu1  ;;  %v10245_v30 = vpop.f32.mrf.mxu0 }
 0x21e   : > { %10977 = vst [vmem:[#allocation50_spill] sm:$0xff] %v10243_v51  ;;  %8058 = vmatprep.mubr.bf16.mxu0 %v7285_v3  ;;  %v5529_v7 = vshll.u32 %v5169_v31, 16  ;;  %v5498_v22 = vsel %vm9165_vm11, %v5493_v26, %v5497_v46  ;;  %v5515_v8 = vrot.slane %v5513_v52, 5  ;;  %v2215_v14 = vadd.f32 %v10156_v40, %v9916_v20  ;;  %v5172_v10 = vld [vmem:[#allocation2 + $0x11c] sm:$0x1] }
 0x21f   : > { %v5521_v5 = vrot.slane %v5519_v56, 5  ;;  %v5508_v1 = vsel %vm9165_vm11, %v5503_v33, %v5507_v47  ;;  %v5525_v13 = vrot.slane %v5523_v55, 4  ;;  %v5534_v38 = vshrl.u32 %v5170_v9, 16  ;;  %v7896_v31 = vpop.f32.mrf.mxu1  ;;  %v3154_v41 = vpop.f32.mrf.mxu0 }
 0x220   : > { %v5531_v3 = vrot.slane %v5529_v7, 5  ;;  %v7286_v51 = vcombine.low %v5498_v22, %v5508_v1  ;;  %v5516_v49 = vor.u32 %v5515_v8, %v5512_v62  ;;  %v10254_v18 = vadd.f32 %v10168_v39, %v2215_v14  ;;  %v10978_v7 = vld [vmem:[#allocation40_spill] sm:$0xff] }
 0x221   : > { %v5537_v26 = vshll.u32 %v5170_v9, 16  ;;  %v5526_v46 = vor.u32 %v5525_v13, %v5521_v5  ;;  %v5536_v52 = vrot.slane %v5534_v38, 4  ;;  %v5543_v56 = vshll.u32 %v5171_v2, 16  ;;  %v3905_v40 = vpop.f32.mrf.mxu1  ;;  %v7852_v23 = vpop.f32.mrf.mxu0 }
 0x222   : > { %v5547_v20 = vshrl.u32 %v5171_v2, 16  ;;  %8059 = vmatmul.mubr.bf16.gmra.mxu0 %v7286_v51  ;;  %v5517_v47 = vrot.slane %v5516_v49, 4  ;;  %v5553_v55 = vshll.u32 %v5172_v10, 16  ;;  %v2213_v24 = vadd.f32 %v10163_v36, %v10978_v7 }
 0x223   : > { %v5539_v33 = vrot.slane %v5537_v26, 5  ;;  %v5527_v57 = vrot.slane %v5526_v46, 4  ;;  %v5545_v22 = vrot.slane %v5543_v56, 5  ;;  %v2216_v39 = vadd.f32 %v10170_v61, %v9936_v58  ;;  %v7897_v9 = vpop.f32.mrf.mxu1  ;;  %v3167_v8 = vpop.f32.mrf.mxu0 }
 0x224   : > { %v5549_v62 = vrot.slane %v5547_v20, 4  ;;  %v5522_v14 = vsel %vm9165_vm11, %v5517_v47, %v5521_v5  ;;  %v5555_v1 = vrot.slane %v5553_v55, 5  ;;  %v10263_v49 = vadd.f32 %v10180_v63, %v2213_v24  ;;  %v10979_v5 = vld [vmem:[#allocation41_spill] sm:$0xff] }
 0x225   : > { %v5540_v2 = vor.u32 %v5539_v33, %v5536_v52  ;;  %v5532_v51 = vsel %vm9165_vm11, %v5527_v57, %v5531_v3  ;;  %v10268_v13 = vadd.f32 %v10191_v16, %v2216_v39  ;;  %v2214_v58 = vadd.f32 %v10182_v17, %v9962_v32  ;;  %v3908_v61 = vpop.f32.mrf.mxu1  ;;  %v7853_v10 = vpop.f32.mrf.mxu0  ;;  %v10980_v52 = vld [vmem:[#allocation44_spill] sm:$0xff]  ;;  %v10981_v3 = vld [vmem:[#allocation47_spill] sm:$0xff] }
 0x226   : > { %v5550_v36 = vor.u32 %v5549_v62, %v5545_v22  ;;  %v7287_v38 = vcombine.low %v5522_v14, %v5532_v51  ;;  %v3264_v46 = vadd.f32 %v10193_v34, %v10979_v5  ;;  %v3262_v24 = vadd.f32 %v10202_v12, %v10980_v52  ;;  %v10984_v62 = vld [vmem:[#allocation45_spill] sm:$0xff] }
 0x227   : > { %v5541_v26 = vrot.slane %v5540_v2, 4  ;;  %v10277_v57 = vadd.f32 %v10200_v29, %v2214_v58  ;;  %v3265_v16 = vadd.f32 %v10209_v27, %v10981_v3  ;;  %v3263_v32 = vadd.f32 %v10216_v45, %v10004_v37  ;;  %v3170_v17 = vpop.f32.mrf.mxu0 }
 0x228   : > { %v5551_v63 = vrot.slane %v5550_v36, 4  ;;  %8062 = vmatprep.mubr.bf16.mxu0 %v7287_v38  ;;  %v10286_v34 = vadd.f32 %v10214_v4, %v3264_v46  ;;  %v10289_v12 = vadd.f32 %v10224_v48, %v3262_v24  ;;  %v3268_v29 = vadd.f32 %v10226_v53, %v9993_v60  ;;  %v10982_v48 = vld [vmem:[#allocation43_spill] sm:$0xff] }
 0x229   : > { %v5546_v56 = vsel %vm9165_vm11, %v5541_v26, %v5545_v22  ;;  %v10296_v20 = vadd.f32 %v10238_v19, %v3265_v16  ;;  %v10298_v37 = vadd.f32 %v3892_v44, %v3263_v32  ;;  %v3266_v45 = vadd.f32 %v10240_v25, %v10010_v35  ;;  %v7900_v47 = vpop.f32.mrf.mxu1  ;;  %v7856_v4 = vpop.f32.mrf.mxu0  ;;  %v10983_v19 = vld [vmem:[#allocation16_spill] sm:$0xff] }
 0x22a   : > { %v5556_v27 = vsel %vm9165_vm11, %v5551_v63, %v5555_v1  ;;  %v10302_v55 = vadd.f32 %v7896_v31, %v3268_v29  ;;  %v3269_v7 = vadd.f32 %v10245_v30, %v10982_v48  ;;  %v3267_v60 = vadd.f32 %v3154_v41, %v10044_v6  ;;  %v10986_v32 = vld [vmem:[#allocation52_spill] sm:$0xff] }
 0x22b   : > { %v7288_v33 = vcombine.low %v5546_v56, %v5556_v27  ;;  %v10307_v50 = vadd.f32 %v3905_v40, %v3266_v45  ;;  %v3272_v53 = vadd.f32 %v7852_v23, %v10033_v28  ;;  %v3270_v44 = vadd.f32 %v3167_v8, %v10983_v19  ;;  %v3921_v22 = vpop.f32.mrf.mxu1  ;;  %v3183_v35 = vpop.f32.mrf.mxu0  ;;  %v10985_v8 = vld [vmem:[#allocation42_spill] sm:$0xff] }
 0x22c   : > { %v3273_v39 = vadd.f32 %v7853_v10, %v10984_v62  ;;  %v10312_v25 = vadd.f32 %v7897_v9, %v3269_v7  ;;  %v10314_v31 = vadd.f32 %v3908_v61, %v3267_v60  ;;  %v3271_v14 = vadd.f32 %v3170_v17, %v10088_v59 }
 0x22d   : > { %8063 = vmatmul.mubr.bf16.gmra.mxu0 %v7288_v33  ;;  %v3276_v30 = vadd.f32 %v7856_v4, %v10076_v15  ;;  %v10318_v6 = vadd.f32 %v7900_v47, %v3272_v53  ;;  %v10320_v41 = vadd.f32 %v3921_v22, %v3270_v44  ;;  %v7901_v28 = vpop.f32.mrf.mxu1  ;;  %v3274_v23 = vadd.f32 %v3183_v35, %v10093_v43  ;;  %v7857_v40 = vpop.f32.mrf.mxu0  ;;  %v10990_v22 = vld [vmem:[#allocation17_spill] sm:$0xff] }
 0x22e   : > { %v2921_v2 = vadd.f32 %v10985_v8, %v10104_v42  ;;  %v10325_v1 = vadd.f32 %v7901_v28, %v3273_v39  ;;  %v3277_v9 = vadd.f32 %v7857_v40, %v10098_v11 }
 0x22f   : > { %v3924_v51 = vpop.f32.mrf.mxu1  ;;  %v3186_v36 = vpop.f32.mrf.mxu0 }
 0x230   : > { %v10328_v59 = vadd.f32 %v3924_v51, %v3271_v14  ;;  %v3275_v15 = vadd.f32 %v3186_v36, %v2921_v2  ;;  %v10992_v2 = vld [vmem:[#allocation18_spill] sm:$0xff] }
 0x231   : > { %v7904_v58 = vpop.f32.mrf.mxu1  ;;  %v7860_v61 = vpop.f32.mrf.mxu0 }
 0x232   : > { %v10330_v10 = vadd.f32 %v7904_v58, %v3276_v30  ;;  %v3280_v38 = vadd.f32 %v7860_v61, %v10119_v0  ;;  %v10987_v0 = vld [vmem:[#allocation53_spill] sm:$0xff]  ;;  %v10993_v58 = vld [vmem:[#allocation48_spill] sm:$0xff] }
 0x233   : > { %v3937_v43 = vpop.f32.mrf.mxu1  ;;  %v3199_v26 = vpop.f32.mrf.mxu0  ;;  %v10991_v30 = vld [vmem:[#allocation49_spill] sm:$0xff] }
 0x234   : > { %v10333_v5 = vadd.f32 %v3937_v43, %v3274_v23  ;;  %v3278_v42 = vadd.f32 %v3199_v26, %v10134_v21  ;;  %v10988_v21 = vld [vmem:[#allocation46_spill] sm:$0xff] }
 0x235   : > { %v7905_v46 = vpop.f32.mrf.mxu1  ;;  %v7861_v52 = vpop.f32.mrf.mxu0 }
 0x236   : > { %v10336_v11 = vadd.f32 %v7905_v46, %v3277_v9  ;;  %v3281_v24 = vadd.f32 %v7861_v52, %v10144_v54  ;;  %v10989_v54 = vld [vmem:[#allocation15_spill] sm:$0xff] }
 0x237   : > { %v3940_v63 = vpop.f32.mrf.mxu1  ;;  %v3202_v3 = vpop.f32.mrf.mxu0 }
 0x238   : > { %v10339_v16 = vadd.f32 %v3940_v63, %v3275_v15  ;;  %v3279_v17 = vadd.f32 %v3202_v3, %v10986_v32 }
 0x239   : > { %v7864_v56 = vpop.f32.mrf.mxu0 }
 0x23a   : > { %v3284_v29 = vadd.f32 %v7864_v56, %v10987_v0 }
 0x23b   : > { %v7908_v27 = vpop.f32.mrf.mxu1  ;;  %v3215_v45 = vpop.f32.mrf.mxu0 }
 0x23c   : > { %v10343_v47 = vadd.f32 %v7908_v27, %v3280_v38  ;;  %v3282_v4 = vadd.f32 %v3215_v45, %v10988_v21 }
 0x23d   : > { %v3953_v33 = vpop.f32.mrf.mxu1  ;;  %v7865_v48 = vpop.f32.mrf.mxu0 }
 0x23e   : > { %v10346_v7 = vadd.f32 %v3953_v33, %v3278_v42  ;;  %v3285_v60 = vadd.f32 %v7865_v48, %v10989_v54  ;;  %v10994_v42 = vld [vmem:[#allocation50_spill] sm:$0xff] }
 0x23f   : > { %v7909_v53 = vpop.f32.mrf.mxu1  ;;  %v3218_v19 = vpop.f32.mrf.mxu0 }
 0x240   : > { %v10349_v44 = vadd.f32 %v7909_v53, %v3281_v24  ;;  %v3283_v62 = vadd.f32 %v3218_v19, %v10990_v22 }
 0x241   : > { %v3956_v39 = vpop.f32.mrf.mxu1  ;;  %v7868_v35 = vpop.f32.mrf.mxu0 }
 0x242   : > { %v10352_v14 = vadd.f32 %v3956_v39, %v3279_v17  ;;  %v3288_v28 = vadd.f32 %v7868_v35, %v10991_v30 }
 0x243   : > { %v7912_v23 = vpop.f32.mrf.mxu1  ;;  %v3231_v40 = vpop.f32.mrf.mxu0 }
 0x244   : > { %v10355_v8 = vadd.f32 %v7912_v23, %v3284_v29  ;;  %v3286_v9 = vadd.f32 %v3231_v40, %v10992_v2 }
 0x245   : > { %v3969_v51 = vpop.f32.mrf.mxu1  ;;  %v7869_v36 = vpop.f32.mrf.mxu0 }
 0x246   : > { %v10358_v15 = vadd.f32 %v3969_v51, %v3282_v4  ;;  %v3289_v61 = vadd.f32 %v7869_v36, %v10993_v58 }
 0x247   : > { %v7913_v38 = vpop.f32.mrf.mxu1  ;;  %v3234_v43 = vpop.f32.mrf.mxu0 }
 0x248   : > { %v10361_v26 = vadd.f32 %v7913_v38, %v3285_v60  ;;  %v3287_v46 = vadd.f32 %v3234_v43, %v10994_v42 }
 0x249   : > { %v3972_v52 = vpop.f32.mrf.mxu1 }
 0x24a   : > { %v10364_v24 = vadd.f32 %v3972_v52, %v3283_v62 }
 0x24c   : > { %v7872_v63 = vpop.f32.mrf.mxu0  ;;  %v7916_v17 = vpop.f32.mrf.mxu1 }
 0x24d   : > { %v3292_v3 = vadd.f32 %v7872_v63, %v10254_v18  ;;  %v10368_v0 = vadd.f32 %v7916_v17, %v3288_v28 }
 0x24e   : > { %v3247_v32 = vpop.f32.mrf.mxu0  ;;  %v3985_v27 = vpop.f32.mrf.mxu1 }
 0x24f   : > { %v3290_v56 = vadd.f32 %v3247_v32, %v10263_v49  ;;  %v10371_v21 = vadd.f32 %v3985_v27, %v3286_v9 }
 0x250   : > { %v7873_v29 = vpop.f32.mrf.mxu0  ;;  %v7917_v33 = vpop.f32.mrf.mxu1 }
 0x251   : > { %v3293_v45 = vadd.f32 %v7873_v29, %v10268_v13  ;;  %v10374_v54 = vadd.f32 %v7917_v33, %v3289_v61 }
 0x252   : > { %v3250_v4 = vpop.f32.mrf.mxu0  ;;  %v3988_v60 = vpop.f32.mrf.mxu1 }
 0x253   : > { %v3291_v48 = vadd.f32 %v3250_v4, %v10277_v57  ;;  %v10376_v18 = vadd.f32 %v3988_v60, %v3287_v46 }
 0x255   : > { %v7920_v53 = vpop.f32.mrf.mxu1 }
 0x256   : > { %v10378_v19 = vadd.f32 %v7920_v53, %v3292_v3 }
 0x257   : > { %v4001_v49 = vpop.f32.mrf.mxu1 }
 0x258   : > { %v10380_v22 = vadd.f32 %v4001_v49, %v3290_v56 }
 0x259   : > { %v7921_v62 = vpop.f32.mrf.mxu1 }
 0x25a   : > { %v10382_v39 = vadd.f32 %v7921_v62, %v3293_v45 }
 0x25b   : > { %v4004_v13 = vpop.f32.mrf.mxu1 }
 0x25c   : > { %v10384_v35 = vadd.f32 %v4004_v13, %v3291_v48  ;;  %v10386_v30 = vpop.f32.mrf.mxu0 }
 0x25d   : > { %v10388_v57 = vpop.f32.mrf.mxu1 }
 0x25e   : > { %v10390_v28 = vpop.f32.mrf.mxu0 }
 0x25f   : > { %v10392_v23 = vpop.f32.mrf.mxu1 }
 0x260   : > { %v10394_v40 = vpop.f32.mrf.mxu0 }
 0x261   : > { %v10396_v2 = vpop.f32.mrf.mxu1 }
 0x262   : > { %v10398_v9 = vpop.f32.mrf.mxu0 }
 0x263   : > { %v10400_v51 = vpop.f32.mrf.mxu1 }
 0x265   : > { %v10402_v36 = vpop.f32.mrf.mxu0  ;;  %v10404_v58 = vpop.f32.mrf.mxu1 }
 0x267   : > { %v4628_v61 = vpop.f32.mrf.mxu0  ;;  %v4982_v38 = vpop.f32.mrf.mxu1 }
 0x268   : > { %v4743_v43 = vadd.f32 %v4628_v61, %v10307_v50 }
 0x269   : > { %v7945_v42 = vpop.f32.mrf.mxu0  ;;  %v7993_v46 = vpop.f32.mrf.mxu1 }
 0x26a   : > { %v10407_v52 = vadd.f32 %v4982_v38, %v4743_v43  ;;  %v4746_v63 = vadd.f32 %v7945_v42, %v10312_v25 }
 0x26b   : > { %v4631_v3 = vpop.f32.mrf.mxu0  ;;  %v4985_v32 = vpop.f32.mrf.mxu1 }
 0x26c   : > { %v10410_v17 = vadd.f32 %v7993_v46, %v4746_v63  ;;  %v4744_v56 = vadd.f32 %v4631_v3, %v10314_v31 }
 0x26d   : > { %v7948_v29 = vpop.f32.mrf.mxu0  ;;  %v7996_v27 = vpop.f32.mrf.mxu1 }
 0x26e   : > { %v10413_v45 = vadd.f32 %v4985_v32, %v4744_v56  ;;  %v4749_v4 = vadd.f32 %v7948_v29, %v10318_v6 }
 0x26f   : > { %v4644_v33 = vpop.f32.mrf.mxu0  ;;  %v4998_v50 = vpop.f32.mrf.mxu1 }
 0x270   : > { %v10416_v48 = vadd.f32 %v7996_v27, %v4749_v4  ;;  %v4747_v60 = vadd.f32 %v4644_v33, %v10320_v41 }
 0x271   : > { %v7949_v53 = vpop.f32.mrf.mxu0  ;;  %v7997_v25 = vpop.f32.mrf.mxu1 }
 0x272   : > { %v10419_v49 = vadd.f32 %v4998_v50, %v4747_v60  ;;  %v4750_v62 = vadd.f32 %v7949_v53, %v10325_v1 }
 0x273   : > { %v4647_v13 = vpop.f32.mrf.mxu0  ;;  %v5001_v31 = vpop.f32.mrf.mxu1 }
 0x274   : > { %v10422_v61 = vadd.f32 %v7997_v25, %v4750_v62  ;;  %v4748_v38 = vadd.f32 %v4647_v13, %v10328_v59 }
 0x275   : > { %v8000_v43 = vpop.f32.mrf.mxu1 }
 0x276   : > { %v10425_v6 = vadd.f32 %v5001_v31, %v4748_v38  ;;  %v7952_v42 = vpop.f32.mrf.mxu0 }
 0x277   : > { %v4753_v46 = vadd.f32 %v7952_v42, %v10330_v10  ;;  %v5014_v63 = vpop.f32.mrf.mxu1 }
 0x278   : > { %v4660_v41 = vpop.f32.mrf.mxu0 }
 0x279   : > { %v10428_v3 = vadd.f32 %v8000_v43, %v4753_v46  ;;  %v4751_v32 = vadd.f32 %v4660_v41, %v10333_v5  ;;  %v8001_v56 = vpop.f32.mrf.mxu1 }
 0x27a   : > { %v7953_v1 = vpop.f32.mrf.mxu0 }
 0x27b   : > { %v10431_v29 = vadd.f32 %v5014_v63, %v4751_v32  ;;  %v4754_v27 = vadd.f32 %v7953_v1, %v10336_v11  ;;  %v5017_v4 = vpop.f32.mrf.mxu1 }
 0x27c   : > { %v4663_v59 = vpop.f32.mrf.mxu0 }
 0x27d   : > { %v10434_v33 = vadd.f32 %v8001_v56, %v4754_v27  ;;  %v4752_v50 = vadd.f32 %v4663_v59, %v10339_v16  ;;  %v8004_v60 = vpop.f32.mrf.mxu1 }
 0x27e   : > { %v7956_v10 = vpop.f32.mrf.mxu0 }
 0x27f   : > { %v10437_v53 = vadd.f32 %v5017_v4, %v4752_v50  ;;  %v4757_v25 = vadd.f32 %v7956_v10, %v10343_v47  ;;  %v5030_v62 = vpop.f32.mrf.mxu1 }
 0x280   : > { %v4676_v5 = vpop.f32.mrf.mxu0 }
 0x281   : > { %v10440_v13 = vadd.f32 %v8004_v60, %v4757_v25  ;;  %v4755_v31 = vadd.f32 %v4676_v5, %v10346_v7  ;;  %v8005_v38 = vpop.f32.mrf.mxu1 }
 0x282   : > { %v7957_v11 = vpop.f32.mrf.mxu0 }
 0x283   : > { %v10443_v43 = vadd.f32 %v5030_v62, %v4755_v31  ;;  %v4758_v42 = vadd.f32 %v7957_v11, %v10349_v44  ;;  %v5033_v46 = vpop.f32.mrf.mxu1 }
 0x284   : > { %v4679_v16 = vpop.f32.mrf.mxu0 }
 0x285   : > { %v10446_v63 = vadd.f32 %v8005_v38, %v4758_v42  ;;  %v4756_v41 = vadd.f32 %v4679_v16, %v10352_v14  ;;  %v8008_v32 = vpop.f32.mrf.mxu1 }
 0x287   : > { %v10449_v47 = vadd.f32 %v5033_v46, %v4756_v41  ;;  %v7960_v56 = vpop.f32.mrf.mxu0  ;;  %v5046_v1 = vpop.f32.mrf.mxu1 }
 0x288   : > { %v4761_v27 = vadd.f32 %v7960_v56, %v10355_v8  ;;  %v5896_v8 = vlaneseq }
 0x289   : > { %v4692_v7 = vpop.f32.mrf.mxu0  ;;  %v8009_v4 = vpop.f32.mrf.mxu1 }
 0x28a   : > { %v10452_v59 = vadd.f32 %v8008_v32, %v4761_v27  ;;  %v4759_v50 = vadd.f32 %v4692_v7, %v10358_v15  ;;  %v5897_v32 = vshrl.u32 %v5896_v8, 7 }
 0x28b   : > { %v7961_v44 = vpop.f32.mrf.mxu0  ;;  %v5049_v60 = vpop.f32.mrf.mxu1 }
 0x28c   : > { %v10455_v10 = vadd.f32 %v5046_v1, %v4759_v50  ;;  %v4762_v14 = vadd.f32 %v7961_v44, %v10361_v26  ;;  %v6030_v44 = vsub.s32 1, %v5897_v32 }
 0x28d   : > { %v4695_v25 = vpop.f32.mrf.mxu0  ;;  %v8012_v62 = vpop.f32.mrf.mxu1 }
 0x28e   : > { %v10458_v5 = vadd.f32 %v8009_v4, %v4762_v14  ;;  %v4760_v31 = vadd.f32 %v4695_v25, %v10364_v24  ;;  %v440_v14 = vld [vmem:[%s439_s11] sm:$0x3] }
 0x28f   : > { %v7964_v38 = vpop.f32.mrf.mxu0  ;;  %v5062_v11 = vpop.f32.mrf.mxu1 }
 0x290   : > { %v10461_v42 = vadd.f32 %v5049_v60, %v4760_v31  ;;  %v4765_v15 = vadd.f32 %v7964_v38, %v10368_v0  ;;  %v10477_v38 = vrot.slane %v440_v14, %v6030_v44 }
 0x291   : > { %v4708_v46 = vpop.f32.mrf.mxu0  ;;  %v8013_v16 = vpop.f32.mrf.mxu1 }
 0x292   : > { %v10465_v41 = vadd.f32 %v8012_v62, %v4765_v15  ;;  %v4763_v26 = vadd.f32 %v4708_v46, %v10371_v21 }
 0x293   : > { %v7965_v56 = vpop.f32.mrf.mxu0  ;;  %v5065_v1 = vpop.f32.mrf.mxu1 }
 0x294   : > { %v10468_v27 = vadd.f32 %v5062_v11, %v4763_v26  ;;  %v4766_v24 = vadd.f32 %v7965_v56, %v10374_v54  ;;  %v4741_v56 = vadd.f32 %v10386_v30, %v10286_v34  ;;  %v4740_v34 = vadd.f32 %v10398_v9, %v10298_v37 }
 0x295   : > { %v4711_v7 = vpop.f32.mrf.mxu0  ;;  %v8016_v4 = vpop.f32.mrf.mxu1  ;;  %v4745_v30 = vadd.f32 %v10402_v36, %v10302_v55 }
 0x296   : > { %v10471_v50 = vadd.f32 %v8013_v16, %v4766_v24  ;;  %v4764_v0 = vadd.f32 %v4711_v7, %v10376_v18  ;;  %v5898_v18 = vsub.s32 0, %v5897_v32 }
 0x297   : > { %v5078_v60 = vpop.f32.mrf.mxu1 }
 0x298   : > { %v10474_v25 = vadd.f32 %v5065_v1, %v4764_v0  ;;  %v7968_v21 = vpop.f32.mrf.mxu0 }
 0x299   : > { %v4769_v62 = vadd.f32 %v7968_v21, %v10378_v19  ;;  %v8017_v31 = vpop.f32.mrf.mxu1  ;;  %v4742_v21 = vadd.f32 %v10394_v40, %v10296_v20 }
 0x29a   : > { %v4724_v8 = vpop.f32.mrf.mxu0 }
 0x29b   : > { %v10479_v54 = vadd.f32 %v8016_v4, %v4769_v62  ;;  %v4767_v11 = vadd.f32 %v4724_v8, %v10380_v22  ;;  %v5081_v15 = vpop.f32.mrf.mxu1  ;;  %v4739_v22 = vadd.f32 %v10390_v28, %v10289_v12  ;;  %v442_v4 = vld [vmem:[%s441_s24] sm:$0x3]  ;;  %v5096_v36 = vadd.f32 %v10396_v2, %v4742_v21 }
 0x29c   : > { %v7969_v46 = vpop.f32.mrf.mxu0  ;;  %v10512_v20 = vrot.slane %v442_v4, %v6030_v44 }
 0x29d   : > { %v10485_v16 = vadd.f32 %v5078_v60, %v4767_v11  ;;  %v4770_v26 = vadd.f32 %v7969_v46, %v10382_v39  ;;  %v8084_v19 = vpop.f32.mrf.mxu1  ;;  %v10496_v60 = vrot.slane %v440_v14, %v5898_v18  ;;  %v5093_v8 = vadd.f32 %v10392_v23, %v4739_v22 }
 0x29e   : > { %v4727_v1 = vpop.f32.mrf.mxu0  ;;  %v6123_v24 = vadd.f32 %v8084_v19, %v10477_v38 }
 0x29f   : > { %v10493_v7 = vadd.f32 %v8017_v31, %v4770_v26  ;;  %v4768_v32 = vadd.f32 %v4727_v1, %v10384_v35  ;;  %v6114_v0 = vpop.f32.mrf.mxu1  ;;  %v5095_v35 = vadd.f32 %v10388_v57, %v4741_v56  ;;  %v10508_v31 = vrot.slane %v442_v4, %v5898_v18 }
 0x2a0   : > { %v6115_v39 = vadd.f32 %v6114_v0, %v10477_v38  ;;  %v6275_v62 = vmul.f32 0.2, %v6123_v24  ;;  %vm6243_vm12 = vcmp.gt.f32.partialorder %v6123_v24, 0.0  ;;  %v5094_v57 = vadd.f32 %v10400_v51, %v4740_v34 }
 0x2a1   : > { %v10505_v12 = vadd.f32 %v5081_v15, %v4768_v32  ;;  %v8085_v28 = vpop.f32.mrf.mxu1  ;;  %v5099_v15 = vadd.f32 %v10404_v58, %v4745_v30 }
 0x2a2   : > { %v6126_v14 = vadd.f32 %v8085_v28, %v10477_v38  ;;  %v6273_v37 = vmul.f32 0.2, %v6115_v39  ;;  %vm6241_vm13 = vcmp.gt.f32.partialorder %v6115_v39, 0.0  ;;  %v6307_v44 = vsel %vm6243_vm12, %v6123_v24, %v6275_v62 }
 0x2a3   : > { %v8036_v11 = vpop.f32.mrf.mxu0  ;;  %v6117_v40 = vpop.f32.mrf.mxu1 }
 0x2a4   : > { %v5849_v9 = vadd.f32 %v8036_v11, %v5095_v35  ;;  %vm6244_vm14 = vcmp.gt.f32.partialorder %v6126_v14, 0.0  ;;  %v6276_v55 = vmul.f32 0.2, %v6126_v14  ;;  %v6118_v18 = vadd.f32 %v6117_v40, %v10477_v38 }
 0x2a5   : > { %v5720_v46 = vpop.f32.mrf.mxu0  ;;  %v8088_v23 = vpop.f32.mrf.mxu1  ;;  %v6305_v1 = vsel %vm6241_vm13, %v6115_v39, %v6273_v37 }
 0x2a6   : > { %v5902_v26 = vadd.f32 %v10496_v60, %v5849_v9  ;;  %v5847_v19 = vadd.f32 %v5720_v46, %v5093_v8  ;;  %v6139_v56 = vadd.f32 %v8088_v23, %v10477_v38  ;;  %v6308_v32 = vsel %vm6244_vm14, %v6126_v14, %v6276_v55 }
 0x2a7   : > { %v8037_v22 = vpop.f32.mrf.mxu0  ;;  %vm6242_vm15 = vcmp.gt.f32.partialorder %v6118_v18, 0.0  ;;  %v6274_v4 = vmul.f32 0.2, %v6118_v18  ;;  %v6130_v2 = vpop.f32.mrf.mxu1 }
 0x2a8   : > { %vm5934_vm0 = vcmp.gt.f32.partialorder %v5902_v26, 0.0  ;;  %v5966_v51 = vmul.f32 0.2, %v5902_v26  ;;  %v5900_v58 = vadd.f32 %v10496_v60, %v5847_v19  ;;  %v5850_v0 = vadd.f32 %v8037_v22, %v5096_v36 }
 0x2a9   : > { %v5723_v21 = vpop.f32.mrf.mxu0  ;;  %v6306_v34 = vsel %vm6242_vm15, %v6118_v18, %v6274_v4  ;;  %vm6247_vm1 = vcmp.gt.f32.partialorder %v6139_v56, 0.0  ;;  %v6279_v30 = vmul.f32 0.2, %v6139_v56  ;;  %v6131_v24 = vadd.f32 %v6130_v2, %v10477_v38  ;;  %v8089_v11 = vpop.f32.mrf.mxu1 }
 0x2aa   : > { %v5998_v28 = vsel %vm5934_vm0, %v5902_v26, %v5966_v51  ;;  %vm5932_vm2 = vcmp.gt.f32.partialorder %v5900_v58, 0.0  ;;  %v5964_v35 = vmul.f32 0.2, %v5900_v58  ;;  %v5903_v39 = vadd.f32 %v10496_v60, %v5850_v0 }
 0x2ab   : > { %v6339_v62 = vadd.f32 %v6307_v44, %v5998_v28  ;;  %v5848_v14 = vadd.f32 %v5723_v21, %v5094_v57  ;;  %v6311_v8 = vsel %vm6247_vm1, %v6139_v56, %v6279_v30  ;;  %vm6245_vm3 = vcmp.gt.f32.partialorder %v6131_v24, 0.0  ;;  %v6133_v2 = vpop.f32.mrf.mxu1 }
 0x2ac   : > { %v5996_v37 = vsel %vm5932_vm2, %v5900_v58, %v5964_v35  ;;  %vm5935_vm4 = vcmp.gt.f32.partialorder %v5903_v39, 0.0  ;;  %v5967_v40 = vmul.f32 0.2, %v5903_v39  ;;  %v6277_v9 = vmul.f32 0.2, %v6131_v24 }
 0x2ad   : > { %vm6371_vm5 = vcmp.gt.f32.partialorder %v6339_v62, 0.0  ;;  %v6403_v55 = vmul.f32 0.2, %v6339_v62  ;;  %v6337_v36 = vadd.f32 %v6305_v1, %v5996_v37  ;;  %v5901_v46 = vadd.f32 %v10496_v60, %v5848_v14 }
 0x2ae   : > { %v8040_v18 = vpop.f32.mrf.mxu0  ;;  %v5999_v23 = vsel %vm5935_vm4, %v5903_v39, %v5967_v40  ;;  %v6309_v19 = vsel %vm6245_vm3, %v6131_v24, %v6277_v9  ;;  %v6142_v22 = vadd.f32 %v8089_v11, %v10477_v38  ;;  %v8092_v11 = vpop.f32.mrf.mxu1 }
 0x2af   : > { %v5853_v26 = vadd.f32 %v8040_v18, %v5099_v15  ;;  %v6435_v44 = vsel %vm6371_vm5, %v6339_v62, %v6403_v55  ;;  %vm6369_vm6 = vcmp.gt.f32.partialorder %v6337_v36, 0.0  ;;  %v6401_v57 = vmul.f32 0.2, %v6337_v36 }
 0x2b0   : > { %v6340_v56 = vadd.f32 %v6308_v32, %v5999_v23  ;;  %v5736_v4 = vpop.f32.mrf.mxu0  ;;  %v6471_v51 = vmul.f32 %v10508_v31, %v6435_v44  ;;  %vm5933_vm7 = vcmp.gt.f32.partialorder %v5901_v46, 0.0  ;;  %v5965_v58 = vmul.f32 0.2, %v5901_v46 }
 0x2b1   : > { %v5906_v1 = vadd.f32 %v10496_v60, %v5853_v26  ;;  %v6433_v0 = vsel %vm6369_vm6, %v6337_v36, %v6401_v57  ;;  %v5851_v15 = vadd.f32 %v5736_v4, %v10407_v52  ;;  %vm6248_vm10 = vcmp.gt.f32.partialorder %v6142_v22, 0.0 }
 0x2b2   : > { %vm6372_vm8 = vcmp.gt.f32.partialorder %v6340_v56, 0.0  ;;  %v6404_v21 = vmul.f32 0.2, %v6340_v56  ;;  %v8041_v30 = vpop.f32.mrf.mxu0  ;;  %v6507_v24 = vadd.f32 %v10512_v20, %v6471_v51  ;;  %v6469_v28 = vmul.f32 %v10508_v31, %v6433_v0 }
 0x2b3   : > { %v5997_v32 = vsel %vm5933_vm7, %v5901_v46, %v5965_v58  ;;  %vm5938_vm9 = vcmp.gt.f32.partialorder %v5906_v1, 0.0  ;;  %v5970_v62 = vmul.f32 0.2, %v5906_v1  ;;  %v5904_v14 = vadd.f32 %v10496_v60, %v5851_v15 }
 0x2b4   : > { %v6436_v35 = vsel %vm6372_vm8, %v6340_v56, %v6404_v21  ;;  %v6338_v39 = vadd.f32 %v6306_v34, %v5997_v32  ;;  %6539 = vst [vmem:[%s8755_s29 + $0x10] sm:$0xff] %v6507_v24  ;;  %v6505_v37 = vadd.f32 %v10512_v20, %v6469_v28  ;;  %v5854_v52 = vadd.f32 %v8041_v30, %v10410_v17  ;;  %v5739_v9 = vpop.f32.mrf.mxu0  ;;  %v6146_v56 = vpop.f32.mrf.mxu1 }
 0x2b5   : > { %v6472_v40 = vmul.f32 %v10508_v31, %v6436_v35  ;;  %v6002_v36 = vsel %vm5938_vm9, %v5906_v1, %v5970_v62  ;;  %vm5936_vm12 = vcmp.gt.f32.partialorder %v5904_v14, 0.0  ;;  %v5968_v18 = vmul.f32 0.2, %v5904_v14 }
 0x2b6   : > { %vm6370_vm11 = vcmp.gt.f32.partialorder %v6338_v39, 0.0  ;;  %v6402_v55 = vmul.f32 0.2, %v6338_v39  ;;  %6537 = vst [vmem:[%s8755_s29] sm:$0xff] %v6505_v37  ;;  %v6343_v46 = vadd.f32 %v6311_v8, %v6002_v36  ;;  %v5907_v23 = vadd.f32 %v10496_v60, %v5854_v52  ;;  %v8093_v35 = vpop.f32.mrf.mxu1 }
 0x2b7   : > { %v6508_v34 = vadd.f32 %v10512_v20, %v6472_v40  ;;  %v6280_v44 = vmul.f32 0.2, %v6142_v22  ;;  %v5852_v57 = vadd.f32 %v5739_v9, %v10413_v45  ;;  %v6134_v17 = vadd.f32 %v6133_v2, %v10477_v38 }
 0x2b8   : > { %v6434_v26 = vsel %vm6370_vm11, %v6338_v39, %v6402_v55  ;;  %vm6375_vm13 = vcmp.gt.f32.partialorder %v6343_v46, 0.0  ;;  %v6407_v51 = vmul.f32 0.2, %v6343_v46  ;;  %v6000_v58 = vsel %vm5936_vm12, %v5904_v14, %v5968_v18  ;;  %v8044_v1 = vpop.f32.mrf.mxu0 }
 0x2b9   : > { %6540 = vst [vmem:[%s8755_s29 + $0x18] sm:$0xff] %v6508_v34  ;;  %v6470_v4 = vmul.f32 %v10508_v31, %v6434_v26  ;;  %v6341_v0 = vadd.f32 %v6309_v19, %v6000_v58  ;;  %vm5939_vm14 = vcmp.gt.f32.partialorder %v5907_v23, 0.0  ;;  %v5971_v8 = vmul.f32 0.2, %v5907_v23  ;;  %v6149_v26 = vpop.f32.mrf.mxu1 }
 0x2ba   : > { %v6312_v21 = vsel %vm6248_vm10, %v6142_v22, %v6280_v44  ;;  %v6439_v30 = vsel %vm6375_vm13, %v6343_v46, %v6407_v51  ;;  %v5905_v45 = vadd.f32 %v10496_v60, %v5852_v57  ;;  %vm6246_vm15 = vcmp.gt.f32.partialorder %v6134_v17, 0.0  ;;  %v5752_v2 = vpop.f32.mrf.mxu0 }
 0x2bb   : > { %v6506_v15 = vadd.f32 %v10512_v20, %v6470_v4  ;;  %v6475_v24 = vmul.f32 %v10508_v31, %v6439_v30  ;;  %vm6373_vm0 = vcmp.gt.f32.partialorder %v6341_v0, 0.0  ;;  %v6405_v28 = vmul.f32 0.2, %v6341_v0 }
 0x2bc   : > { %v6003_v32 = vsel %vm5939_vm14, %v5907_v23, %v5971_v8  ;;  %vm5937_vm1 = vcmp.gt.f32.partialorder %v5905_v45, 0.0  ;;  %v5969_v39 = vmul.f32 0.2, %v5905_v45  ;;  %v6278_v62 = vmul.f32 0.2, %v6134_v17  ;;  %v8045_v22 = vpop.f32.mrf.mxu0 }
 0x2bd   : > { %6538 = vst [vmem:[%s8755_s29 + $0x8] sm:$0xff] %v6506_v15  ;;  %v6344_v19 = vadd.f32 %v6312_v21, %v6003_v32  ;;  %v6511_v14 = vadd.f32 %v10512_v20, %v6475_v24  ;;  %v6437_v37 = vsel %vm6373_vm0, %v6341_v0, %v6405_v28  ;;  %v5857_v40 = vadd.f32 %v8044_v1, %v10416_v48 }
 0x2be   : > { %v6155_v52 = vadd.f32 %v8092_v11, %v10477_v38  ;;  %v6473_v9 = vmul.f32 %v10508_v31, %v6437_v37  ;;  %v6001_v36 = vsel %vm5937_vm1, %v5905_v45, %v5969_v39  ;;  %v5755_v34 = vpop.f32.mrf.mxu0  ;;  %v6310_v46 = vsel %vm6246_vm15, %v6134_v17, %v6278_v62  ;;  %v8096_v45 = vpop.f32.mrf.mxu1 }
 0x2bf   : > { %vm6376_vm2 = vcmp.gt.f32.partialorder %v6344_v19, 0.0  ;;  %v6408_v55 = vmul.f32 0.2, %v6344_v19  ;;  %6543 = vst [vmem:[%s8755_s29 + $0x30] sm:$0xff] %v6511_v14  ;;  %v5910_v18 = vadd.f32 %v10496_v60, %v5857_v40  ;;  %v6342_v57 = vadd.f32 %v6310_v46, %v6001_v36 }
 0x2c0   : > { %vm6251_vm3 = vcmp.gt.f32.partialorder %v6155_v52, 0.0  ;;  %v6283_v23 = vmul.f32 0.2, %v6155_v52  ;;  %v6509_v44 = vadd.f32 %v10512_v20, %v6473_v9  ;;  %v5855_v11 = vadd.f32 %v5752_v2, %v10419_v49  ;;  %v6162_v37 = vpop.f32.mrf.mxu1 }
 0x2c1   : > { %v6440_v48 = vsel %vm6376_vm2, %v6344_v19, %v6408_v55  ;;  %vm5942_vm4 = vcmp.gt.f32.partialorder %v5910_v18, 0.0  ;;  %v5974_v51 = vmul.f32 0.2, %v5910_v18  ;;  %vm6374_vm5 = vcmp.gt.f32.partialorder %v6342_v57, 0.0 }
 0x2c2   : > { %v6476_v4 = vmul.f32 %v10508_v31, %v6440_v48  ;;  %v6315_v58 = vsel %vm6251_vm3, %v6155_v52, %v6283_v23  ;;  %6541 = vst [vmem:[%s8755_s29 + $0x20] sm:$0xff] %v6509_v44  ;;  %v6406_v17 = vmul.f32 0.2, %v6342_v57  ;;  %v5908_v1 = vadd.f32 %v10496_v60, %v5855_v11 }
 0x2c3   : > { %v6147_v0 = vadd.f32 %v6146_v56, %v10477_v38  ;;  %v8048_v8 = vpop.f32.mrf.mxu0  ;;  %v6006_v15 = vsel %vm5942_vm4, %v5910_v18, %v5974_v51  ;;  %v5858_v30 = vadd.f32 %v8045_v22, %v10422_v61  ;;  %v6158_v49 = vadd.f32 %v8093_v35, %v10477_v38 }
 0x2c4   : > { %v6512_v21 = vadd.f32 %v10512_v20, %v6476_v4  ;;  %v6438_v2 = vsel %vm6374_vm5, %v6342_v57, %v6406_v17  ;;  %v6347_v24 = vadd.f32 %v6315_v58, %v6006_v15  ;;  %vm5940_vm6 = vcmp.gt.f32.partialorder %v5908_v1, 0.0 }
 0x2c5   : > { %v5972_v28 = vmul.f32 0.2, %v5908_v1  ;;  %v6474_v32 = vmul.f32 %v10508_v31, %v6438_v2  ;;  %vm6249_vm7 = vcmp.gt.f32.partialorder %v6147_v0, 0.0  ;;  %v6281_v19 = vmul.f32 0.2, %v6147_v0  ;;  %v5768_v61 = vpop.f32.mrf.mxu0 }
 0x2c6   : > { %6544 = vst [vmem:[%s8755_s29 + $0x38] sm:$0xff] %v6512_v21  ;;  %v5911_v56 = vadd.f32 %v10496_v60, %v5858_v30  ;;  %vm6379_vm8 = vcmp.gt.f32.partialorder %v6347_v24, 0.0  ;;  %v6411_v39 = vmul.f32 0.2, %v6347_v24  ;;  %vm6252_vm9 = vcmp.gt.f32.partialorder %v6158_v49, 0.0 }
 0x2c7   : > { %v6004_v62 = vsel %vm5940_vm6, %v5908_v1, %v5972_v28  ;;  %v6510_v35 = vadd.f32 %v10512_v20, %v6474_v32  ;;  %v6313_v22 = vsel %vm6249_vm7, %v6147_v0, %v6281_v19  ;;  %v6284_v9 = vmul.f32 0.2, %v6158_v49  ;;  %v8049_v11 = vpop.f32.mrf.mxu0 }
 0x2c8   : > { %vm5943_vm10 = vcmp.gt.f32.partialorder %v5911_v56, 0.0  ;;  %v5975_v14 = vmul.f32 0.2, %v5911_v56  ;;  %v6443_v40 = vsel %vm6379_vm8, %v6347_v24, %v6411_v39  ;;  %v6345_v52 = vadd.f32 %v6313_v22, %v6004_v62 }
 0x2c9   : > { %v5856_v55 = vadd.f32 %v5755_v34, %v10425_v6  ;;  %6542 = vst [vmem:[%s8755_s29 + $0x28] sm:$0xff] %v6510_v35  ;;  %v6479_v36 = vmul.f32 %v10508_v31, %v6443_v40  ;;  %v6150_v18 = vadd.f32 %v6149_v26, %v10477_v38  ;;  %v5861_v23 = vadd.f32 %v8048_v8, %v10428_v3  ;;  %v8097_v34 = vpop.f32.mrf.mxu1  ;;  %v5771_v30 = vpop.f32.mrf.mxu0 }
 0x2ca   : > { %v6007_v46 = vsel %vm5943_vm10, %v5911_v56, %v5975_v14  ;;  %vm6377_vm11 = vcmp.gt.f32.partialorder %v6345_v52, 0.0  ;;  %v6409_v44 = vmul.f32 0.2, %v6345_v52  ;;  %v6316_v48 = vsel %vm6252_vm9, %v6158_v49, %v6284_v9 }
 0x2cb   : > { %v5909_v57 = vadd.f32 %v10496_v60, %v5856_v55  ;;  %v6515_v4 = vadd.f32 %v10512_v20, %v6479_v36  ;;  %v6348_v51 = vadd.f32 %v6316_v48, %v6007_v46  ;;  %vm6250_vm12 = vcmp.gt.f32.partialorder %v6150_v18, 0.0  ;;  %v6165_v32 = vpop.f32.mrf.mxu1 }
 0x2cc   : > { %v6282_v6 = vmul.f32 0.2, %v6150_v18  ;;  %v6441_v58 = vsel %vm6377_vm11, %v6345_v52, %v6409_v44  ;;  %v5914_v26 = vadd.f32 %v10496_v60, %v5861_v23  ;;  %v6171_v15 = vadd.f32 %v8096_v45, %v10477_v38 }
 0x2cd   : > { %vm5941_vm13 = vcmp.gt.f32.partialorder %v5909_v57, 0.0  ;;  %v5973_v17 = vmul.f32 0.2, %v5909_v57  ;;  %6547 = vst [vmem:[%s8755_s29 + $0x50] sm:$0xff] %v6515_v4  ;;  %v6477_v3 = vmul.f32 %v10508_v31, %v6441_v58  ;;  %vm6380_vm14 = vcmp.gt.f32.partialorder %v6348_v51, 0.0  ;;  %v8100_v36 = vpop.f32.mrf.mxu1 }
 0x2ce   : > { %v6412_v1 = vmul.f32 0.2, %v6348_v51  ;;  %v6314_v0 = vsel %vm6250_vm12, %v6150_v18, %v6282_v6  ;;  %vm5946_vm15 = vcmp.gt.f32.partialorder %v5914_v26, 0.0  ;;  %v5978_v21 = vmul.f32 0.2, %v5914_v26 }
 0x2cf   : > { %v6005_v8 = vsel %vm5941_vm13, %v5909_v57, %v5973_v17  ;;  %v6513_v49 = vadd.f32 %v10512_v20, %v6477_v3  ;;  %v5859_v28 = vadd.f32 %v5768_v61, %v10431_v29  ;;  %vm6255_vm0 = vcmp.gt.f32.partialorder %v6171_v15, 0.0  ;;  %v8052_v61 = vpop.f32.mrf.mxu0  ;;  %v6178_v58 = vpop.f32.mrf.mxu1 }
 0x2d0   : > { %v6444_v2 = vsel %vm6380_vm14, %v6348_v51, %v6412_v1  ;;  %v6346_v24 = vadd.f32 %v6314_v0, %v6005_v8  ;;  %v6010_v56 = vsel %vm5946_vm15, %v5914_v26, %v5978_v21  ;;  %v6287_v39 = vmul.f32 0.2, %v6171_v15 }
 0x2d1   : > { %v6480_v19 = vmul.f32 %v10508_v31, %v6444_v2  ;;  %6545 = vst [vmem:[%s8755_s29 + $0x40] sm:$0xff] %v6513_v49  ;;  %v5912_v35 = vadd.f32 %v10496_v60, %v5859_v28  ;;  %v6163_v45 = vadd.f32 %v6162_v37, %v10477_v38  ;;  %v5862_v40 = vadd.f32 %v8049_v11, %v10434_v33  ;;  %v5784_v11 = vpop.f32.mrf.mxu0 }
 0x2d2   : > { %vm6378_vm1 = vcmp.gt.f32.partialorder %v6346_v24, 0.0  ;;  %v6410_v62 = vmul.f32 0.2, %v6346_v24  ;;  %v6319_v14 = vsel %vm6255_vm0, %v6171_v15, %v6287_v39  ;;  %v6174_v29 = vadd.f32 %v8097_v34, %v10477_v38 }
 0x2d3   : > { %v6516_v22 = vadd.f32 %v10512_v20, %v6480_v19  ;;  %v6351_v9 = vadd.f32 %v6319_v14, %v6010_v56  ;;  %vm5944_vm2 = vcmp.gt.f32.partialorder %v5912_v35, 0.0  ;;  %v5976_v55 = vmul.f32 0.2, %v5912_v35 }
 0x2d4   : > { %v6442_v52 = vsel %vm6378_vm1, %v6346_v24, %v6410_v62  ;;  %vm6253_vm3 = vcmp.gt.f32.partialorder %v6163_v45, 0.0  ;;  %v6285_v18 = vmul.f32 0.2, %v6163_v45  ;;  %v5915_v37 = vadd.f32 %v10496_v60, %v5862_v40 }
 0x2d5   : > { %6548 = vst [vmem:[%s8755_s29 + $0x58] sm:$0xff] %v6516_v22  ;;  %v6478_v46 = vmul.f32 %v10508_v31, %v6442_v52  ;;  %vm6383_vm4 = vcmp.gt.f32.partialorder %v6351_v9, 0.0  ;;  %v6415_v23 = vmul.f32 0.2, %v6351_v9  ;;  %v6008_v44 = vsel %vm5944_vm2, %v5912_v35, %v5976_v55 }
 0x2d6   : > { %vm6256_vm5 = vcmp.gt.f32.partialorder %v6174_v29, 0.0  ;;  %v6317_v48 = vsel %vm6253_vm3, %v6163_v45, %v6285_v18  ;;  %vm5947_vm6 = vcmp.gt.f32.partialorder %v5915_v37, 0.0  ;;  %v5979_v57 = vmul.f32 0.2, %v5915_v37 }
 0x2d7   : > { %v6514_v33 = vadd.f32 %v10512_v20, %v6478_v46  ;;  %v6447_v4 = vsel %vm6383_vm4, %v6351_v9, %v6415_v23  ;;  %v6349_v51 = vadd.f32 %v6317_v48, %v6008_v44  ;;  %v6288_v6 = vmul.f32 0.2, %v6174_v29 }
 0x2d8   : > { %v5860_v34 = vadd.f32 %v5771_v30, %v10437_v53  ;;  %v6483_v17 = vmul.f32 %v10508_v31, %v6447_v4  ;;  %v6011_v26 = vsel %vm5947_vm6, %v5915_v37, %v5979_v57  ;;  %v6166_v3 = vadd.f32 %v6165_v32, %v10477_v38  ;;  %v8053_v30 = vpop.f32.mrf.mxu0  ;;  %v8101_v32 = vpop.f32.mrf.mxu1 }
 0x2d9   : > { %6546 = vst [vmem:[%s8755_s29 + $0x48] sm:$0xff] %v6514_v33  ;;  %v5865_v1 = vadd.f32 %v8052_v61, %v10440_v13  ;;  %vm6381_vm7 = vcmp.gt.f32.partialorder %v6349_v51, 0.0  ;;  %v6413_v0 = vmul.f32 0.2, %v6349_v51  ;;  %v6320_v8 = vsel %vm6256_vm5, %v6174_v29, %v6288_v6 }
 0x2da   : > { %v5913_v21 = vadd.f32 %v10496_v60, %v5860_v34  ;;  %v6519_v15 = vadd.f32 %v10512_v20, %v6483_v17  ;;  %v6352_v49 = vadd.f32 %v6320_v8, %v6011_v26  ;;  %vm6254_vm8 = vcmp.gt.f32.partialorder %v6166_v3, 0.0  ;;  %v5787_v29 = vpop.f32.mrf.mxu0  ;;  %v6181_v55 = vpop.f32.mrf.mxu1 }
 0x2db   : > { %v6286_v53 = vmul.f32 0.2, %v6166_v3  ;;  %v6445_v2 = vsel %vm6381_vm7, %v6349_v51, %v6413_v0  ;;  %v5918_v28 = vadd.f32 %v10496_v60, %v5865_v1  ;;  %v6187_v35 = vadd.f32 %v8100_v36, %v10477_v38 }
 0x2dc   : > { %vm5945_vm9 = vcmp.gt.f32.partialorder %v5913_v21, 0.0  ;;  %v5977_v24 = vmul.f32 0.2, %v5913_v21  ;;  %6551 = vst [vmem:[%s8755_s29 + $0x70] sm:$0xff] %v6519_v15  ;;  %v6481_v13 = vmul.f32 %v10508_v31, %v6445_v2  ;;  %vm6384_vm10 = vcmp.gt.f32.partialorder %v6352_v49, 0.0  ;;  %v8104_v34 = vpop.f32.mrf.mxu1 }
 0x2dd   : > { %v6416_v19 = vmul.f32 0.2, %v6352_v49  ;;  %v6318_v56 = vsel %vm6254_vm8, %v6166_v3, %v6286_v53  ;;  %vm5950_vm11 = vcmp.gt.f32.partialorder %v5918_v28, 0.0  ;;  %v5982_v62 = vmul.f32 0.2, %v5918_v28 }
 0x2de   : > { %v6009_v39 = vsel %vm5945_vm9, %v5913_v21, %v5977_v24  ;;  %v6517_v45 = vadd.f32 %v10512_v20, %v6481_v13  ;;  %v5863_v40 = vadd.f32 %v5784_v11, %v10443_v43  ;;  %vm6259_vm12 = vcmp.gt.f32.partialorder %v6187_v35, 0.0  ;;  %v8056_v11 = vpop.f32.mrf.mxu0  ;;  %v6194_v24 = vpop.f32.mrf.mxu1 }
 0x2df   : > { %v6448_v22 = vsel %vm6384_vm10, %v6352_v49, %v6416_v19  ;;  %v6350_v14 = vadd.f32 %v6318_v56, %v6009_v39  ;;  %v6014_v52 = vsel %vm5950_vm11, %v5918_v28, %v5982_v62  ;;  %v6291_v9 = vmul.f32 0.2, %v6187_v35 }
 0x2e0   : > { %v6484_v61 = vmul.f32 %v10508_v31, %v6448_v22  ;;  %6549 = vst [vmem:[%s8755_s29 + $0x60] sm:$0xff] %v6517_v45  ;;  %v5916_v18 = vadd.f32 %v10496_v60, %v5863_v40  ;;  %v6179_v36 = vadd.f32 %v6178_v58, %v10477_v38  ;;  %v5866_v43 = vadd.f32 %v8053_v30, %v10446_v63  ;;  %v5800_v15 = vpop.f32.mrf.mxu0  ;;  %v8105_v40 = vpop.f32.mrf.mxu1 }
 0x2e1   : > { %vm6382_vm13 = vcmp.gt.f32.partialorder %v6350_v14, 0.0  ;;  %v6414_v46 = vmul.f32 0.2, %v6350_v14  ;;  %v6323_v23 = vsel %vm6259_vm12, %v6187_v35, %v6291_v9  ;;  %v6190_v44 = vadd.f32 %v8101_v32, %v10477_v38 }
 0x2e2   : > { %v6520_v37 = vadd.f32 %v10512_v20, %v6484_v61  ;;  %v6355_v48 = vadd.f32 %v6323_v23, %v6014_v52  ;;  %vm5948_vm14 = vcmp.gt.f32.partialorder %v5916_v18, 0.0  ;;  %v5980_v57 = vmul.f32 0.2, %v5916_v18  ;;  %v8057_v45 = vpop.f32.mrf.mxu0 }
 0x2e3   : > { %v6446_v33 = vsel %vm6382_vm13, %v6350_v14, %v6414_v46  ;;  %vm6257_vm15 = vcmp.gt.f32.partialorder %v6179_v36, 0.0  ;;  %v6289_v51 = vmul.f32 0.2, %v6179_v36  ;;  %v5919_v6 = vadd.f32 %v10496_v60, %v5866_v43 }
 0x2e4   : > { %6552 = vst [vmem:[%s8755_s29 + $0x78] sm:$0xff] %v6520_v37  ;;  %v6482_v4 = vmul.f32 %v10508_v31, %v6446_v33  ;;  %vm6387_vm0 = vcmp.gt.f32.partialorder %v6355_v48, 0.0  ;;  %v6419_v58 = vmul.f32 0.2, %v6355_v48  ;;  %v6012_v17 = vsel %vm5948_vm14, %v5916_v18, %v5980_v57  ;;  %v5803_v43 = vpop.f32.mrf.mxu0  ;;  %v6197_v57 = vpop.f32.mrf.mxu1 }
 0x2e5   : > { %vm6260_vm1 = vcmp.gt.f32.partialorder %v6190_v44, 0.0  ;;  %v6321_v26 = vsel %vm6257_vm15, %v6179_v36, %v6289_v51  ;;  %vm5951_vm2 = vcmp.gt.f32.partialorder %v5919_v6, 0.0  ;;  %v5983_v3 = vmul.f32 0.2, %v5919_v6 }
 0x2e6   : > { %v6518_v63 = vadd.f32 %v10512_v20, %v6482_v4  ;;  %v6451_v1 = vsel %vm6387_vm0, %v6355_v48, %v6419_v58  ;;  %v6353_v0 = vadd.f32 %v6321_v26, %v6012_v17  ;;  %v6292_v8 = vmul.f32 0.2, %v6190_v44 }
 0x2e7   : > { %v5864_v21 = vadd.f32 %v5787_v29, %v10449_v47  ;;  %v6487_v49 = vmul.f32 %v10508_v31, %v6451_v1  ;;  %v6015_v53 = vsel %vm5951_vm2, %v5919_v6, %v5983_v3  ;;  %v6182_v30 = vadd.f32 %v6181_v55, %v10477_v38  ;;  %v8060_v3 = vpop.f32.mrf.mxu0 }
 0x2e8   : > { %6550 = vst [vmem:[%s8755_s29 + $0x68] sm:$0xff] %v6518_v63  ;;  %v5869_v2 = vadd.f32 %v8056_v11, %v10452_v59  ;;  %vm6385_vm3 = vcmp.gt.f32.partialorder %v6353_v0, 0.0  ;;  %v6417_v28 = vmul.f32 0.2, %v6353_v0  ;;  %v6324_v32 = vsel %vm6260_vm1, %v6190_v44, %v6292_v8 }
 0x2e9   : > { %v5917_v13 = vadd.f32 %v10496_v60, %v5864_v21  ;;  %v6523_v19 = vadd.f32 %v10512_v20, %v6487_v49  ;;  %v6356_v47 = vadd.f32 %v6324_v32, %v6015_v53  ;;  %vm6258_vm4 = vcmp.gt.f32.partialorder %v6182_v30, 0.0 }
 0x2ea   : > { %v6290_v56 = vmul.f32 0.2, %v6182_v30  ;;  %v6449_v39 = vsel %vm6385_vm3, %v6353_v0, %v6417_v28  ;;  %v5922_v35 = vadd.f32 %v10496_v60, %v5869_v2  ;;  %v6203_v52 = vadd.f32 %v8104_v34, %v10477_v38 }
 0x2eb   : > { %vm5949_vm5 = vcmp.gt.f32.partialorder %v5917_v13, 0.0  ;;  %v5981_v62 = vmul.f32 0.2, %v5917_v13  ;;  %6555 = vst [vmem:[%s8755_s29 + $0x90] sm:$0xff] %v6523_v19  ;;  %v6485_v59 = vmul.f32 %v10508_v31, %v6449_v39  ;;  %vm6388_vm6 = vcmp.gt.f32.partialorder %v6356_v47, 0.0  ;;  %v5816_v19 = vpop.f32.mrf.mxu0 }
 0x2ec   : > { %v6420_v22 = vmul.f32 0.2, %v6356_v47  ;;  %v6322_v14 = vsel %vm6258_vm4, %v6182_v30, %v6290_v56  ;;  %vm5954_vm7 = vcmp.gt.f32.partialorder %v5922_v35, 0.0  ;;  %v5986_v61 = vmul.f32 0.2, %v5922_v35 }
 0x2ed   : > { %v6013_v29 = vsel %vm5949_vm5, %v5917_v13, %v5981_v62  ;;  %v6521_v9 = vadd.f32 %v10512_v20, %v6485_v59  ;;  %v5867_v18 = vadd.f32 %v5800_v15, %v10455_v10  ;;  %vm6263_vm8 = vcmp.gt.f32.partialorder %v6203_v52, 0.0 }
 0x2ee   : > { %v6452_v55 = vsel %vm6388_vm6, %v6356_v47, %v6420_v22  ;;  %v6354_v46 = vadd.f32 %v6322_v14, %v6013_v29  ;;  %v6018_v37 = vsel %vm5954_vm7, %v5922_v35, %v5986_v61  ;;  %v6295_v23 = vmul.f32 0.2, %v6203_v52  ;;  %v8061_v61 = vpop.f32.mrf.mxu0 }
 0x2ef   : > { %v6488_v36 = vmul.f32 %v10508_v31, %v6452_v55  ;;  %6553 = vst [vmem:[%s8755_s29 + $0x80] sm:$0xff] %v6521_v9  ;;  %v5920_v33 = vadd.f32 %v10496_v60, %v5867_v18  ;;  %v6195_v48 = vadd.f32 %v6194_v24, %v10477_v38  ;;  %v5870_v10 = vadd.f32 %v8057_v45, %v10458_v5  ;;  %v8108_v5 = vpop.f32.mrf.mxu1 }
 0x2f0   : > { %vm6386_vm9 = vcmp.gt.f32.partialorder %v6354_v46, 0.0  ;;  %v6418_v44 = vmul.f32 0.2, %v6354_v46  ;;  %v6327_v4 = vsel %vm6263_vm8, %v6203_v52, %v6295_v23  ;;  %v6206_v51 = vadd.f32 %v8105_v40, %v10477_v38 }
 0x2f1   : > { %v6524_v11 = vadd.f32 %v10512_v20, %v6488_v36  ;;  %v6359_v34 = vadd.f32 %v6327_v4, %v6018_v37  ;;  %vm5952_vm10 = vcmp.gt.f32.partialorder %v5920_v33, 0.0  ;;  %v5984_v58 = vmul.f32 0.2, %v5920_v33  ;;  %v6210_v62 = vpop.f32.mrf.mxu1  ;;  %v5819_v4 = vpop.f32.mrf.mxu0 }
 0x2f2   : > { %v6450_v6 = vsel %vm6386_vm9, %v6354_v46, %v6418_v44  ;;  %vm6261_vm11 = vcmp.gt.f32.partialorder %v6195_v48, 0.0  ;;  %v6293_v63 = vmul.f32 0.2, %v6195_v48  ;;  %v5923_v26 = vadd.f32 %v10496_v60, %v5870_v10 }
 0x2f3   : > { %6556 = vst [vmem:[%s8755_s29 + $0x98] sm:$0xff] %v6524_v11  ;;  %v6486_v17 = vmul.f32 %v10508_v31, %v6450_v6  ;;  %vm6391_vm12 = vcmp.gt.f32.partialorder %v6359_v34, 0.0  ;;  %v6423_v1 = vmul.f32 0.2, %v6359_v34  ;;  %v6016_v0 = vsel %vm5952_vm10, %v5920_v33, %v5984_v58  ;;  %v8109_v46 = vpop.f32.mrf.mxu1 }
 0x2f4   : > { %vm6264_vm13 = vcmp.gt.f32.partialorder %v6206_v51, 0.0  ;;  %v6325_v21 = vsel %vm6261_vm11, %v6195_v48, %v6293_v63  ;;  %vm5955_vm14 = vcmp.gt.f32.partialorder %v5923_v26, 0.0  ;;  %v5987_v15 = vmul.f32 0.2, %v5923_v26 }
 0x2f5   : > { %v6522_v8 = vadd.f32 %v10512_v20, %v6486_v17  ;;  %v6455_v49 = vsel %vm6391_vm12, %v6359_v34, %v6423_v1  ;;  %v6357_v53 = vadd.f32 %v6325_v21, %v6016_v0  ;;  %v6296_v30 = vmul.f32 0.2, %v6206_v51  ;;  %v6213_v34 = vpop.f32.mrf.mxu1 }
 0x2f6   : > { %v5868_v2 = vadd.f32 %v5803_v43, %v10461_v42  ;;  %v6491_v24 = vmul.f32 %v10508_v31, %v6455_v49  ;;  %v6019_v28 = vsel %vm5955_vm14, %v5923_v26, %v5987_v15  ;;  %v6198_v32 = vadd.f32 %v6197_v57, %v10477_v38 }
 0x2f7   : > { %6554 = vst [vmem:[%s8755_s29 + $0x88] sm:$0xff] %v6522_v8  ;;  %v5873_v13 = vadd.f32 %v8060_v3, %v10465_v41  ;;  %vm6389_vm15 = vcmp.gt.f32.partialorder %v6357_v53, 0.0  ;;  %v6421_v47 = vmul.f32 0.2, %v6357_v53  ;;  %v6328_v56 = vsel %vm6264_vm13, %v6206_v51, %v6296_v30  ;;  %v8112_v49 = vpop.f32.mrf.mxu1 }
 0x2f8   : > { %v5921_v39 = vadd.f32 %v10496_v60, %v5868_v2  ;;  %v6527_v35 = vadd.f32 %v10512_v20, %v6491_v24  ;;  %v6360_v42 = vadd.f32 %v6328_v56, %v6019_v28  ;;  %vm6262_vm0 = vcmp.gt.f32.partialorder %v6198_v32, 0.0 }
 0x2f9   : > { %v6294_v45 = vmul.f32 0.2, %v6198_v32  ;;  %v6453_v59 = vsel %vm6389_vm15, %v6357_v53, %v6421_v47  ;;  %v5926_v14 = vadd.f32 %v10496_v60, %v5873_v13  ;;  %v6219_v55 = vadd.f32 %v8108_v5, %v10477_v38 }
 0x2fa   : > { %vm5953_vm1 = vcmp.gt.f32.partialorder %v5921_v39, 0.0  ;;  %v5985_v22 = vmul.f32 0.2, %v5921_v39  ;;  %6559 = vst [vmem:[%s8755_s29 + $0xb0] sm:$0xff] %v6527_v35  ;;  %v6489_v41 = vmul.f32 %v10508_v31, %v6453_v59  ;;  %vm6392_vm2 = vcmp.gt.f32.partialorder %v6360_v42, 0.0 }
 0x2fb   : > { %v6424_v40 = vmul.f32 0.2, %v6360_v42  ;;  %v6326_v29 = vsel %vm6262_vm0, %v6198_v32, %v6294_v45  ;;  %vm5958_vm3 = vcmp.gt.f32.partialorder %v5926_v14, 0.0  ;;  %v5990_v9 = vmul.f32 0.2, %v5926_v14  ;;  %v6226_v45 = vpop.f32.mrf.mxu1 }
 0x2fc   : > { %v6017_v52 = vsel %vm5953_vm1, %v5921_v39, %v5985_v22  ;;  %v6525_v18 = vadd.f32 %v10512_v20, %v6489_v41  ;;  %v5871_v23 = vadd.f32 %v5816_v19, %v10468_v27  ;;  %vm6267_vm4 = vcmp.gt.f32.partialorder %v6219_v55, 0.0 }
 0x2fd   : > { %v6456_v36 = vsel %vm6392_vm2, %v6360_v42, %v6424_v40  ;;  %v6358_v37 = vadd.f32 %v6326_v29, %v6017_v52  ;;  %v6022_v44 = vsel %vm5958_vm3, %v5926_v14, %v5990_v9  ;;  %v6299_v33 = vmul.f32 0.2, %v6219_v55 }
 0x2fe   : > { %v6492_v43 = vmul.f32 %v10508_v31, %v6456_v36  ;;  %6557 = vst [vmem:[%s8755_s29 + $0xa0] sm:$0xff] %v6525_v18  ;;  %v5924_v57 = vadd.f32 %v10496_v60, %v5871_v23  ;;  %v6211_v11 = vadd.f32 %v6210_v62, %v10477_v38  ;;  %v5874_v6 = vadd.f32 %v8061_v61, %v10471_v50  ;;  %v8064_v50 = vpop.f32.mrf.mxu0 }
 0x2ff   : > { %vm6390_vm5 = vcmp.gt.f32.partialorder %v6358_v37, 0.0  ;;  %v6422_v48 = vmul.f32 0.2, %v6358_v37  ;;  %v6331_v51 = vsel %vm6267_vm4, %v6219_v55, %v6299_v33  ;;  %v6222_v27 = vadd.f32 %v8109_v46, %v10477_v38 }
 0x300   : > { %v6528_v10 = vadd.f32 %v10512_v20, %v6492_v43  ;;  %v6363_v17 = vadd.f32 %v6331_v51, %v6022_v44  ;;  %vm5956_vm6 = vcmp.gt.f32.partialorder %v5924_v57, 0.0  ;;  %v5988_v63 = vmul.f32 0.2, %v5924_v57  ;;  %v5832_v42 = vpop.f32.mrf.mxu0 }
 0x301   : > { %v6454_v58 = vsel %vm6390_vm5, %v6358_v37, %v6422_v48  ;;  %vm6265_vm7 = vcmp.gt.f32.partialorder %v6211_v11, 0.0  ;;  %v6297_v3 = vmul.f32 0.2, %v6211_v11  ;;  %v5927_v1 = vadd.f32 %v10496_v60, %v5874_v6  ;;  %v8113_v37 = vpop.f32.mrf.mxu1 }
 0x302   : > { %6560 = vst [vmem:[%s8755_s29 + $0xb8] sm:$0xff] %v6528_v10  ;;  %v6490_v26 = vmul.f32 %v10508_v31, %v6454_v58  ;;  %vm6395_vm8 = vcmp.gt.f32.partialorder %v6363_v17, 0.0  ;;  %v6427_v0 = vmul.f32 0.2, %v6363_v17  ;;  %v6020_v5 = vsel %vm5956_vm6, %v5924_v57, %v5988_v63  ;;  %v8065_v36 = vpop.f32.mrf.mxu0 }
 0x303   : > { %vm6268_vm9 = vcmp.gt.f32.partialorder %v6222_v27, 0.0  ;;  %v6329_v21 = vsel %vm6265_vm7, %v6211_v11, %v6297_v3  ;;  %vm5959_vm10 = vcmp.gt.f32.partialorder %v5927_v1, 0.0  ;;  %v5991_v15 = vmul.f32 0.2, %v5927_v1 }
 0x304   : > { %v6526_v8 = vadd.f32 %v10512_v20, %v6490_v26  ;;  %v6459_v53 = vsel %vm6395_vm8, %v6363_v17, %v6427_v0  ;;  %v6361_v30 = vadd.f32 %v6329_v21, %v6020_v5  ;;  %v6300_v2 = vmul.f32 0.2, %v6222_v27  ;;  %v5835_v63 = vpop.f32.mrf.mxu0 }
 0x305   : > { %v5872_v24 = vadd.f32 %v5819_v4, %v10474_v25  ;;  %v6495_v28 = vmul.f32 %v10508_v31, %v6459_v53  ;;  %v6023_v32 = vsel %vm5959_vm10, %v5927_v1, %v5991_v15  ;;  %v6214_v13 = vadd.f32 %v6213_v34, %v10477_v38 }
 0x306   : > { %6558 = vst [vmem:[%s8755_s29 + $0xa8] sm:$0xff] %v6526_v8  ;;  %v5877_v19 = vadd.f32 %v8064_v50, %v10479_v54  ;;  %vm6393_vm11 = vcmp.gt.f32.partialorder %v6361_v30, 0.0  ;;  %v6425_v47 = vmul.f32 0.2, %v6361_v30  ;;  %v6332_v56 = vsel %vm6268_vm9, %v6222_v27, %v6300_v2 }
 0x307   : > { %v5925_v39 = vadd.f32 %v10496_v60, %v5872_v24  ;;  %v6531_v62 = vadd.f32 %v10512_v20, %v6495_v28  ;;  %v6364_v35 = vadd.f32 %v6332_v56, %v6023_v32  ;;  %vm6266_vm12 = vcmp.gt.f32.partialorder %v6214_v13, 0.0 }
 0x308   : > { %v6298_v25 = vmul.f32 0.2, %v6214_v13  ;;  %v6457_v59 = vsel %vm6393_vm11, %v6361_v30, %v6425_v47  ;;  %v5930_v14 = vadd.f32 %v10496_v60, %v5877_v19  ;;  %v6235_v52 = vadd.f32 %v8112_v49, %v10477_v38 }
 0x309   : > { %vm5957_vm13 = vcmp.gt.f32.partialorder %v5925_v39, 0.0  ;;  %v5989_v22 = vmul.f32 0.2, %v5925_v39  ;;  %6563 = vst [vmem:[%s8755_s29 + $0xd0] sm:$0xff] %v6531_v62  ;;  %v6493_v54 = vmul.f32 %v10508_v31, %v6457_v59  ;;  %vm6396_vm14 = vcmp.gt.f32.partialorder %v6364_v35, 0.0 }
 0x30a   : > { %v6428_v41 = vmul.f32 0.2, %v6364_v35  ;;  %v6330_v40 = vsel %vm6266_vm12, %v6214_v13, %v6298_v25  ;;  %vm5962_vm15 = vcmp.gt.f32.partialorder %v5930_v14, 0.0  ;;  %v5994_v61 = vmul.f32 0.2, %v5930_v14 }
 0x30b   : > { %v6021_v29 = vsel %vm5957_vm13, %v5925_v39, %v5989_v22  ;;  %v6529_v9 = vadd.f32 %v10512_v20, %v6493_v54  ;;  %v5875_v18 = vadd.f32 %v5832_v42, %v10485_v16  ;;  %vm6271_vm0 = vcmp.gt.f32.partialorder %v6235_v52, 0.0 }
 0x30c   : > { %v6460_v55 = vsel %vm6396_vm14, %v6364_v35, %v6428_v41  ;;  %v6362_v46 = vadd.f32 %v6330_v40, %v6021_v29  ;;  %v6026_v43 = vsel %vm5962_vm15, %v5930_v14, %v5994_v61  ;;  %v6303_v44 = vmul.f32 0.2, %v6235_v52 }
 0x30d   : > { %v6496_v23 = vmul.f32 %v10508_v31, %v6460_v55  ;;  %6561 = vst [vmem:[%s8755_s29 + $0xc0] sm:$0xff] %v6529_v9  ;;  %v5928_v48 = vadd.f32 %v10496_v60, %v5875_v18  ;;  %v6227_v57 = vadd.f32 %v6226_v45, %v10477_v38  ;;  %v5878_v16 = vadd.f32 %v8065_v36, %v10493_v7  ;;  %v6229_v7 = vpop.f32.mrf.mxu1 }
 0x30e   : > { %vm6394_vm1 = vcmp.gt.f32.partialorder %v6362_v46, 0.0  ;;  %v6426_v33 = vmul.f32 0.2, %v6362_v46  ;;  %v6335_v4 = vsel %vm6271_vm0, %v6235_v52, %v6303_v44  ;;  %v6238_v10 = vadd.f32 %v8113_v37, %v10477_v38 }
 0x30f   : > { %v6532_v11 = vadd.f32 %v10512_v20, %v6496_v23  ;;  %v6367_v6 = vadd.f32 %v6335_v4, %v6026_v43  ;;  %vm5960_vm2 = vcmp.gt.f32.partialorder %v5928_v48, 0.0  ;;  %v5992_v27 = vmul.f32 0.2, %v5928_v48 }
 0x310   : > { %v6458_v51 = vsel %vm6394_vm1, %v6362_v46, %v6426_v33  ;;  %vm6269_vm3 = vcmp.gt.f32.partialorder %v6227_v57, 0.0  ;;  %v6301_v58 = vmul.f32 0.2, %v6227_v57  ;;  %v5931_v17 = vadd.f32 %v10496_v60, %v5878_v16 }
 0x311   : > { %6564 = vst [vmem:[%s8755_s29 + $0xd8] sm:$0xff] %v6532_v11  ;;  %v6494_v34 = vmul.f32 %v10508_v31, %v6458_v51  ;;  %vm6399_vm4 = vcmp.gt.f32.partialorder %v6367_v6, 0.0  ;;  %v6431_v26 = vmul.f32 0.2, %v6367_v6  ;;  %v6024_v3 = vsel %vm5960_vm2, %v5928_v48, %v5992_v27 }
 0x312   : > { %vm6272_vm5 = vcmp.gt.f32.partialorder %v6238_v10, 0.0  ;;  %v6333_v0 = vsel %vm6269_vm3, %v6227_v57, %v6301_v58  ;;  %vm5963_vm6 = vcmp.gt.f32.partialorder %v5931_v17, 0.0  ;;  %v5995_v5 = vmul.f32 0.2, %v5931_v17 }
 0x313   : > { %v6530_v1 = vadd.f32 %v10512_v20, %v6494_v34  ;;  %v6463_v50 = vsel %vm6399_vm4, %v6367_v6, %v6431_v26  ;;  %v6365_v8 = vadd.f32 %v6333_v0, %v6024_v3  ;;  %v6304_v21 = vmul.f32 0.2, %v6238_v10 }
 0x314   : > { %v5876_v15 = vadd.f32 %v5835_v63, %v10505_v12  ;;  %v6499_v49 = vmul.f32 %v10508_v31, %v6463_v50  ;;  %v6027_v53 = vsel %vm5963_vm6, %v5931_v17, %v5995_v5  ;;  %v6230_v30 = vadd.f32 %v6229_v7, %v10477_v38 }
 0x315   : > { %6562 = vst [vmem:[%s8755_s29 + $0xc8] sm:$0xff] %v6530_v1  ;;  %vm6397_vm7 = vcmp.gt.f32.partialorder %v6365_v8, 0.0  ;;  %v6429_v2 = vmul.f32 0.2, %v6365_v8  ;;  %v6336_v24 = vsel %vm6272_vm5, %v6238_v10, %v6304_v21 }
 0x316   : > { %v5929_v28 = vadd.f32 %v10496_v60, %v5876_v15  ;;  %v6535_v32 = vadd.f32 %v10512_v20, %v6499_v49  ;;  %v6368_v13 = vadd.f32 %v6336_v24, %v6027_v53  ;;  %vm6270_vm8 = vcmp.gt.f32.partialorder %v6230_v30, 0.0 }
 0x317   : > { %v6302_v19 = vmul.f32 0.2, %v6230_v30  ;;  %v6461_v12 = vsel %vm6397_vm7, %v6365_v8, %v6429_v2 }
 0x318   : > { %vm5961_vm9 = vcmp.gt.f32.partialorder %v5929_v28, 0.0  ;;  %v5993_v47 = vmul.f32 0.2, %v5929_v28  ;;  %6567 = vst [vmem:[%s8755_s29 + $0xf0] sm:$0xff] %v6535_v32  ;;  %v6497_v56 = vmul.f32 %v10508_v31, %v6461_v12  ;;  %vm6400_vm10 = vcmp.gt.f32.partialorder %v6368_v13, 0.0 }
 0x319   : > { %v6432_v38 = vmul.f32 0.2, %v6368_v13  ;;  %v6334_v62 = vsel %vm6270_vm8, %v6230_v30, %v6302_v19 }
 0x31a   : > { %v6025_v39 = vsel %vm5961_vm9, %v5929_v28, %v5993_v47  ;;  %v6533_v60 = vadd.f32 %v10512_v20, %v6497_v56 }
 0x31b   : > { %v6464_v35 = vsel %vm6400_vm10, %v6368_v13, %v6432_v38  ;;  %v6366_v25 = vadd.f32 %v6334_v62, %v6025_v39 }
 0x31c   : > { %v6500_v42 = vmul.f32 %v10508_v31, %v6464_v35  ;;  %6565 = vst [vmem:[%s8755_s29 + $0xe0] sm:$0xff] %v6533_v60 }
 0x31d   : > { %vm6398_vm11 = vcmp.gt.f32.partialorder %v6366_v25, 0.0  ;;  %v6430_v45 = vmul.f32 0.2, %v6366_v25 }
 0x31e   : > { %v6536_v59 = vadd.f32 %v10512_v20, %v6500_v42 }
 0x31f   : > { %v6462_v22 = vsel %vm6398_vm11, %v6366_v25, %v6430_v45 }
 0x320   : > { %6568 = vst [vmem:[%s8755_s29 + $0xf8] sm:$0xff] %v6536_v59  ;;  %v6498_v14 = vmul.f32 %v10508_v31, %v6462_v22  ;;  %6572 = sbr.rel (%p7321_p1) target bundleno = 824 (0x338), region = 56 }
 0x322   : > { %v6534_v54 = vadd.f32 %v10512_v20, %v6498_v14 }
 0x324   : > { %6566 = vst [vmem:[%s8755_s29 + $0xe8] sm:$0xff] %v6534_v54 }
 0x325   : > { %v6573_v41 = vld [vmem:[%s8755_s29] sm:$0xff]  ;;  %v6574_v40 = vld [vmem:[%s8755_s29 + $0x8] sm:$0xff]  ;;  %v6575_v29 = vld [vmem:[%s8755_s29 + $0x10] sm:$0xff] }
 0x326   : > { %v7361_v61 = vpack.c.bf16 %v6573_v41, %v6573_v41  ;;  %v7362_v31 = vpack.c.bf16 %v6574_v40, %v6574_v40  ;;  %v7363_v52 = vpack.c.bf16 %v6575_v29, %v6575_v29  ;;  %v6576_v20 = vld [vmem:[%s8755_s29 + $0x18] sm:$0xff]  ;;  %v6577_v9 = vld [vmem:[%s8755_s29 + $0x20] sm:$0xff]  ;;  %v6578_v55 = vld [vmem:[%s8755_s29 + $0x28] sm:$0xff] }
 0x327   : > { %v7364_v46 = vpack.c.bf16 %v6576_v20, %v6576_v20  ;;  %v7365_v18 = vpack.c.bf16 %v6577_v9, %v6577_v9  ;;  %v7366_v36 = vpack.c.bf16 %v6578_v55, %v6578_v55  ;;  %v6579_v37 = vld [vmem:[%s8755_s29 + $0x30] sm:$0xff]  ;;  %v6580_v23 = vld [vmem:[%s8755_s29 + $0x38] sm:$0xff]  ;;  %v6581_v43 = vld [vmem:[%s8755_s29 + $0x40] sm:$0xff] }
 0x328   : > { %6733 = vst [vmem:[#allocation2 + $0x14] sm:$0xf] %v7361_v61  ;;  %6734 = vst [vmem:[#allocation2 + $0x18] sm:$0xf] %v7362_v31  ;;  %v7367_v44 = vpack.c.bf16 %v6579_v37, %v6579_v37  ;;  %v7368_v33 = vpack.c.bf16 %v6580_v23, %v6580_v23  ;;  %v7369_v48 = vpack.c.bf16 %v6581_v43, %v6581_v43  ;;  %v6582_v57 = vld [vmem:[%s8755_s29 + $0x48] sm:$0xff]  ;;  %v6583_v11 = vld [vmem:[%s8755_s29 + $0x50] sm:$0xff] }
 0x329   : > { %6735 = vst [vmem:[#allocation2 + $0x24] sm:$0xf] %v7363_v52  ;;  %v6584_v4 = vld [vmem:[%s8755_s29 + $0x58] sm:$0xff]  ;;  %6736 = vst [vmem:[#allocation2 + $0x28] sm:$0xf] %v7364_v46  ;;  %v7370_v16 = vpack.c.bf16 %v6582_v57, %v6582_v57  ;;  %v7371_v10 = vpack.c.bf16 %v6583_v11, %v6583_v11  ;;  %v6585_v6 = vld [vmem:[%s8755_s29 + $0x60] sm:$0xff] }
 0x32a   : > { %6737 = vst [vmem:[#allocation2 + $0x34] sm:$0xf] %v7365_v18  ;;  %6738 = vst [vmem:[#allocation2 + $0x38] sm:$0xf] %v7366_v36  ;;  %v7372_v51 = vpack.c.bf16 %v6584_v4, %v6584_v4  ;;  %v6586_v27 = vld [vmem:[%s8755_s29 + $0x68] sm:$0xff]  ;;  %v6587_v34 = vld [vmem:[%s8755_s29 + $0x70] sm:$0xff]  ;;  %v7373_v58 = vpack.c.bf16 %v6585_v6, %v6585_v6 }
 0x32b   : > { %6739 = vst [vmem:[#allocation2 + $0x44] sm:$0xf] %v7367_v44  ;;  %6740 = vst [vmem:[#allocation2 + $0x48] sm:$0xf] %v7368_v33  ;;  %v7374_v17 = vpack.c.bf16 %v6586_v27, %v6586_v27  ;;  %v7375_v63 = vpack.c.bf16 %v6587_v34, %v6587_v34  ;;  %v6588_v26 = vld [vmem:[%s8755_s29 + $0x78] sm:$0xff]  ;;  %v6589_v3 = vld [vmem:[%s8755_s29 + $0x80] sm:$0xff] }
 0x32c   : > { %6741 = vst [vmem:[#allocation2 + $0x54] sm:$0xf] %v7369_v48  ;;  %v6590_v7 = vld [vmem:[%s8755_s29 + $0x88] sm:$0xff]  ;;  %6742 = vst [vmem:[#allocation2 + $0x58] sm:$0xf] %v7370_v16  ;;  %v7376_v1 = vpack.c.bf16 %v6588_v26, %v6588_v26  ;;  %v7377_v0 = vpack.c.bf16 %v6589_v3, %v6589_v3  ;;  %v6591_v50 = vld [vmem:[%s8755_s29 + $0x90] sm:$0xff] }
 0x32d   : > { %6743 = vst [vmem:[#allocation2 + $0x64] sm:$0xf] %v7371_v10  ;;  %6744 = vst [vmem:[#allocation2 + $0x68] sm:$0xf] %v7372_v51  ;;  %v7378_v5 = vpack.c.bf16 %v6590_v7, %v6590_v7  ;;  %v6592_v8 = vld [vmem:[%s8755_s29 + $0x98] sm:$0xff]  ;;  %v6593_v21 = vld [vmem:[%s8755_s29 + $0xa0] sm:$0xff]  ;;  %v7379_v15 = vpack.c.bf16 %v6591_v50, %v6591_v50 }
 0x32e   : > { %6745 = vst [vmem:[#allocation2 + $0x74] sm:$0xf] %v7373_v58  ;;  %6746 = vst [vmem:[#allocation2 + $0x78] sm:$0xf] %v7374_v17  ;;  %v7380_v49 = vpack.c.bf16 %v6592_v8, %v6592_v8  ;;  %v7381_v53 = vpack.c.bf16 %v6593_v21, %v6593_v21  ;;  %v6594_v30 = vld [vmem:[%s8755_s29 + $0xa8] sm:$0xff]  ;;  %v6595_v2 = vld [vmem:[%s8755_s29 + $0xb0] sm:$0xff] }
 0x32f   : > { %6747 = vst [vmem:[#allocation2 + $0x84] sm:$0xf] %v7375_v63  ;;  %v6596_v24 = vld [vmem:[%s8755_s29 + $0xb8] sm:$0xff]  ;;  %6748 = vst [vmem:[#allocation2 + $0x88] sm:$0xf] %v7376_v1  ;;  %v7382_v28 = vpack.c.bf16 %v6594_v30, %v6594_v30  ;;  %v7383_v32 = vpack.c.bf16 %v6595_v2, %v6595_v2  ;;  %v6597_v19 = vld [vmem:[%s8755_s29 + $0xc0] sm:$0xff] }
 0x330   : > { %6749 = vst [vmem:[#allocation2 + $0x94] sm:$0xf] %v7377_v0  ;;  %6750 = vst [vmem:[#allocation2 + $0x98] sm:$0xf] %v7378_v5  ;;  %v7384_v13 = vpack.c.bf16 %v6596_v24, %v6596_v24  ;;  %v6598_v12 = vld [vmem:[%s8755_s29 + $0xc8] sm:$0xff]  ;;  %v6599_v47 = vld [vmem:[%s8755_s29 + $0xd0] sm:$0xff]  ;;  %v7385_v56 = vpack.c.bf16 %v6597_v19, %v6597_v19 }
 0x331   : > { %6751 = vst [vmem:[#allocation2 + $0xa4] sm:$0xf] %v7379_v15  ;;  %6752 = vst [vmem:[#allocation2 + $0xa8] sm:$0xf] %v7380_v49  ;;  %v7386_v38 = vpack.c.bf16 %v6598_v12, %v6598_v12  ;;  %v7387_v39 = vpack.c.bf16 %v6599_v47, %v6599_v47  ;;  %v6600_v62 = vld [vmem:[%s8755_s29 + $0xd8] sm:$0xff]  ;;  %v6601_v60 = vld [vmem:[%s8755_s29 + $0xe0] sm:$0xff] }
 0x332   : > { %6753 = vst [vmem:[#allocation2 + $0xb4] sm:$0xf] %v7381_v53  ;;  %v6602_v35 = vld [vmem:[%s8755_s29 + $0xe8] sm:$0xff]  ;;  %6754 = vst [vmem:[#allocation2 + $0xb8] sm:$0xf] %v7382_v28  ;;  %v7388_v25 = vpack.c.bf16 %v6600_v62, %v6600_v62  ;;  %v7389_v42 = vpack.c.bf16 %v6601_v60, %v6601_v60  ;;  %v6603_v59 = vld [vmem:[%s8755_s29 + $0xf0] sm:$0xff] }
 0x333   : > { %6755 = vst [vmem:[#allocation2 + $0xc4] sm:$0xf] %v7383_v32  ;;  %6756 = vst [vmem:[#allocation2 + $0xc8] sm:$0xf] %v7384_v13  ;;  %v7390_v45 = vpack.c.bf16 %v6602_v35, %v6602_v35  ;;  %v6604_v22 = vld [vmem:[%s8755_s29 + $0xf8] sm:$0xff]  ;;  %v7391_v14 = vpack.c.bf16 %v6603_v59, %v6603_v59 }
 0x334   : > { %6757 = vst [vmem:[#allocation2 + $0xd4] sm:$0xf] %v7385_v56  ;;  %6758 = vst [vmem:[#allocation2 + $0xd8] sm:$0xf] %v7386_v38  ;;  %v7392_v54 = vpack.c.bf16 %v6604_v22, %v6604_v22 }
 0x335   : > { %6759 = vst [vmem:[#allocation2 + $0xe4] sm:$0xf] %v7387_v39  ;;  %6760 = vst [vmem:[#allocation2 + $0xe8] sm:$0xf] %v7388_v25 }
 0x336   : > { %6761 = vst [vmem:[#allocation2 + $0xf4] sm:$0xf] %v7389_v42  ;;  %6762 = vst [vmem:[#allocation2 + $0xf8] sm:$0xf] %v7390_v45 }
 0x337   : > { %6763 = vst [vmem:[#allocation2 + $0x104] sm:$0xf] %v7391_v14  ;;  %6764 = vst [vmem:[#allocation2 + $0x108] sm:$0xf] %v7392_v54 }
 0x338 PF: > { %s7393_s18 = sshll.u32 %s8545_s19, 12  ;;  %s6779_s13 = sshll.u32 %s8755_s29, 4  ;;  %s10749_s13 = int_to_ptr.vmem [resolvable:$true] %s6779_s13 }
 0x339   : > { %s10746_s12 = scalar_lea.hbm %s10806_s4, %s7393_s18  ;;  %s6766_s30 = scalar_lea.sflag [#allocation5], %s8740_s8 }
 0x33a   : > { %s8457_s9 = scalar_lea.vmem %s10749_s13, 4096  ;;  %s8567_s5 = smov [#allocation9]  }
 0x33b   : > { %p8458_p4 = scmp.ne.s32.totalorder %s10749_s13, %s8457_s9  ;;  %s8461_s1 = sshll.u32 %s8567_s5, 4  ;;  %s8462_s1 = int_to_ptr.vmem [resolvable:$false] %s8461_s1 }
 0x33c   : > { %s8463_s19 = scalar_lea.vmem %s8462_s1, 8192  ;;  %p8464_p2 = scmp.lt.s32.totalorder %s10749_s13, %s8462_s1 }
 0x33d   : > { %p8459_p8 = pnand %p8458_p4, %p8707_p0  ;;  %p8465_p9 = scmp.lt.s32.totalorder %s8463_s19, %s8457_s9 }
 0x33f   : > { %p8460_p7 = pneg %p8459_p8  ;;  %p8466_p11 = por %p8465_p9, %p8464_p2 }
 0x341   : > { %p8467_p12 = pnand %p8466_p11, %p8460_p7 }
 0x343   : > { %8470 = shalt.err (!%p8467_p12)
}
 0x344   : > { %s8471_s29 = scalar_lea.hbm %s10746_s12, 4096  ;;  %s8475_s10 = scalar_lea.hbm %s10806_s4, 8192 }
 0x345   : > { %p8472_p13 = scmp.ne.s32.totalorder %s10746_s12, %s8471_s29  ;;  %p8476_p5 = scmp.lt.s32.totalorder %s10746_s12, %s10806_s4 }
 0x346   : > { %p8477_p6 = scmp.lt.s32.totalorder %s8475_s10, %s8471_s29 }
 0x347   : > { %p8473_p10 = pnand %p8472_p13, %p8707_p0 }
 0x348   : > { %p8478_p1 = por %p8477_p6, %p8476_p5 }
 0x349   : > { %p8474_p3 = pneg %p8473_p10 }
 0x34b   : > { %p8479_p4 = pnand %p8478_p1, %p8474_p3 }
 0x34d   : > { %8482 = shalt.err (!%p8479_p4)
}
 0x34e   : > { %s8568_s26 = smov 128   ;;  %s8569_s24 = smov 8  }
 0x34f   : > { %8124 = dma.vmem_to_hbm [thread:$0]  (%p8707_p0), %s10749_s13, 4096, %s10746_s12, %s6766_s30, %s8568_s26, %s8568_s26, %s8569_s24  }
 0x350 PF: > { %p8146_p8 = scmp.ge.s32.totalorder %s8557_s22, 2  ;;  %s6794_s18 = sand.u32 1, %s8529_s15  }
 0x351   : > { %p10995_p7 = scmp.ne.s32.totalorder %s10833_s28, 0  ;;  %s6795_s14 = scalar_lea.sflag [#allocation5], %s6794_s18 }
 0x353   : > { %p8138_p2 = pnand %p8146_p8, %p10995_p7 }
 0x355   : > { %p8139_p9 = pneg %p8138_p2 }
 0x357   : > { %8524 = dma.done.wait (%p8139_p9), %s6795_s14, 4096  }
 0x358   : > { %8526 = vsyncadd (%p8139_p9), %s6795_s14, 4294963200  ;;  %s21_s22 = sadd.s32 1, %s8557_s22   ;;  %s10996_s6 = sld [smem:[#allocation13_spill]] }
 0x359   : > { %p18_p11 = scmp.ge.s32.totalorder %s21_s22, 6   ;;  %s10997_s8 = sld [smem:[#allocation14_spill]] }
 0x35a   : > { %s10998_s15 = smov %s8533_s16  ;;  %s10999_s16 = smov %s8537_s17 }
 0x35b   : > { %s11000_s17 = smov %s8728_s2  ;;  %s11001_s18 = smov %s8549_s20 }
 0x35c   : > { %s11002_s19 = smov %s8553_s21  ;;  %20 = sbr.rel (!%p18_p11) target bundleno = 11 (0xb), region = 113 }
 0x35e   : > { %s11003_s20 = smov %s10996_s6 }
 0x35f   : > { %s11004_s21 = smov %s10997_s8 }
 0x361   :  { %6800 = vsyncpa [#allocation4], 1 }
 0x362   :  { %6802 = vsyncpa [#allocation4 + $0x1], 1 }
 0x363   :  { %6803 = vsyncpa [#allocation7], 1 }
 0x364   :  { %6804 = vsyncpa [#allocation5], 1 }
 0x365   :  { %6806 = vsyncpa [#allocation5 + $0x1], 1 }

</bundles_post_ra>
